<compile_context>
chip_gen: v6e
topology: v6e:2x2x1
jax: 0.10.0
libtpu: 0.0.40
codegen_flags: <defaults>
</compile_context>

<pallas_src>
import functools

import jax
import jax.numpy as jnp
from jax.experimental import pallas as pl
from jax.experimental.pallas import tpu as pltpu


def _round_up(x, m):
    return ((x + m - 1) // m) * m


def _num_tensorcores():
    """Number of TensorCores addressable by one 'parallel' grid axis."""
    try:
        kind = jax.devices()[0].device_kind.lower()
    except Exception:
        return 1
    # v7x exposes 2 TensorCores per chip; v4/v5p megacore also has 2.
    if "v7" in kind or "v4" in kind or "v5p" in kind:
        return 2
    return 1


def _actor_kernel(x_ref, rsm_ref, rsi_ref, w0_ref, b0_ref,
                  w1_ref, b1_ref, w2_ref, b2_ref,
                  wh1_ref, bh1_ref, wh2_ref, bh2_ref,
                  o_ref, *, eps, n_layers, matmul_dtype):
    # x_ref: (block_b, n_states) f32 tile.  Matmuls: `matmul_dtype` operands
    # (bf16 by default) with f32 accumulation; element-wise math stays f32.

    # ---- RSNorm (eval path) in f32 in-kernel, then Linear(n_states -> D).
    xn = (x_ref[...] - rsm_ref[...]) * rsi_ref[...]
    h = jnp.dot(xn.astype(matmul_dtype), w0_ref[...],
                preferred_element_type=jnp.float32) + b0_ref[...]

    # ---- SimBa residual block (RMSNorm gamma folded into w1; Dropout(0) == id)
    def simba_block(l, h):
        ms = jnp.mean(h * h, axis=-1, keepdims=True)
        hn = h * jax.lax.rsqrt(ms + eps)
        a = jnp.dot(hn.astype(matmul_dtype), w1_ref[l],
                    preferred_element_type=jnp.float32) + b1_ref[l]
        r = jnp.maximum(a, 0.0)            # ReluSquared: sign(x)*relu(x)^2 == relu(x)^2
        a = r * r
        y = jnp.dot(a.astype(matmul_dtype), w2_ref[l],
                    preferred_element_type=jnp.float32) + b2_ref[l]
        return h + y                       # residual

    if n_layers <= 4:
        for l in range(n_layers):          # small fixed trip-count: unroll
            h = simba_block(l, h)
    else:
        h = jax.lax.fori_loop(0, n_layers, simba_block, h)

    # ---- final RMSNorm (gamma folded into wh1) + fused mu/critic heads
    ms = jnp.mean(h * h, axis=-1, keepdims=True)
    hn = h * jax.lax.rsqrt(ms + eps)
    z = jnp.dot(hn.astype(matmul_dtype), wh1_ref[...],
                preferred_element_type=jnp.float32) + bh1_ref[...]
    r = jnp.maximum(z, 0.0)
    z = r * r
    out = jnp.dot(z.astype(matmul_dtype), wh2_ref[...],
                  preferred_element_type=jnp.float32) + bh2_ref[...]
    o_ref[...] = out.astype(o_ref.dtype)


def actor_forward(x, p, *, eps=1e-5, max_block_b=512, matmul_dtype=jnp.bfloat16):
    """Fused Actor forward.  Returns (mu, std, v)."""
    B, n_states = x.shape
    n_layers, D, H = p["w1"].shape            # D = h_dim*2, H = D*exp_factor
    h_dim = p["wm1"].shape[1]
    n_actions = p["wm2"].shape[1]
    HH = 2 * h_dim                            # fused head hidden width

    # ---------- one-time weight preprocessing (f32 math, then matmul dtype) ----------
    # RSNorm stats stay separate (applied in-kernel in f32).
    rs_inv = 1.0 / jnp.maximum(jnp.sqrt(p["rs_var"]), eps)   # clamp(min=eps)
    rsm = p["rs_mean"].reshape(1, n_states).astype(jnp.float32)
    rsi = rs_inv.reshape(1, n_states).astype(jnp.float32)

    w1 = p["gamma"][:, :, None] * p["w1"]                    # fold SimBa RMSNorm gammas
    w2 = p["w2"]

    # Fuse mu + critic heads: shared first Linear (lane-dense 2*h_dim wide),
    # block-diagonal second Linear padded to a 128-multiple output slab.
    OUT_pad = _round_up(n_actions + 1, 128)
    wh1 = p["gamma_f"][:, None] * jnp.concatenate([p["wm1"], p["wc1"]], axis=1)
    bh1 = jnp.concatenate([p["bm1"], p["bc1"]], axis=0)
    wh2 = jnp.zeros((HH, OUT_pad), jnp.float32)
    wh2 = wh2.at[:h_dim, :n_actions].set(p["wm2"])
    wh2 = wh2.at[h_dim:, n_actions].set(p["wc2"][:, 0])
    bh2 = jnp.zeros((OUT_pad,), jnp.float32)
    bh2 = bh2.at[:n_actions].set(p["bm2"])
    bh2 = bh2.at[n_actions].set(p["bc2"][0])

    w0b = p["w0"].astype(matmul_dtype)                       # (n_states, D)
    w1b = w1.astype(matmul_dtype)
    w2b = w2.astype(matmul_dtype)
    wh1b = wh1.astype(matmul_dtype)
    wh2b = wh2.astype(matmul_dtype)
    b0r = p["b0"].reshape(1, D).astype(jnp.float32)
    b1r = p["b1"].reshape(n_layers, 1, H).astype(jnp.float32)
    b2r = p["b2"].reshape(n_layers, 1, D).astype(jnp.float32)
    bh1r = bh1.reshape(1, HH).astype(jnp.float32)
    bh2r = bh2.reshape(1, OUT_pad).astype(jnp.float32)

    # ---------- generation-aware batch tiling: grid size == number of TCs ----------
    num_tc = _num_tensorcores()
    per_core = -(-B // num_tc)                                # cdiv
    block_b = min(max_block_b, _round_up(per_core, 8))
    B_pad = _round_up(B, block_b)
    grid = (B_pad // block_b,)

    xf = x.astype(jnp.float32)
    x_in = xf if B_pad == B else jnp.pad(xf, ((0, B_pad - B), (0, 0)))

    # ---------- explicit VMEM budget (headroom; capped for v7x's 64 MiB) ----------
    itemsize = jnp.dtype(matmul_dtype).itemsize
    n_weight_elems = (n_states * D + n_layers * D * H + n_layers * H * D
                      + D * HH + HH * OUT_pad)
    weight_bytes = 2 * n_weight_elems * itemsize              # conservative (2 bufs)
    tile_bytes = 2 * (block_b * n_states + block_b * OUT_pad) * 4
    interm_bytes = 4 * block_b * (D + H + HH + OUT_pad) * 4   # live f32 temps
    vmem_limit = min(weight_bytes + tile_bytes + interm_bytes + (8 << 20), 32 << 20)

    kernel = functools.partial(_actor_kernel, eps=eps, n_layers=n_layers,
                               matmul_dtype=matmul_dtype)

    def make_call(weight_mode):
        def wspec(shape):
            idx = lambda i, _n=len(shape): (0,) * _n
            if weight_mode is None:
                return pl.BlockSpec(shape, idx)
            return pl.BlockSpec(shape, idx, pipeline_mode=weight_mode)

        return pl.pallas_call(
            kernel,
            out_shape=jax.ShapeDtypeStruct((B_pad, OUT_pad), jnp.float32),
            grid_spec=pltpu.PrefetchScalarGridSpec(
                num_scalar_prefetch=0,
                grid=grid,
                in_specs=[
                    pl.BlockSpec((block_b, n_states), lambda i: (i, 0)),  # x tile (no pad)
                    wspec((1, n_states)),                                 # rs_mean
                    wspec((1, n_states)),                                 # rs_inv
                    wspec((n_states, D)),                                 # W0
                    wspec((1, D)),                                        # b0
                    wspec((n_layers, D, H)),                              # SimBa W1 (gamma folded)
                    wspec((n_layers, 1, H)),                              # SimBa b1
                    wspec((n_layers, H, D)),                              # SimBa W2
                    wspec((n_layers, 1, D)),                              # SimBa b2
                    wspec((D, HH)),                                       # fused head W1
                    wspec((1, HH)),                                       # fused head b1
                    wspec((HH, OUT_pad)),                                 # fused head W2 (padded)
                    wspec((1, OUT_pad)),                                  # fused head b2
                ],
                out_specs=pl.BlockSpec((block_b, OUT_pad), lambda i: (i, 0)),
            ),
            compiler_params=pltpu.CompilerParams(
                dimension_semantics=("parallel",),
                vmem_limit_bytes=vmem_limit,
            ),
        )

    args = (x_in, rsm, rsi, w0b, b0r, w1b, b1r, w2b, b2r, wh1b, bh1r, wh2b, bh2r)
    try:
        # Single-buffer the block-index-constant weights (1x resident VMEM).
        out = make_call(pl.Buffered(1))(*args)
    except Exception:
        # Fallback: default double-buffering if Buffered(1) is rejected.
        out = make_call(None)(*args)

    mu = out[:B, :n_actions]
    v = out[:B, n_actions:n_actions + 1]
    std = jnp.exp(p["log_std"])
    return mu, std, v


def actor_ref(x, p, *, eps=1e-5):
    """Pure-JAX f32 reference matching the PyTorch Actor semantics (eval mode)."""
    xf = x.astype(jnp.float32)
    n_layers = p["w1"].shape[0]
    inv = 1.0 / jnp.maximum(jnp.sqrt(p["rs_var"]), eps)
    h = (xf - p["rs_mean"]) * inv
    h = h @ p["w0"] + p["b0"]
    for l in range(n_layers):
        xn = h * jax.lax.rsqrt(jnp.mean(h * h, axis=-1, keepdims=True) + eps) * p["gamma"][l]
        a = xn @ p["w1"][l] + p["b1"][l]
        a = jnp.sign(a) * jnp.maximum(a, 0.0) ** 2
        h = h + (a @ p["w2"][l] + p["b2"][l])
    hn = h * jax.lax.rsqrt(jnp.mean(h * h, axis=-1, keepdims=True) + eps) * p["gamma_f"]
    zm = hn @ p["wm1"] + p["bm1"]
    zm = jnp.sign(zm) * jnp.maximum(zm, 0.0) ** 2
    mu = zm @ p["wm2"] + p["bm2"]
    zc = hn @ p["wc1"] + p["bc1"]
    zc = jnp.sign(zc) * jnp.maximum(zc, 0.0) ** 2
    v = zc @ p["wc2"] + p["bc2"]
    std = jnp.exp(p["log_std"])
    return mu, std, v


if __name__ == "__main__":
    key = jax.random.PRNGKey(0)

    B = 100            # non-multiple of 8: exercises batch padding
    n_states = 16
    n_actions = 8
    n_layers = 2
    h_dim = 64         # module default -> D = 128 (lane-aligned)
    D = 2 * h_dim
    H = 2 * D          # exp_factor = 2
    eps = 1e-5

    keys = jax.random.split(key, 20)

    def rnd(k, shape, scale):
        return jax.random.normal(k, shape, dtype=jnp.float32) * scale

    p = {
        "rs_mean": rnd(keys[0], (n_states,), 0.5),
        "rs_var": 0.5 + jax.random.uniform(keys[1], (n_states,), dtype=jnp.float32),
        "w0": rnd(keys[2], (n_states, D), n_states ** -0.5),
        "b0": rnd(keys[3], (D,), 0.1),
        "gamma": 1.0 + rnd(keys[4], (n_layers, D), 0.2),
        "w1": rnd(keys[5], (n_layers, D, H), D ** -0.5),
        "b1": rnd(keys[6], (n_layers, H), 0.1),
        "w2": rnd(keys[7], (n_layers, H, D), H ** -0.5),
        "b2": rnd(keys[8], (n_layers, D), 0.1),
        "gamma_f": 1.0 + rnd(keys[9], (D,), 0.2),
        "wm1": rnd(keys[10], (D, h_dim), D ** -0.5),
        "bm1": rnd(keys[11], (h_dim,), 0.1),
        "wm2": rnd(keys[12], (h_dim, n_actions), h_dim ** -0.5),
        "bm2": rnd(keys[13], (n_actions,), 0.1),
        "wc1": rnd(keys[14], (D, h_dim), D ** -0.5),
        "bc1": rnd(keys[15], (h_dim,), 0.1),
        "wc2": rnd(keys[16], (h_dim, 1), h_dim ** -0.5),
        "bc2": rnd(keys[17], (1,), 0.1),
        "log_std": jnp.zeros((n_actions,), jnp.float32),
    }
    x = jax.random.normal(keys[18], (B, n_states), dtype=jnp.float32)

    mu_r, std_r, v_r = actor_ref(x, p, eps=eps)

    # f32-MXU path: tight structural check against the PyTorch-semantics reference.
    mu32, std32, v32 = actor_forward(x, p, eps=eps, matmul_dtype=jnp.float32)
    mu32, std32, v32 = jax.block_until_ready((mu32, std32, v32))
    assert jnp.allclose(mu32, mu_r, atol=5e-3, rtol=5e-3), "mu mismatch (f32 path)"
    assert jnp.allclose(v32, v_r, atol=5e-3, rtol=5e-3), "v mismatch (f32 path)"

    # bf16-MXU path (performance default): looser tolerance for bf16 operand rounding.
    mu, std, v = actor_forward(x, p, eps=eps)
    mu, std, v = jax.block_until_ready((mu, std, v))
    assert jnp.allclose(mu, mu_r, atol=1e-1, rtol=1e-1), "mu mismatch (bf16 path)"
    assert jnp.allclose(v, v_r, atol=1e-1, rtol=1e-1), "v mismatch (bf16 path)"
    assert jnp.allclose(std, std_r), "std mismatch"

    print("KERNEL_OK")
</pallas_src>

<mosaic_0001>
module attributes {stable_mosaic.version = 11 : i64} {
  func.func @_actor_kernel(%arg0: i32, %arg1: memref<104x16xf32, #tpu.memory_space<vmem>>, %arg2: memref<1x16xf32, #tpu.memory_space<vmem>>, %arg3: memref<1x16xf32, #tpu.memory_space<vmem>>, %arg4: memref<16x128xf32, #tpu.memory_space<vmem>>, %arg5: memref<1x128xf32, #tpu.memory_space<vmem>>, %arg6: memref<2x128x256xf32, #tpu.memory_space<vmem>>, %arg7: memref<2x1x256xf32, #tpu.memory_space<vmem>>, %arg8: memref<2x256x128xf32, #tpu.memory_space<vmem>>, %arg9: memref<2x1x128xf32, #tpu.memory_space<vmem>>, %arg10: memref<128x128xf32, #tpu.memory_space<vmem>>, %arg11: memref<1x128xf32, #tpu.memory_space<vmem>>, %arg12: memref<128x128xf32, #tpu.memory_space<vmem>>, %arg13: memref<1x128xf32, #tpu.memory_space<vmem>>, %arg14: memref<104x128xf32, #tpu.memory_space<vmem>>) attributes {dimension_semantics = [#tpu.dimension_semantics<parallel>], iteration_bounds = array<i64: 1>, scalar_prefetch = 0 : i64, scratch_operands = 0 : i64, tpu.core_type = #tpu.core_type<tc>, window_params = [{transform_indices = @transform_0, window_bounds = array<i64: 104, 16>}, {pipeline_mode = #tpu.pipeline_mode<synchronous>, transform_indices = @transform_1, window_bounds = array<i64: 1, 16>}, {pipeline_mode = #tpu.pipeline_mode<synchronous>, transform_indices = @transform_2, window_bounds = array<i64: 1, 16>}, {pipeline_mode = #tpu.pipeline_mode<synchronous>, transform_indices = @transform_3, window_bounds = array<i64: 16, 128>}, {pipeline_mode = #tpu.pipeline_mode<synchronous>, transform_indices = @transform_4, window_bounds = array<i64: 1, 128>}, {pipeline_mode = #tpu.pipeline_mode<synchronous>, transform_indices = @transform_5, window_bounds = array<i64: 2, 128, 256>}, {pipeline_mode = #tpu.pipeline_mode<synchronous>, transform_indices = @transform_6, window_bounds = array<i64: 2, 1, 256>}, {pipeline_mode = #tpu.pipeline_mode<synchronous>, transform_indices = @transform_7, window_bounds = array<i64: 2, 256, 128>}, {pipeline_mode = #tpu.pipeline_mode<synchronous>, transform_indices = @transform_8, window_bounds = array<i64: 2, 1, 128>}, {pipeline_mode = #tpu.pipeline_mode<synchronous>, transform_indices = @transform_9, window_bounds = array<i64: 128, 128>}, {pipeline_mode = #tpu.pipeline_mode<synchronous>, transform_indices = @transform_10, window_bounds = array<i64: 1, 128>}, {pipeline_mode = #tpu.pipeline_mode<synchronous>, transform_indices = @transform_11, window_bounds = array<i64: 128, 128>}, {pipeline_mode = #tpu.pipeline_mode<synchronous>, transform_indices = @transform_12, window_bounds = array<i64: 1, 128>}, {transform_indices = @transform_13, window_bounds = array<i64: 104, 128>}]} {
    %c0 = arith.constant 0 : index
    %c0_0 = arith.constant 0 : index
    %0 = vector.load %arg1[%c0, %c0_0] : memref<104x16xf32, #tpu.memory_space<vmem>>, vector<104x16xf32>
    %c0_1 = arith.constant 0 : index
    %c0_2 = arith.constant 0 : index
    %1 = vector.load %arg2[%c0_1, %c0_2] : memref<1x16xf32, #tpu.memory_space<vmem>>, vector<1x16xf32>
    %2 = vector.broadcast %1 : vector<1x16xf32> to vector<104x16xf32>
    %3 = arith.subf %0, %2 : vector<104x16xf32>
    %c0_3 = arith.constant 0 : index
    %c0_4 = arith.constant 0 : index
    %4 = vector.load %arg3[%c0_3, %c0_4] : memref<1x16xf32, #tpu.memory_space<vmem>>, vector<1x16xf32>
    %5 = vector.broadcast %4 : vector<1x16xf32> to vector<104x16xf32>
    %6 = arith.mulf %3, %5 : vector<104x16xf32>
    %c0_5 = arith.constant 0 : index
    %c0_6 = arith.constant 0 : index
    %7 = vector.load %arg4[%c0_5, %c0_6] : memref<16x128xf32, #tpu.memory_space<vmem>>, vector<16x128xf32>
    %cst = arith.constant dense<0.000000e+00> : vector<104x128xf32>
    %8 = tpu.matmul %6, %7, %cst {dimension_numbers = #tpu.dot_dimension_numbers<[1], [0], [0], [1], [0, 0, 1, 1], [], []>} : vector<104x16xf32>, vector<16x128xf32>, vector<104x128xf32> -> vector<104x128xf32>
    %c0_7 = arith.constant 0 : index
    %c0_8 = arith.constant 0 : index
    %9 = vector.load %arg5[%c0_7, %c0_8] : memref<1x128xf32, #tpu.memory_space<vmem>>, vector<1x128xf32>
    %10 = vector.broadcast %9 : vector<1x128xf32> to vector<104x128xf32>
    %11 = arith.addf %8, %10 : vector<104x128xf32>
    %12 = arith.mulf %11, %11 : vector<104x128xf32>
    %cst_9 = arith.constant dense<0.000000e+00> : vector<104xf32>
    %13 = vector.multi_reduction <add>, %12, %cst_9 [1] : vector<104x128xf32> to vector<104xf32>
    %14 = vector.shape_cast %13 : vector<104xf32> to vector<104x1xf32>
    %cst_10 = arith.constant 1.280000e+02 : f32
    %15 = vector.broadcast %cst_10 : f32 to vector<104x1xf32>
    %16 = arith.divf %14, %15 : vector<104x1xf32>
    %cst_11 = arith.constant 9.99999974E-6 : f32
    %17 = vector.broadcast %cst_11 : f32 to vector<104x1xf32>
    %18 = arith.addf %16, %17 : vector<104x1xf32>
    %19 = math.rsqrt %18 : vector<104x1xf32>
    %20 = vector.broadcast %19 : vector<104x1xf32> to vector<104x128xf32>
    %21 = arith.mulf %11, %20 : vector<104x128xf32>
    %c0_12 = arith.constant 0 : index
    %c0_13 = arith.constant 0 : index
    %c0_14 = arith.constant 0 : index
    %22 = vector.load %arg6[%c0_12, %c0_13, %c0_14] : memref<2x128x256xf32, #tpu.memory_space<vmem>>, vector<1x128x256xf32>
    %23 = vector.shape_cast %22 : vector<1x128x256xf32> to vector<128x256xf32>
    %cst_15 = arith.constant dense<0.000000e+00> : vector<104x256xf32>
    %24 = tpu.matmul %21, %23, %cst_15 {dimension_numbers = #tpu.dot_dimension_numbers<[1], [0], [0], [1], [0, 0, 1, 1], [], []>} : vector<104x128xf32>, vector<128x256xf32>, vector<104x256xf32> -> vector<104x256xf32>
    %c0_16 = arith.constant 0 : index
    %c0_17 = arith.constant 0 : index
    %c0_18 = arith.constant 0 : index
    %25 = vector.load %arg7[%c0_16, %c0_17, %c0_18] : memref<2x1x256xf32, #tpu.memory_space<vmem>>, vector<1x1x256xf32>
    %26 = vector.shape_cast %25 : vector<1x1x256xf32> to vector<1x256xf32>
    %27 = vector.broadcast %26 : vector<1x256xf32> to vector<104x256xf32>
    %28 = arith.addf %24, %27 : vector<104x256xf32>
    %cst_19 = arith.constant 0.000000e+00 : f32
    %29 = vector.broadcast %cst_19 : f32 to vector<104x256xf32>
    %30 = arith.maximumf %28, %29 : vector<104x256xf32>
    %31 = arith.mulf %30, %30 : vector<104x256xf32>
    %c0_20 = arith.constant 0 : index
    %c0_21 = arith.constant 0 : index
    %c0_22 = arith.constant 0 : index
    %32 = vector.load %arg8[%c0_20, %c0_21, %c0_22] : memref<2x256x128xf32, #tpu.memory_space<vmem>>, vector<1x256x128xf32>
    %33 = vector.shape_cast %32 : vector<1x256x128xf32> to vector<256x128xf32>
    %cst_23 = arith.constant dense<0.000000e+00> : vector<104x128xf32>
    %34 = tpu.matmul %31, %33, %cst_23 {dimension_numbers = #tpu.dot_dimension_numbers<[1], [0], [0], [1], [0, 0, 1, 1], [], []>} : vector<104x256xf32>, vector<256x128xf32>, vector<104x128xf32> -> vector<104x128xf32>
    %c0_24 = arith.constant 0 : index
    %c0_25 = arith.constant 0 : index
    %c0_26 = arith.constant 0 : index
    %35 = vector.load %arg9[%c0_24, %c0_25, %c0_26] : memref<2x1x128xf32, #tpu.memory_space<vmem>>, vector<1x1x128xf32>
    %36 = vector.shape_cast %35 : vector<1x1x128xf32> to vector<1x128xf32>
    %37 = vector.broadcast %36 : vector<1x128xf32> to vector<104x128xf32>
    %38 = arith.addf %34, %37 : vector<104x128xf32>
    %39 = arith.addf %11, %38 : vector<104x128xf32>
    %40 = arith.mulf %39, %39 : vector<104x128xf32>
    %cst_27 = arith.constant dense<0.000000e+00> : vector<104xf32>
    %41 = vector.multi_reduction <add>, %40, %cst_27 [1] : vector<104x128xf32> to vector<104xf32>
    %42 = vector.shape_cast %41 : vector<104xf32> to vector<104x1xf32>
    %cst_28 = arith.constant 1.280000e+02 : f32
    %43 = vector.broadcast %cst_28 : f32 to vector<104x1xf32>
    %44 = arith.divf %42, %43 : vector<104x1xf32>
    %cst_29 = arith.constant 9.99999974E-6 : f32
    %45 = vector.broadcast %cst_29 : f32 to vector<104x1xf32>
    %46 = arith.addf %44, %45 : vector<104x1xf32>
    %47 = math.rsqrt %46 : vector<104x1xf32>
    %48 = vector.broadcast %47 : vector<104x1xf32> to vector<104x128xf32>
    %49 = arith.mulf %39, %48 : vector<104x128xf32>
    %c1 = arith.constant 1 : index
    %c0_30 = arith.constant 0 : index
    %c0_31 = arith.constant 0 : index
    %50 = vector.load %arg6[%c1, %c0_30, %c0_31] : memref<2x128x256xf32, #tpu.memory_space<vmem>>, vector<1x128x256xf32>
    %51 = vector.shape_cast %50 : vector<1x128x256xf32> to vector<128x256xf32>
    %cst_32 = arith.constant dense<0.000000e+00> : vector<104x256xf32>
    %52 = tpu.matmul %49, %51, %cst_32 {dimension_numbers = #tpu.dot_dimension_numbers<[1], [0], [0], [1], [0, 0, 1, 1], [], []>} : vector<104x128xf32>, vector<128x256xf32>, vector<104x256xf32> -> vector<104x256xf32>
    %c1_33 = arith.constant 1 : index
    %c0_34 = arith.constant 0 : index
    %c0_35 = arith.constant 0 : index
    %53 = vector.load %arg7[%c1_33, %c0_34, %c0_35] : memref<2x1x256xf32, #tpu.memory_space<vmem>>, vector<1x1x256xf32>
    %54 = vector.shape_cast %53 : vector<1x1x256xf32> to vector<1x256xf32>
    %55 = vector.broadcast %54 : vector<1x256xf32> to vector<104x256xf32>
    %56 = arith.addf %52, %55 : vector<104x256xf32>
    %cst_36 = arith.constant 0.000000e+00 : f32
    %57 = vector.broadcast %cst_36 : f32 to vector<104x256xf32>
    %58 = arith.maximumf %56, %57 : vector<104x256xf32>
    %59 = arith.mulf %58, %58 : vector<104x256xf32>
    %c1_37 = arith.constant 1 : index
    %c0_38 = arith.constant 0 : index
    %c0_39 = arith.constant 0 : index
    %60 = vector.load %arg8[%c1_37, %c0_38, %c0_39] : memref<2x256x128xf32, #tpu.memory_space<vmem>>, vector<1x256x128xf32>
    %61 = vector.shape_cast %60 : vector<1x256x128xf32> to vector<256x128xf32>
    %cst_40 = arith.constant dense<0.000000e+00> : vector<104x128xf32>
    %62 = tpu.matmul %59, %61, %cst_40 {dimension_numbers = #tpu.dot_dimension_numbers<[1], [0], [0], [1], [0, 0, 1, 1], [], []>} : vector<104x256xf32>, vector<256x128xf32>, vector<104x128xf32> -> vector<104x128xf32>
    %c1_41 = arith.constant 1 : index
    %c0_42 = arith.constant 0 : index
    %c0_43 = arith.constant 0 : index
    %63 = vector.load %arg9[%c1_41, %c0_42, %c0_43] : memref<2x1x128xf32, #tpu.memory_space<vmem>>, vector<1x1x128xf32>
    %64 = vector.shape_cast %63 : vector<1x1x128xf32> to vector<1x128xf32>
    %65 = vector.broadcast %64 : vector<1x128xf32> to vector<104x128xf32>
    %66 = arith.addf %62, %65 : vector<104x128xf32>
    %67 = arith.addf %39, %66 : vector<104x128xf32>
    %68 = arith.mulf %67, %67 : vector<104x128xf32>
    %cst_44 = arith.constant dense<0.000000e+00> : vector<104xf32>
    %69 = vector.multi_reduction <add>, %68, %cst_44 [1] : vector<104x128xf32> to vector<104xf32>
    %70 = vector.shape_cast %69 : vector<104xf32> to vector<104x1xf32>
    %cst_45 = arith.constant 1.280000e+02 : f32
    %71 = vector.broadcast %cst_45 : f32 to vector<104x1xf32>
    %72 = arith.divf %70, %71 : vector<104x1xf32>
    %cst_46 = arith.constant 9.99999974E-6 : f32
    %73 = vector.broadcast %cst_46 : f32 to vector<104x1xf32>
    %74 = arith.addf %72, %73 : vector<104x1xf32>
    %75 = math.rsqrt %74 : vector<104x1xf32>
    %76 = vector.broadcast %75 : vector<104x1xf32> to vector<104x128xf32>
    %77 = arith.mulf %67, %76 : vector<104x128xf32>
    %c0_47 = arith.constant 0 : index
    %c0_48 = arith.constant 0 : index
    %78 = vector.load %arg10[%c0_47, %c0_48] : memref<128x128xf32, #tpu.memory_space<vmem>>, vector<128x128xf32>
    %cst_49 = arith.constant dense<0.000000e+00> : vector<104x128xf32>
    %79 = tpu.matmul %77, %78, %cst_49 {dimension_numbers = #tpu.dot_dimension_numbers<[1], [0], [0], [1], [0, 0, 1, 1], [], []>} : vector<104x128xf32>, vector<128x128xf32>, vector<104x128xf32> -> vector<104x128xf32>
    %c0_50 = arith.constant 0 : index
    %c0_51 = arith.constant 0 : index
    %80 = vector.load %arg11[%c0_50, %c0_51] : memref<1x128xf32, #tpu.memory_space<vmem>>, vector<1x128xf32>
    %81 = vector.broadcast %80 : vector<1x128xf32> to vector<104x128xf32>
    %82 = arith.addf %79, %81 : vector<104x128xf32>
    %cst_52 = arith.constant 0.000000e+00 : f32
    %83 = vector.broadcast %cst_52 : f32 to vector<104x128xf32>
    %84 = arith.maximumf %82, %83 : vector<104x128xf32>
    %85 = arith.mulf %84, %84 : vector<104x128xf32>
    %c0_53 = arith.constant 0 : index
    %c0_54 = arith.constant 0 : index
    %86 = vector.load %arg12[%c0_53, %c0_54] : memref<128x128xf32, #tpu.memory_space<vmem>>, vector<128x128xf32>
    %cst_55 = arith.constant dense<0.000000e+00> : vector<104x128xf32>
    %87 = tpu.matmul %85, %86, %cst_55 {dimension_numbers = #tpu.dot_dimension_numbers<[1], [0], [0], [1], [0, 0, 1, 1], [], []>} : vector<104x128xf32>, vector<128x128xf32>, vector<104x128xf32> -> vector<104x128xf32>
    %c0_56 = arith.constant 0 : index
    %c0_57 = arith.constant 0 : index
    %88 = vector.load %arg13[%c0_56, %c0_57] : memref<1x128xf32, #tpu.memory_space<vmem>>, vector<1x128xf32>
    %89 = vector.broadcast %88 : vector<1x128xf32> to vector<104x128xf32>
    %90 = arith.addf %87, %89 : vector<104x128xf32>
    %c0_58 = arith.constant 0 : index
    %c0_59 = arith.constant 0 : index
    %91 = vector.load %arg14[%c0_58, %c0_59] : memref<104x128xf32, #tpu.memory_space<vmem>>, vector<104x128xf32>
    tpu.vector_store %arg14[%c0_58, %c0_59], %90 {strides = array<i32>} : memref<104x128xf32, #tpu.memory_space<vmem>>, vector<104x128xf32>,
    return
  }
  func.func @transform_0(%arg0: i32) -> (i32, i32) {
    %c0_i32 = arith.constant 0 : i32
    %c0_i32_0 = arith.constant 0 : i32
    return %arg0, %c0_i32 : i32, i32
  }
  func.func @transform_1(%arg0: i32) -> (i32, i32) {
    %c0_i32 = arith.constant 0 : i32
    %c0_i32_0 = arith.constant 0 : i32
    %c0_i32_1 = arith.constant 0 : i32
    return %c0_i32, %c0_i32_0 : i32, i32
  }
  func.func @transform_2(%arg0: i32) -> (i32, i32) {
    %c0_i32 = arith.constant 0 : i32
    %c0_i32_0 = arith.constant 0 : i32
    %c0_i32_1 = arith.constant 0 : i32
    return %c0_i32, %c0_i32_0 : i32, i32
  }
  func.func @transform_3(%arg0: i32) -> (i32, i32) {
    %c0_i32 = arith.constant 0 : i32
    %c0_i32_0 = arith.constant 0 : i32
    %c0_i32_1 = arith.constant 0 : i32
    return %c0_i32, %c0_i32_0 : i32, i32
  }
  func.func @transform_4(%arg0: i32) -> (i32, i32) {
    %c0_i32 = arith.constant 0 : i32
    %c0_i32_0 = arith.constant 0 : i32
    %c0_i32_1 = arith.constant 0 : i32
    return %c0_i32, %c0_i32_0 : i32, i32
  }
  func.func @transform_5(%arg0: i32) -> (i32, i32, i32) {
    %c0_i32 = arith.constant 0 : i32
    %c0_i32_0 = arith.constant 0 : i32
    %c0_i32_1 = arith.constant 0 : i32
    %c0_i32_2 = arith.constant 0 : i32
    return %c0_i32, %c0_i32_0, %c0_i32_1 : i32, i32, i32
  }
  func.func @transform_6(%arg0: i32) -> (i32, i32, i32) {
    %c0_i32 = arith.constant 0 : i32
    %c0_i32_0 = arith.constant 0 : i32
    %c0_i32_1 = arith.constant 0 : i32
    %c0_i32_2 = arith.constant 0 : i32
    return %c0_i32, %c0_i32_0, %c0_i32_1 : i32, i32, i32
  }
  func.func @transform_7(%arg0: i32) -> (i32, i32, i32) {
    %c0_i32 = arith.constant 0 : i32
    %c0_i32_0 = arith.constant 0 : i32
    %c0_i32_1 = arith.constant 0 : i32
    %c0_i32_2 = arith.constant 0 : i32
    return %c0_i32, %c0_i32_0, %c0_i32_1 : i32, i32, i32
  }
  func.func @transform_8(%arg0: i32) -> (i32, i32, i32) {
    %c0_i32 = arith.constant 0 : i32
    %c0_i32_0 = arith.constant 0 : i32
    %c0_i32_1 = arith.constant 0 : i32
    %c0_i32_2 = arith.constant 0 : i32
    return %c0_i32, %c0_i32_0, %c0_i32_1 : i32, i32, i32
  }
  func.func @transform_9(%arg0: i32) -> (i32, i32) {
    %c0_i32 = arith.constant 0 : i32
    %c0_i32_0 = arith.constant 0 : i32
    %c0_i32_1 = arith.constant 0 : i32
    return %c0_i32, %c0_i32_0 : i32, i32
  }
  func.func @transform_10(%arg0: i32) -> (i32, i32) {
    %c0_i32 = arith.constant 0 : i32
    %c0_i32_0 = arith.constant 0 : i32
    %c0_i32_1 = arith.constant 0 : i32
    return %c0_i32, %c0_i32_0 : i32, i32
  }
  func.func @transform_11(%arg0: i32) -> (i32, i32) {
    %c0_i32 = arith.constant 0 : i32
    %c0_i32_0 = arith.constant 0 : i32
    %c0_i32_1 = arith.constant 0 : i32
    return %c0_i32, %c0_i32_0 : i32, i32
  }
  func.func @transform_12(%arg0: i32) -> (i32, i32) {
    %c0_i32 = arith.constant 0 : i32
    %c0_i32_0 = arith.constant 0 : i32
    %c0_i32_1 = arith.constant 0 : i32
    return %c0_i32, %c0_i32_0 : i32, i32
  }
  func.func @transform_13(%arg0: i32) -> (i32, i32) {
    %c0_i32 = arith.constant 0 : i32
    %c0_i32_0 = arith.constant 0 : i32
    return %arg0, %c0_i32 : i32, i32
  }
}

module attributes {stable_mosaic.version = 11 : i64} {
  func.func @_actor_kernel(%arg0: i32, %arg1: memref<104x16xf32, #tpu.memory_space<vmem>>, %arg2: memref<1x16xf32, #tpu.memory_space<vmem>>, %arg3: memref<1x16xf32, #tpu.memory_space<vmem>>, %arg4: memref<16x128xf32, #tpu.memory_space<vmem>>, %arg5: memref<1x128xf32, #tpu.memory_space<vmem>>, %arg6: memref<2x128x256xf32, #tpu.memory_space<vmem>>, %arg7: memref<2x1x256xf32, #tpu.memory_space<vmem>>, %arg8: memref<2x256x128xf32, #tpu.memory_space<vmem>>, %arg9: memref<2x1x128xf32, #tpu.memory_space<vmem>>, %arg10: memref<128x128xf32, #tpu.memory_space<vmem>>, %arg11: memref<1x128xf32, #tpu.memory_space<vmem>>, %arg12: memref<128x128xf32, #tpu.memory_space<vmem>>, %arg13: memref<1x128xf32, #tpu.memory_space<vmem>>, %arg14: memref<104x128xf32, #tpu.memory_space<vmem>>) attributes {dimension_semantics = [#tpu.dimension_semantics<parallel>], iteration_bounds = array<i64: 1>, scalar_prefetch = 0 : i64, scratch_operands = 0 : i64, tpu.core_type = #tpu.core_type<tc>, window_params = [{transform_indices = @transform_0, window_bounds = array<i64: 104, 16>}, {pipeline_mode = #tpu.pipeline_mode<synchronous>, transform_indices = @transform_1, window_bounds = array<i64: 1, 16>}, {pipeline_mode = #tpu.pipeline_mode<synchronous>, transform_indices = @transform_2, window_bounds = array<i64: 1, 16>}, {pipeline_mode = #tpu.pipeline_mode<synchronous>, transform_indices = @transform_3, window_bounds = array<i64: 16, 128>}, {pipeline_mode = #tpu.pipeline_mode<synchronous>, transform_indices = @transform_4, window_bounds = array<i64: 1, 128>}, {pipeline_mode = #tpu.pipeline_mode<synchronous>, transform_indices = @transform_5, window_bounds = array<i64: 2, 128, 256>}, {pipeline_mode = #tpu.pipeline_mode<synchronous>, transform_indices = @transform_6, window_bounds = array<i64: 2, 1, 256>}, {pipeline_mode = #tpu.pipeline_mode<synchronous>, transform_indices = @transform_7, window_bounds = array<i64: 2, 256, 128>}, {pipeline_mode = #tpu.pipeline_mode<synchronous>, transform_indices = @transform_8, window_bounds = array<i64: 2, 1, 128>}, {pipeline_mode = #tpu.pipeline_mode<synchronous>, transform_indices = @transform_9, window_bounds = array<i64: 128, 128>}, {pipeline_mode = #tpu.pipeline_mode<synchronous>, transform_indices = @transform_10, window_bounds = array<i64: 1, 128>}, {pipeline_mode = #tpu.pipeline_mode<synchronous>, transform_indices = @transform_11, window_bounds = array<i64: 128, 128>}, {pipeline_mode = #tpu.pipeline_mode<synchronous>, transform_indices = @transform_12, window_bounds = array<i64: 1, 128>}, {transform_indices = @transform_13, window_bounds = array<i64: 104, 128>}]} {
    %c0 = arith.constant 0 : index
    %c0_0 = arith.constant 0 : index
    %0 = vector.load %arg1[%c0, %c0_0] : memref<104x16xf32, #tpu.memory_space<vmem>>, vector<104x16xf32>
    %c0_1 = arith.constant 0 : index
    %c0_2 = arith.constant 0 : index
    %1 = vector.load %arg2[%c0_1, %c0_2] : memref<1x16xf32, #tpu.memory_space<vmem>>, vector<1x16xf32>
    %2 = vector.broadcast %1 : vector<1x16xf32> to vector<104x16xf32>
    %3 = arith.subf %0, %2 : vector<104x16xf32>
    %c0_3 = arith.constant 0 : index
    %c0_4 = arith.constant 0 : index
    %4 = vector.load %arg3[%c0_3, %c0_4] : memref<1x16xf32, #tpu.memory_space<vmem>>, vector<1x16xf32>
    %5 = vector.broadcast %4 : vector<1x16xf32> to vector<104x16xf32>
    %6 = arith.mulf %3, %5 : vector<104x16xf32>
    %c0_5 = arith.constant 0 : index
    %c0_6 = arith.constant 0 : index
    %7 = vector.load %arg4[%c0_5, %c0_6] : memref<16x128xf32, #tpu.memory_space<vmem>>, vector<16x128xf32>
    %cst = arith.constant dense<0.000000e+00> : vector<104x128xf32>
    %8 = tpu.matmul %6, %7, %cst {dimension_numbers = #tpu.dot_dimension_numbers<[1], [0], [0], [1], [0, 0, 1, 1], [], []>} : vector<104x16xf32>, vector<16x128xf32>, vector<104x128xf32> -> vector<104x128xf32>
    %c0_7 = arith.constant 0 : index
    %c0_8 = arith.constant 0 : index
    %9 = vector.load %arg5[%c0_7, %c0_8] : memref<1x128xf32, #tpu.memory_space<vmem>>, vector<1x128xf32>
    %10 = vector.broadcast %9 : vector<1x128xf32> to vector<104x128xf32>
    %11 = arith.addf %8, %10 : vector<104x128xf32>
    %12 = arith.mulf %11, %11 : vector<104x128xf32>
    %cst_9 = arith.constant dense<0.000000e+00> : vector<104xf32>
    %13 = vector.multi_reduction <add>, %12, %cst_9 [1] : vector<104x128xf32> to vector<104xf32>
    %14 = vector.shape_cast %13 : vector<104xf32> to vector<104x1xf32>
    %cst_10 = arith.constant 1.280000e+02 : f32
    %15 = vector.broadcast %cst_10 : f32 to vector<104x1xf32>
    %16 = arith.divf %14, %15 : vector<104x1xf32>
    %cst_11 = arith.constant 9.99999974E-6 : f32
    %17 = vector.broadcast %cst_11 : f32 to vector<104x1xf32>
    %18 = arith.addf %16, %17 : vector<104x1xf32>
    %19 = math.rsqrt %18 : vector<104x1xf32>
    %20 = vector.broadcast %19 : vector<104x1xf32> to vector<104x128xf32>
    %21 = arith.mulf %11, %20 : vector<104x128xf32>
    %c0_12 = arith.constant 0 : index
    %c0_13 = arith.constant 0 : index
    %c0_14 = arith.constant 0 : index
    %22 = vector.load %arg6[%c0_12, %c0_13, %c0_14] : memref<2x128x256xf32, #tpu.memory_space<vmem>>, vector<1x128x256xf32>
    %23 = vector.shape_cast %22 : vector<1x128x256xf32> to vector<128x256xf32>
    %cst_15 = arith.constant dense<0.000000e+00> : vector<104x256xf32>
    %24 = tpu.matmul %21, %23, %cst_15 {dimension_numbers = #tpu.dot_dimension_numbers<[1], [0], [0], [1], [0, 0, 1, 1], [], []>} : vector<104x128xf32>, vector<128x256xf32>, vector<104x256xf32> -> vector<104x256xf32>
    %c0_16 = arith.constant 0 : index
    %c0_17 = arith.constant 0 : index
    %c0_18 = arith.constant 0 : index
    %25 = vector.load %arg7[%c0_16, %c0_17, %c0_18] : memref<2x1x256xf32, #tpu.memory_space<vmem>>, vector<1x1x256xf32>
    %26 = vector.shape_cast %25 : vector<1x1x256xf32> to vector<1x256xf32>
    %27 = vector.broadcast %26 : vector<1x256xf32> to vector<104x256xf32>
    %28 = arith.addf %24, %27 : vector<104x256xf32>
    %cst_19 = arith.constant 0.000000e+00 : f32
    %29 = vector.broadcast %cst_19 : f32 to vector<104x256xf32>
    %30 = arith.maximumf %28, %29 : vector<104x256xf32>
    %31 = arith.mulf %30, %30 : vector<104x256xf32>
    %c0_20 = arith.constant 0 : index
    %c0_21 = arith.constant 0 : index
    %c0_22 = arith.constant 0 : index
    %32 = vector.load %arg8[%c0_20, %c0_21, %c0_22] : memref<2x256x128xf32, #tpu.memory_space<vmem>>, vector<1x256x128xf32>
    %33 = vector.shape_cast %32 : vector<1x256x128xf32> to vector<256x128xf32>
    %cst_23 = arith.constant dense<0.000000e+00> : vector<104x128xf32>
    %34 = tpu.matmul %31, %33, %cst_23 {dimension_numbers = #tpu.dot_dimension_numbers<[1], [0], [0], [1], [0, 0, 1, 1], [], []>} : vector<104x256xf32>, vector<256x128xf32>, vector<104x128xf32> -> vector<104x128xf32>
    %c0_24 = arith.constant 0 : index
    %c0_25 = arith.constant 0 : index
    %c0_26 = arith.constant 0 : index
    %35 = vector.load %arg9[%c0_24, %c0_25, %c0_26] : memref<2x1x128xf32, #tpu.memory_space<vmem>>, vector<1x1x128xf32>
    %36 = vector.shape_cast %35 : vector<1x1x128xf32> to vector<1x128xf32>
    %37 = vector.broadcast %36 : vector<1x128xf32> to vector<104x128xf32>
    %38 = arith.addf %34, %37 : vector<104x128xf32>
    %39 = arith.addf %11, %38 : vector<104x128xf32>
    %40 = arith.mulf %39, %39 : vector<104x128xf32>
    %cst_27 = arith.constant dense<0.000000e+00> : vector<104xf32>
    %41 = vector.multi_reduction <add>, %40, %cst_27 [1] : vector<104x128xf32> to vector<104xf32>
    %42 = vector.shape_cast %41 : vector<104xf32> to vector<104x1xf32>
    %cst_28 = arith.constant 1.280000e+02 : f32
    %43 = vector.broadcast %cst_28 : f32 to vector<104x1xf32>
    %44 = arith.divf %42, %43 : vector<104x1xf32>
    %cst_29 = arith.constant 9.99999974E-6 : f32
    %45 = vector.broadcast %cst_29 : f32 to vector<104x1xf32>
    %46 = arith.addf %44, %45 : vector<104x1xf32>
    %47 = math.rsqrt %46 : vector<104x1xf32>
    %48 = vector.broadcast %47 : vector<104x1xf32> to vector<104x128xf32>
    %49 = arith.mulf %39, %48 : vector<104x128xf32>
    %c1 = arith.constant 1 : index
    %c0_30 = arith.constant 0 : index
    %c0_31 = arith.constant 0 : index
    %50 = vector.load %arg6[%c1, %c0_30, %c0_31] : memref<2x128x256xf32, #tpu.memory_space<vmem>>, vector<1x128x256xf32>
    %51 = vector.shape_cast %50 : vector<1x128x256xf32> to vector<128x256xf32>
    %cst_32 = arith.constant dense<0.000000e+00> : vector<104x256xf32>
    %52 = tpu.matmul %49, %51, %cst_32 {dimension_numbers = #tpu.dot_dimension_numbers<[1], [0], [0], [1], [0, 0, 1, 1], [], []>} : vector<104x128xf32>, vector<128x256xf32>, vector<104x256xf32> -> vector<104x256xf32>
    %c1_33 = arith.constant 1 : index
    %c0_34 = arith.constant 0 : index
    %c0_35 = arith.constant 0 : index
    %53 = vector.load %arg7[%c1_33, %c0_34, %c0_35] : memref<2x1x256xf32, #tpu.memory_space<vmem>>, vector<1x1x256xf32>
    %54 = vector.shape_cast %53 : vector<1x1x256xf32> to vector<1x256xf32>
    %55 = vector.broadcast %54 : vector<1x256xf32> to vector<104x256xf32>
    %56 = arith.addf %52, %55 : vector<104x256xf32>
    %cst_36 = arith.constant 0.000000e+00 : f32
    %57 = vector.broadcast %cst_36 : f32 to vector<104x256xf32>
    %58 = arith.maximumf %56, %57 : vector<104x256xf32>
    %59 = arith.mulf %58, %58 : vector<104x256xf32>
    %c1_37 = arith.constant 1 : index
    %c0_38 = arith.constant 0 : index
    %c0_39 = arith.constant 0 : index
    %60 = vector.load %arg8[%c1_37, %c0_38, %c0_39] : memref<2x256x128xf32, #tpu.memory_space<vmem>>, vector<1x256x128xf32>
    %61 = vector.shape_cast %60 : vector<1x256x128xf32> to vector<256x128xf32>
    %cst_40 = arith.constant dense<0.000000e+00> : vector<104x128xf32>
    %62 = tpu.matmul %59, %61, %cst_40 {dimension_numbers = #tpu.dot_dimension_numbers<[1], [0], [0], [1], [0, 0, 1, 1], [], []>} : vector<104x256xf32>, vector<256x128xf32>, vector<104x128xf32> -> vector<104x128xf32>
    %c1_41 = arith.constant 1 : index
    %c0_42 = arith.constant 0 : index
    %c0_43 = arith.constant 0 : index
    %63 = vector.load %arg9[%c1_41, %c0_42, %c0_43] : memref<2x1x128xf32, #tpu.memory_space<vmem>>, vector<1x1x128xf32>
    %64 = vector.shape_cast %63 : vector<1x1x128xf32> to vector<1x128xf32>
    %65 = vector.broadcast %64 : vector<1x128xf32> to vector<104x128xf32>
    %66 = arith.addf %62, %65 : vector<104x128xf32>
    %67 = arith.addf %39, %66 : vector<104x128xf32>
    %68 = arith.mulf %67, %67 : vector<104x128xf32>
    %cst_44 = arith.constant dense<0.000000e+00> : vector<104xf32>
    %69 = vector.multi_reduction <add>, %68, %cst_44 [1] : vector<104x128xf32> to vector<104xf32>
    %70 = vector.shape_cast %69 : vector<104xf32> to vector<104x1xf32>
    %cst_45 = arith.constant 1.280000e+02 : f32
    %71 = vector.broadcast %cst_45 : f32 to vector<104x1xf32>
    %72 = arith.divf %70, %71 : vector<104x1xf32>
    %cst_46 = arith.constant 9.99999974E-6 : f32
    %73 = vector.broadcast %cst_46 : f32 to vector<104x1xf32>
    %74 = arith.addf %72, %73 : vector<104x1xf32>
    %75 = math.rsqrt %74 : vector<104x1xf32>
    %76 = vector.broadcast %75 : vector<104x1xf32> to vector<104x128xf32>
    %77 = arith.mulf %67, %76 : vector<104x128xf32>
    %c0_47 = arith.constant 0 : index
    %c0_48 = arith.constant 0 : index
    %78 = vector.load %arg10[%c0_47, %c0_48] : memref<128x128xf32, #tpu.memory_space<vmem>>, vector<128x128xf32>
    %cst_49 = arith.constant dense<0.000000e+00> : vector<104x128xf32>
    %79 = tpu.matmul %77, %78, %cst_49 {dimension_numbers = #tpu.dot_dimension_numbers<[1], [0], [0], [1], [0, 0, 1, 1], [], []>} : vector<104x128xf32>, vector<128x128xf32>, vector<104x128xf32> -> vector<104x128xf32>
    %c0_50 = arith.constant 0 : index
    %c0_51 = arith.constant 0 : index
    %80 = vector.load %arg11[%c0_50, %c0_51] : memref<1x128xf32, #tpu.memory_space<vmem>>, vector<1x128xf32>
    %81 = vector.broadcast %80 : vector<1x128xf32> to vector<104x128xf32>
    %82 = arith.addf %79, %81 : vector<104x128xf32>
    %cst_52 = arith.constant 0.000000e+00 : f32
    %83 = vector.broadcast %cst_52 : f32 to vector<104x128xf32>
    %84 = arith.maximumf %82, %83 : vector<104x128xf32>
    %85 = arith.mulf %84, %84 : vector<104x128xf32>
    %c0_53 = arith.constant 0 : index
    %c0_54 = arith.constant 0 : index
    %86 = vector.load %arg12[%c0_53, %c0_54] : memref<128x128xf32, #tpu.memory_space<vmem>>, vector<128x128xf32>
    %cst_55 = arith.constant dense<0.000000e+00> : vector<104x128xf32>
    %87 = tpu.matmul %85, %86, %cst_55 {dimension_numbers = #tpu.dot_dimension_numbers<[1], [0], [0], [1], [0, 0, 1, 1], [], []>} : vector<104x128xf32>, vector<128x128xf32>, vector<104x128xf32> -> vector<104x128xf32>
    %c0_56 = arith.constant 0 : index
    %c0_57 = arith.constant 0 : index
    %88 = vector.load %arg13[%c0_56, %c0_57] : memref<1x128xf32, #tpu.memory_space<vmem>>, vector<1x128xf32>
    %89 = vector.broadcast %88 : vector<1x128xf32> to vector<104x128xf32>
    %90 = arith.addf %87, %89 : vector<104x128xf32>
    %c0_58 = arith.constant 0 : index
    %c0_59 = arith.constant 0 : index
    %91 = vector.load %arg14[%c0_58, %c0_59] : memref<104x128xf32, #tpu.memory_space<vmem>>, vector<104x128xf32>
    tpu.vector_store %arg14[%c0_58, %c0_59], %90 {strides = array<i32>} : memref<104x128xf32, #tpu.memory_space<vmem>>, vector<104x128xf32>,
    return
  }
  func.func @transform_0(%arg0: i32) -> (i32, i32) {
    %c0_i32 = arith.constant 0 : i32
    %c0_i32_0 = arith.constant 0 : i32
    return %arg0, %c0_i32 : i32, i32
  }
  func.func @transform_1(%arg0: i32) -> (i32, i32) {
    %c0_i32 = arith.constant 0 : i32
    %c0_i32_0 = arith.constant 0 : i32
    %c0_i32_1 = arith.constant 0 : i32
    return %c0_i32, %c0_i32_0 : i32, i32
  }
  func.func @transform_2(%arg0: i32) -> (i32, i32) {
    %c0_i32 = arith.constant 0 : i32
    %c0_i32_0 = arith.constant 0 : i32
    %c0_i32_1 = arith.constant 0 : i32
    return %c0_i32, %c0_i32_0 : i32, i32
  }
  func.func @transform_3(%arg0: i32) -> (i32, i32) {
    %c0_i32 = arith.constant 0 : i32
    %c0_i32_0 = arith.constant 0 : i32
    %c0_i32_1 = arith.constant 0 : i32
    return %c0_i32, %c0_i32_0 : i32, i32
  }
  func.func @transform_4(%arg0: i32) -> (i32, i32) {
    %c0_i32 = arith.constant 0 : i32
    %c0_i32_0 = arith.constant 0 : i32
    %c0_i32_1 = arith.constant 0 : i32
    return %c0_i32, %c0_i32_0 : i32, i32
  }
  func.func @transform_5(%arg0: i32) -> (i32, i32, i32) {
    %c0_i32 = arith.constant 0 : i32
    %c0_i32_0 = arith.constant 0 : i32
    %c0_i32_1 = arith.constant 0 : i32
    %c0_i32_2 = arith.constant 0 : i32
    return %c0_i32, %c0_i32_0, %c0_i32_1 : i32, i32, i32
  }
  func.func @transform_6(%arg0: i32) -> (i32, i32, i32) {
    %c0_i32 = arith.constant 0 : i32
    %c0_i32_0 = arith.constant 0 : i32
    %c0_i32_1 = arith.constant 0 : i32
    %c0_i32_2 = arith.constant 0 : i32
    return %c0_i32, %c0_i32_0, %c0_i32_1 : i32, i32, i32
  }
  func.func @transform_7(%arg0: i32) -> (i32, i32, i32) {
    %c0_i32 = arith.constant 0 : i32
    %c0_i32_0 = arith.constant 0 : i32
    %c0_i32_1 = arith.constant 0 : i32
    %c0_i32_2 = arith.constant 0 : i32
    return %c0_i32, %c0_i32_0, %c0_i32_1 : i32, i32, i32
  }
  func.func @transform_8(%arg0: i32) -> (i32, i32, i32) {
    %c0_i32 = arith.constant 0 : i32
    %c0_i32_0 = arith.constant 0 : i32
    %c0_i32_1 = arith.constant 0 : i32
    %c0_i32_2 = arith.constant 0 : i32
    return %c0_i32, %c0_i32_0, %c0_i32_1 : i32, i32, i32
  }
  func.func @transform_9(%arg0: i32) -> (i32, i32) {
    %c0_i32 = arith.constant 0 : i32
    %c0_i32_0 = arith.constant 0 : i32
    %c0_i32_1 = arith.constant 0 : i32
    return %c0_i32, %c0_i32_0 : i32, i32
  }
  func.func @transform_10(%arg0: i32) -> (i32, i32) {
    %c0_i32 = arith.constant 0 : i32
    %c0_i32_0 = arith.constant 0 : i32
    %c0_i32_1 = arith.constant 0 : i32
    return %c0_i32, %c0_i32_0 : i32, i32
  }
  func.func @transform_11(%arg0: i32) -> (i32, i32) {
    %c0_i32 = arith.constant 0 : i32
    %c0_i32_0 = arith.constant 0 : i32
    %c0_i32_1 = arith.constant 0 : i32
    return %c0_i32, %c0_i32_0 : i32, i32
  }
  func.func @transform_12(%arg0: i32) -> (i32, i32) {
    %c0_i32 = arith.constant 0 : i32
    %c0_i32_0 = arith.constant 0 : i32
    %c0_i32_1 = arith.constant 0 : i32
    return %c0_i32, %c0_i32_0 : i32, i32
  }
  func.func @transform_13(%arg0: i32) -> (i32, i32) {
    %c0_i32 = arith.constant 0 : i32
    %c0_i32_0 = arith.constant 0 : i32
    return %arg0, %c0_i32 : i32, i32
  }
}

</mosaic_0001>

<bundles_post_ra>
// kernel: tpu_custom_call.1
= control target key start
LH: loop header
LB: loop body
LE: loop exit
PB: predicated region body
PF: predicated region fallthrough
CT: control target
= control target key end

     0   :  { %18 = vsyncpa [#allocation3], 0  ;;  %s3233_s0 = inlined_call_operand.vmem [shape: f32[104,16], index: 0, kind: input, shape index: {}]   ;;  %s3234_s1 = inlined_call_operand.vmem [shape: f32[1,16], index: 1, kind: input, shape index: {}]   ;;  %s3235_s2 = inlined_call_operand.vmem [shape: f32[1,16], index: 2, kind: input, shape index: {}]   ;;  %s3236_s3 = inlined_call_operand.hbm [shape: f32[16,128], index: 3, kind: input, shape index: {}]   ;;  %s3237_s4 = inlined_call_operand.hbm [shape: f32[1,128], index: 4, kind: input, shape index: {}]   ;;  %s3238_s5 = inlined_call_operand.hbm [shape: f32[2,128,256], index: 5, kind: input, shape index: {}]   ;;  %s3239_s6 = inlined_call_operand.vmem [shape: f32[2,1,256], index: 6, kind: input, shape index: {}]   ;;  %s3240_s7 = inlined_call_operand.hbm [shape: f32[2,256,128], index: 7, kind: input, shape index: {}]   ;;  %s3241_s8 = inlined_call_operand.vmem [shape: f32[2,1,128], index: 8, kind: input, shape index: {}]   ;;  %s3242_s9 = inlined_call_operand.vmem [shape: f32[128,128], index: 9, kind: input, shape index: {}]   ;;  %s3243_s10 = inlined_call_operand.vmem [shape: f32[1,128], index: 10, kind: input, shape index: {}]   ;;  %s3244_s11 = inlined_call_operand.hbm [shape: f32[128,128], index: 11, kind: input, shape index: {}]   ;;  %s3245_s12 = inlined_call_operand.vmem [shape: f32[1,128], index: 12, kind: input, shape index: {}]   ;;  %s3246_s13 = inlined_call_operand.hbm [shape: f32[104,128], index: 13, kind: output, shape index: {}]  }
   0x1   :  { %19 = vsyncpa [#allocation6], 0 }
   0x2   :  { %20 = vsyncpa [#allocation9], 0 }
   0x3   :  { %21 = vsyncpa [#allocation4], 0  ;;  %s2471_s25 = smov [#allocation5]  }
   0x4   :  { %s46_s26 = sshll.u32 %s2471_s25, 4  ;;  %s47_s26 = int_to_ptr.vmem [resolvable:$true] %s46_s26 }
   0x5   :  { %s2351_s27 = scalar_lea.vmem %s47_s26, 16  ;;  %s2355_s28 = scalar_lea.vmem %s47_s26, 32 }
   0x6   :  { %p2352_p0 = scmp.ne.s32.totalorder %s47_s26, %s2351_s27  ;;  %p2356_p1 = scmp.lt.s32.totalorder %s47_s26, %s47_s26 }
   0x7   :  { %p2357_p2 = scmp.lt.s32.totalorder %s2355_s28, %s2351_s27 }
   0x9   :  { %p2358_p3 = por %p2357_p2, %p2356_p1 }
   0xb   :  { %p2359_p4 = pnand %p2358_p3, %p2352_p0 }
   0xd   :  { %2362 = shalt.err (!%p2359_p4)
}
   0xe   :  { %49 = dma.hbm_to_vmem [thread:$0]  %s3237_s4, 16, %s47_s26, [#allocation6]  }
   0xf   :  { %s2472_s14 = smov [#allocation8]   ;;  %s2473_s16 = smov [#allocation2]  }
  0x10   :  { %s69_s15 = sshll.u32 %s2472_s14, 4  ;;  %s33_s17 = sshll.u32 %s2473_s16, 4  ;;  %s70_s15 = int_to_ptr.vmem [resolvable:$true] %s69_s15  ;;  %s34_s17 = int_to_ptr.vmem [resolvable:$true] %s33_s17 }
  0x11   :  { %s2371_s18 = scalar_lea.vmem %s70_s15, 8192  ;;  %p2376_p6 = scmp.lt.s32.totalorder %s70_s15, %s70_s15 }
  0x12   :  { %p2372_p5 = scmp.ne.s32.totalorder %s70_s15, %s2371_s18  ;;  %p2377_p7 = scmp.lt.s32.totalorder %s2371_s18, %s2371_s18 }
  0x14   :  { %p2378_p8 = por %p2377_p7, %p2376_p6 }
  0x16   :  { %p2379_p9 = pnand %p2378_p8, %p2372_p5 }
  0x18   :  { %2382 = shalt.err (!%p2379_p9)
}
  0x19   :  { %s2474_s19 = smov 128   ;;  %s2475_s20 = smov 8  }
  0x1a   :  { %75 = dma.hbm_to_vmem [thread:$0]  %s3240_s7, 8192, %s70_s15, [#allocation9], %s2474_s19, %s2474_s19, %s2475_s20  }
  0x1b   :  { %s2391_s4 = scalar_lea.vmem %s34_s17, 256  ;;  %p2396_p11 = scmp.lt.s32.totalorder %s34_s17, %s34_s17 }
  0x1c   :  { %p2392_p10 = scmp.ne.s32.totalorder %s34_s17, %s2391_s4  ;;  %p2397_p12 = scmp.lt.s32.totalorder %s2391_s4, %s2391_s4 }
  0x1e   :  { %p2398_p13 = por %p2397_p12, %p2396_p11 }
  0x20   :  { %p2399_p0 = pnand %p2398_p13, %p2392_p10 }
  0x22   :  { %2402 = shalt.err (!%p2399_p0)
}
  0x23   :  { %39 = dma.hbm_to_vmem [thread:$0]  %s3236_s3, 256, %s34_s17, [#allocation3], %s2474_s19, %s2474_s19, %s2475_s20  }
  0x24   :  { %s2476_s25 = smov [#allocation7]  }
  0x25   :  { %s55_s26 = sshll.u32 %s2476_s25, 4  ;;  %s56_s26 = int_to_ptr.vmem [resolvable:$true] %s55_s26 }
  0x26   :  { %s2411_s27 = scalar_lea.vmem %s56_s26, 8192  ;;  %p2416_p2 = scmp.lt.s32.totalorder %s56_s26, %s56_s26 }
  0x27   :  { %p2412_p1 = scmp.ne.s32.totalorder %s56_s26, %s2411_s27  ;;  %p2417_p3 = scmp.lt.s32.totalorder %s2411_s27, %s2411_s27 }
  0x29   :  { %p2418_p4 = por %p2417_p3, %p2416_p2 }
  0x2b   :  { %p2419_p5 = pnand %p2418_p4, %p2412_p1 }
  0x2d   :  { %2422 = shalt.err (!%p2419_p5)
}
  0x2e   :  { %s2477_s7 = smov 256   ;;  %s2478_s28 = smov 16  }
  0x2f   :  { %61 = dma.hbm_to_vmem [thread:$0]  %s3238_s5, 8192, %s56_s26, [#allocation6], %s2477_s7, %s2477_s7, %s2478_s28  }
  0x30   :  { %s2479_s14 = smov [#allocation10]  }
  0x31   :  { %s87_s15 = sshll.u32 %s2479_s14, 4  ;;  %s88_s15 = int_to_ptr.vmem [resolvable:$true] %s87_s15 }
  0x32   :  { %s2431_s3 = scalar_lea.vmem %s88_s15, 2048  ;;  %p2436_p7 = scmp.lt.s32.totalorder %s88_s15, %s88_s15 }
  0x33   :  { %p2432_p6 = scmp.ne.s32.totalorder %s88_s15, %s2431_s3  ;;  %p2437_p8 = scmp.lt.s32.totalorder %s2431_s3, %s2431_s3 }
  0x35   :  { %p2438_p9 = por %p2437_p8, %p2436_p7 }
  0x37   :  { %p2439_p10 = pnand %p2438_p9, %p2432_p6 }
  0x39   :  { %2442 = shalt.err (!%p2439_p10)
}
  0x3a   :  { %93 = dma.hbm_to_vmem [thread:$0]  %s3244_s11, 2048, %s88_s15, [#allocation9], %s2474_s19, %s2474_s19, %s2475_s20  }
  0x3b   :  { %2463 = dma.done.wait [#allocation3], 256  }
  0x3c   :  { %2464 = vsyncadd [#allocation3], 4294967040 }
  0x3d   :  { %2465 = dma.done.wait [#allocation6], 8208  }
  0x3e   :  { %2466 = vsyncadd [#allocation6], 4294959088 }
  0x3f   :  { %2467 = dma.done.wait [#allocation9], 10240  }
  0x40   :  { %2468 = vsyncadd [#allocation9], 4294957056  ;;  %v2480_v0 = vmov 0.0   ;;  %vm2481_vm0 = vmmov 0   ;;  %v165_v1 = vld [vmem:[#allocation2 + $0x8] sm:$0xff]  ;;  %v164_v2 = vld [vmem:[#allocation2] sm:$0xff] }
  0x41   :  { %2064 = vmatprep.subr.mxu0 %v2480_v0  ;;  %2068 = vmatprep.mubr.msk.f32.mxu0 %vm2481_vm0, %v2480_v0  ;;  %v111_v3 = vld [vmem:[%s3233_s0] sm:$0xff]  ;;  %v112_v6 = vld [vmem:[%s3233_s0 + $0x8] sm:$0xff]  ;;  %vm173_vm1 = vcmask 130048   ;;  %v113_v9 = vld [vmem:[%s3233_s0 + $0x10] sm:$0xff] }
  0x42   :  { %2249 = vmatprep.subr.mxu1 %v2480_v0  ;;  %2092 = vmatprep.mubr.msk.f32.mxu1 %vm2481_vm0, %v2480_v0  ;;  %v2589_v4 = vld [vmem:[%s3234_s1] ss:$0 sm:$0xff]  ;;  %v120_v13 = vld [vmem:[%s3233_s0 + $0x48] sm:$0xff]  ;;  %v121_v14 = vld [vmem:[%s3233_s0 + $0x50] sm:$0xff] }
  0x43   :  { %2065 = vmatpush3.msra.mxu0 %v165_v1  ;;  %v2594_v5 = vld [vmem:[%s3235_s2] ss:$0 sm:$0xff]  ;;  %2251 = vmatpush3.msra.mxu1 %v165_v1  ;;  %v131_v7 = vsub.f32 %v111_v3, %v2589_v4  ;;  %v132_v8 = vsub.f32 %v112_v6, %v2589_v4  ;;  %v133_v16 = vsub.f32 %v113_v9, %v2589_v4  ;;  %v114_v19 = vld [vmem:[%s3233_s0 + $0x18] sm:$0xff]  ;;  %v116_v31 = vld [vmem:[%s3233_s0 + $0x28] sm:$0xff] }
  0x44   :  { %2066 = vmatprep.subr.mxu0 %v2480_v0  ;;  %2250 = vmatprep.subr.mxu1 %v2480_v0  ;;  %v119_v10 = vld [vmem:[%s3233_s0 + $0x40] sm:$0xff]  ;;  %v140_v18 = vsub.f32 %v120_v13, %v2589_v4  ;;  %v141_v21 = vsub.f32 %v121_v14, %v2589_v4  ;;  %v122_v22 = vld [vmem:[%s3233_s0 + $0x58] sm:$0xff]  ;;  %v134_v24 = vsub.f32 %v114_v19, %v2589_v4  ;;  %v117_v36 = vld [vmem:[%s3233_s0 + $0x30] sm:$0xff] }
  0x45   :  { %2067 = vmatpush3.msra.mxu0 %v164_v2  ;;  %2252 = vmatpush3.msra.mxu1 %v164_v2  ;;  %v151_v11 = vmul.f32 %v2594_v5, %v131_v7  ;;  %v139_v12 = vsub.f32 %v119_v10, %v2589_v4  ;;  %v152_v15 = vmul.f32 %v2594_v5, %v132_v8  ;;  %v115_v25 = vld [vmem:[%s3233_s0 + $0x20] sm:$0xff]  ;;  %v118_v40 = vld [vmem:[%s3233_s0 + $0x38] sm:$0xff]  ;;  %v466_v44 = vld [vmem:[#allocation7 + $0xf8] sm:$0xff] }
  0x46   :  { %v160_v20 = vmul.f32 %v2594_v5, %v140_v18  ;;  %v153_v23 = vmul.f32 %v2594_v5, %v133_v16  ;;  %v161_v26 = vmul.f32 %v2594_v5, %v141_v21  ;;  %v142_v27 = vsub.f32 %v122_v22, %v2589_v4  ;;  %v123_v28 = vld [vmem:[%s3233_s0 + $0x60] sm:$0xff]  ;;  %479 = vmatprep.subr.mxu1 %v466_v44  ;;  %v463_v47 = vld [vmem:[#allocation7 + $0xe0] sm:$0xff]  ;;  %v462_v48 = vld [vmem:[#allocation7 + $0xd8] sm:$0xff] }
  0x47   :  { %2069 = vmatmul.mubr.msk.f32.vlgmr.msra.gmra.mxu0 %vm173_vm1, %v151_v11  ;;  %v159_v17 = vmul.f32 %v2594_v5, %v139_v12  ;;  %v154_v29 = vmul.f32 %v2594_v5, %v134_v24  ;;  %v135_v30 = vsub.f32 %v115_v25, %v2589_v4  ;;  %v143_v33 = vsub.f32 %v123_v28, %v2589_v4  ;;  %v465_v45 = vld [vmem:[#allocation7 + $0xf0] sm:$0xff]  ;;  %v464_v46 = vld [vmem:[#allocation7 + $0xe8] sm:$0xff]  ;;  %v459_v51 = vld [vmem:[#allocation7 + $0xc0] sm:$0xff] }
  0x48   :  { %2071 = vmatprep.mubr.msk.f32.mxu0 %vm2481_vm0, %v2480_v0  ;;  %v162_v32 = vmul.f32 %v2594_v5, %v142_v27  ;;  %v136_v35 = vsub.f32 %v116_v31, %v2589_v4  ;;  %v137_v39 = vsub.f32 %v117_v36, %v2589_v4  ;;  %v138_v42 = vsub.f32 %v118_v40, %v2589_v4  ;;  %v461_v49 = vld [vmem:[#allocation7 + $0xd0] sm:$0xff]  ;;  %v460_v50 = vld [vmem:[#allocation7 + $0xc8] sm:$0xff]  ;;  %v458_v52 = vld [vmem:[#allocation7 + $0xb8] sm:$0xff] }
  0x49   :  { %2093 = vmatmul.mubr.msk.f32.vlgmr.msra.gmra.mxu1 %vm173_vm1, %v159_v17  ;;  %v155_v34 = vmul.f32 %v2594_v5, %v135_v30  ;;  %v163_v37 = vmul.f32 %v2594_v5, %v143_v33  ;;  %v457_v53 = vld [vmem:[#allocation7 + $0xb0] sm:$0xff]  ;;  %v456_v54 = vld [vmem:[#allocation7 + $0xa8] sm:$0xff]  ;;  %v455_v55 = vld [vmem:[#allocation7 + $0xa0] sm:$0xff] }
  0x4a   :  { %2095 = vmatprep.mubr.msk.f32.mxu1 %vm2481_vm0, %v2480_v0  ;;  %v156_v38 = vmul.f32 %v2594_v5, %v136_v35  ;;  %v157_v41 = vmul.f32 %v2594_v5, %v137_v39  ;;  %v158_v43 = vmul.f32 %v2594_v5, %v138_v42  ;;  %480 = vmatpush1.msra.mxu1 %v465_v45  ;;  %v2696_v56 = vld [vmem:[#allocation5] ss:$0 sm:$0xff]  ;;  %v453_v18 = vld [vmem:[#allocation7 + $0x90] sm:$0xff]  ;;  %v452_v21 = vld [vmem:[#allocation7 + $0x88] sm:$0xff] }
  0x4b   :  { %2072 = vmatmul.mubr.msk.f32.gmra.mxu0 %vm173_vm1, %v152_v15  ;;  %481 = vmatprep.subr.mxu1 %v464_v46  ;;  %v454_v16 = vld [vmem:[#allocation7 + $0x98] sm:$0xff]  ;;  %v449_v28 = vld [vmem:[#allocation7 + $0x70] sm:$0xff]  ;;  %v448_v31 = vld [vmem:[#allocation7 + $0x68] sm:$0xff] }
  0x4c   :  { %2074 = vmatprep.mubr.msk.f32.mxu0 %vm2481_vm0, %v2480_v0  ;;  %482 = vmatpush1.msra.mxu1 %v463_v47  ;;  %v447_v33 = vld [vmem:[#allocation7 + $0x60] sm:$0xff]  ;;  %v446_v35 = vld [vmem:[#allocation7 + $0x58] sm:$0xff]  ;;  %v444_v39 = vld [vmem:[#allocation7 + $0x48] sm:$0xff] }
  0x4d   :  { %2096 = vmatmul.mubr.msk.f32.gmra.mxu1 %vm173_vm1, %v160_v20  ;;  %483 = vmatprep.subr.mxu1 %v462_v48  ;;  %v443_v42 = vld [vmem:[#allocation7 + $0x40] sm:$0xff]  ;;  %v442_v44 = vld [vmem:[#allocation7 + $0x38] sm:$0xff]  ;;  %v441_v46 = vld [vmem:[#allocation7 + $0x30] sm:$0xff] }
  0x4e   :  { %2098 = vmatprep.mubr.msk.f32.mxu1 %vm2481_vm0, %v2480_v0  ;;  %484 = vmatpush1.msra.mxu1 %v461_v49  ;;  %v440_v49 = vld [vmem:[#allocation7 + $0x28] sm:$0xff] }
  0x4f   :  { %2075 = vmatmul.mubr.msk.f32.gmra.mxu0 %vm173_vm1, %v153_v23  ;;  %485 = vmatprep.subr.mxu1 %v460_v50  ;;  %v451_v23 = vld [vmem:[#allocation7 + $0x80] sm:$0xff] }
  0x50   :  { %2077 = vmatprep.mubr.msk.f32.mxu0 %vm2481_vm0, %v2480_v0  ;;  %486 = vmatpush1.msra.mxu1 %v459_v51 }
  0x51   :  { %2099 = vmatmul.mubr.msk.f32.gmra.mxu1 %vm173_vm1, %v161_v26  ;;  %487 = vmatprep.subr.mxu1 %v458_v52  ;;  %v450_v26 = vld [vmem:[#allocation7 + $0x78] sm:$0xff] }
  0x52   :  { %2101 = vmatprep.mubr.msk.f32.mxu1 %vm2481_vm0, %v2480_v0  ;;  %488 = vmatpush1.msra.mxu1 %v457_v53  ;;  %v439_v53 = vld [vmem:[#allocation7 + $0x20] sm:$0xff] }
  0x53   :  { %2078 = vmatmul.mubr.msk.f32.gmra.mxu0 %vm173_vm1, %v154_v29  ;;  %489 = vmatprep.subr.mxu1 %v456_v54 }
  0x54   :  { %2080 = vmatprep.mubr.msk.f32.mxu0 %vm2481_vm0, %v2480_v0  ;;  %490 = vmatpush1.msra.mxu1 %v455_v55  ;;  %v438_v55 = vld [vmem:[#allocation7 + $0x18] sm:$0xff] }
  0x55   :  { %2102 = vmatmul.mubr.msk.f32.gmra.mxu1 %vm173_vm1, %v162_v32  ;;  %491 = vmatprep.subr.mxu1 %v454_v16  ;;  %v685_v16 = vld [vmem:[#allocation8 + $0x58] sm:$0xff] }
  0x56   :  { %2104 = vmatprep.mubr.msk.f32.mxu1 %vm2481_vm0, %v2480_v0  ;;  %492 = vmatpush1.msra.mxu1 %v453_v18  ;;  %v684_v18 = vld [vmem:[#allocation8 + $0x50] sm:$0xff] }
  0x57   :  { %2081 = vmatmul.mubr.msk.f32.gmra.mxu0 %vm173_vm1, %v155_v34  ;;  %493 = vmatprep.subr.mxu1 %v452_v21  ;;  %v698_v21 = vld [vmem:[#allocation8 + $0xc0] sm:$0xff] }
  0x58   :  { %2083 = vmatprep.mubr.msk.f32.mxu0 %vm2481_vm0, %v2480_v0  ;;  %494 = vmatpush1.msra.mxu1 %v451_v23  ;;  %v682_v23 = vld [vmem:[#allocation8 + $0x40] sm:$0xff] }
  0x59   :  { %2105 = vmatmul.mubr.msk.f32.gmra.mxu1 %vm173_vm1, %v163_v37  ;;  %495 = vmatprep.subr.mxu1 %v450_v26  ;;  %v445_v37 = vld [vmem:[#allocation7 + $0x50] sm:$0xff] }
  0x5a   :  { %543 = vmatprep.mubr.f32.mxu1 %v2480_v0  ;;  %496 = vmatpush1.msra.mxu1 %v449_v28  ;;  %v696_v26 = vld [vmem:[#allocation8 + $0xb0] sm:$0xff]  ;;  %v695_v28 = vld [vmem:[#allocation8 + $0xa8] sm:$0xff] }
  0x5b   :  { %2084 = vmatmul.mubr.msk.f32.gmra.mxu0 %vm173_vm1, %v156_v38  ;;  %497 = vmatprep.subr.mxu1 %v448_v31 }
  0x5c   :  { %2086 = vmatprep.mubr.msk.f32.mxu0 %vm2481_vm0, %v2480_v0  ;;  %498 = vmatpush1.msra.mxu1 %v447_v33 }
  0x5d   :  { %499 = vmatprep.subr.mxu1 %v446_v35 }
  0x5e   :  { %500 = vmatpush1.msra.mxu1 %v445_v37 }
  0x5f   :  { %2087 = vmatmul.mubr.msk.f32.gmra.mxu0 %vm173_vm1, %v157_v41  ;;  %501 = vmatprep.subr.mxu1 %v444_v39 }
  0x60   :  { %2089 = vmatprep.mubr.msk.f32.mxu0 %vm2481_vm0, %v2480_v0  ;;  %502 = vmatpush1.msra.mxu1 %v443_v42 }
  0x61   :  { %503 = vmatprep.subr.mxu1 %v442_v44 }
  0x62   :  { %504 = vmatpush1.msra.mxu1 %v441_v46 }
  0x63   :  { %2090 = vmatmul.mubr.msk.f32.gmra.mxu0 %vm173_vm1, %v158_v43  ;;  %505 = vmatprep.subr.mxu1 %v440_v49 }
  0x64   :  { %506 = vmatpush1.msra.mxu1 %v439_v53 }
  0x65   :  { %507 = vmatprep.subr.mxu1 %v438_v55 }
 0x107   :  { %v279_v57 = vpop.f32.mrf.mxu0 }
 0x108   :  { %v2699_v58 = vadd.f32 %v2696_v56, %v279_v57 }
 0x109   :  { %v2070_v59 = vpop.f32.mrf.mxu0  ;;  %v319_v60 = vpop.f32.mrf.mxu1 }
 0x10a   :  { %v343_v61 = vmul.f32 %v2699_v58, %v2699_v58  ;;  %v2731_v40 = vadd.f32 %v2696_v56, %v319_v60  ;;  %v437_v59 = vld [vmem:[#allocation7 + $0x10] sm:$0xff] }
 0x10b   :  { %v284_v62 = vpop.f32.mrf.mxu0  ;;  %v2094_v63 = vpop.f32.mrf.mxu1  ;;  %508 = vmatpush1.msra.mxu1 %v437_v59 }
 0x10c   :  { %v2704_v1 = vadd.f32 %v2696_v56, %v284_v62  ;;  %356 = vadd.xlane.f32.xlu0 %v343_v61  ;;  %v351_v52 = vmul.f32 %v2731_v40, %v2731_v40  ;;  %v436_v61 = vld [vmem:[#allocation7 + $0x8] sm:$0xff] }
 0x10d   :  { %v2073_v2 = vpop.f32.mrf.mxu0  ;;  %v324_v3 = vpop.f32.mrf.mxu1  ;;  %509 = vmatprep.subr.mxu1 %v436_v61 }
 0x10e   :  { %v344_v4 = vmul.f32 %v2704_v1, %v2704_v1  ;;  %v2739_v47 = vadd.f32 %v2696_v56, %v324_v3  ;;  %v435_v3 = vld [vmem:[#allocation7] sm:$0xff] }
 0x10f   :  { %v289_v5 = vpop.f32.mrf.mxu0  ;;  %v2097_v6 = vpop.f32.mrf.mxu1  ;;  %510 = vmatpush1.msra.mxu1 %v435_v3 }
 0x110   :  { %v2709_v7 = vadd.f32 %v2696_v56, %v289_v5  ;;  %358 = vadd.xlane.f32.xlu0 %v344_v4  ;;  %v352_v60 = vmul.f32 %v2739_v47, %v2739_v47  ;;  %v705_v6 = vld [vmem:[#allocation8 + $0xf8] sm:$0xff] }
 0x111   :  { %v2076_v8 = vpop.f32.mrf.mxu0  ;;  %v329_v9 = vpop.f32.mrf.mxu1  ;;  %1864 = vmatprep.subr.mxu0 %v705_v6 }
 0x112   :  { %v345_v10 = vmul.f32 %v2709_v7, %v2709_v7  ;;  %v2745_v51 = vadd.f32 %v2696_v56, %v329_v9  ;;  %v689_v8 = vld [vmem:[#allocation8 + $0x78] sm:$0xff]  ;;  %v688_v9 = vld [vmem:[#allocation8 + $0x70] sm:$0xff] }
 0x113   :  { %v294_v11 = vpop.f32.mrf.mxu0  ;;  %v2100_v12 = vpop.f32.mrf.mxu1  ;;  %1865 = vmatpush3.msra.mxu0 %v689_v8 }
 0x114   :  { %v2714_v13 = vadd.f32 %v2696_v56, %v294_v11  ;;  %360 = vadd.xlane.f32.xlu1 %v345_v10  ;;  %v353_v2 = vmul.f32 %v2745_v51, %v2745_v51  ;;  %v703_v10 = vld [vmem:[#allocation8 + $0xe8] sm:$0xff]  ;;  %v702_v12 = vld [vmem:[#allocation8 + $0xe0] sm:$0xff] }
 0x115   :  { %v2079_v14 = vpop.f32.mrf.mxu0  ;;  %v2716_v15 = vpop.f32.mrf.mxu1  ;;  %v687_v11 = vld [vmem:[#allocation8 + $0x68] sm:$0xff] }
 0x116   :  { %v346_v17 = vmul.f32 %v2714_v13, %v2714_v13  ;;  %v2755_v62 = vadd.f32 %v2696_v56, %v2716_v15  ;;  %v686_v14 = vld [vmem:[#allocation8 + $0x60] sm:$0xff]  ;;  %v701_v15 = vld [vmem:[#allocation8 + $0xd8] sm:$0xff] }
 0x117   :  { %v299_v19 = vpop.f32.mrf.mxu0  ;;  %v2103_v20 = vpop.f32.mrf.mxu1 }
 0x118   :  { %v2721_v22 = vadd.f32 %v2696_v56, %v299_v19  ;;  %362 = vadd.xlane.f32.xlu1 %v346_v17  ;;  %v354_v5 = vmul.f32 %v2755_v62, %v2755_v62  ;;  %v700_v17 = vld [vmem:[#allocation8 + $0xd0] sm:$0xff]  ;;  %v699_v19 = vld [vmem:[#allocation8 + $0xc8] sm:$0xff] }
 0x119   :  { %v2082_v24 = vpop.f32.mrf.mxu0  ;;  %v339_v25 = vpop.f32.mrf.mxu1  ;;  %v683_v20 = vld [vmem:[#allocation8 + $0x48] sm:$0xff] }
 0x11a   :  { %v347_v27 = vmul.f32 %v2721_v22, %v2721_v22  ;;  %v2758_v63 = vadd.f32 %v2696_v56, %v339_v25  ;;  %v697_v24 = vld [vmem:[#allocation8 + $0xb8] sm:$0xff] }
 0x11b   :  { %v304_v29 = vpop.f32.mrf.mxu0  ;;  %v2106_v30 = vpop.f32.mrf.mxu1  ;;  %v681_v25 = vld [vmem:[#allocation8 + $0x38] sm:$0xff] }
 0x11c   :  { %v2726_v32 = vadd.f32 %v2696_v56, %v304_v29  ;;  %364 = vadd.xlane.f32.xlu0 %v347_v27  ;;  %v355_v4 = vmul.f32 %v2758_v63, %v2758_v63  ;;  %v680_v27 = vld [vmem:[#allocation8 + $0x30] sm:$0xff]  ;;  %v679_v29 = vld [vmem:[#allocation8 + $0x28] sm:$0xff]  ;;  %v694_v30 = vld [vmem:[#allocation8 + $0xa0] sm:$0xff] }
 0x11d   :  { %v2085_v34 = vpop.f32.mrf.mxu0 }
 0x11e   :  { %v348_v36 = vmul.f32 %v2726_v32, %v2726_v32 }
 0x11f   :  { %v309_v38 = vpop.f32.mrf.mxu0 }
 0x120   :  { %v2734_v41 = vadd.f32 %v2696_v56, %v309_v38  ;;  %366 = vadd.xlane.f32.xlu1 %v348_v36 }
 0x121   :  { %v2088_v43 = vpop.f32.mrf.mxu0 }
 0x122   :  { %v349_v45 = vmul.f32 %v2734_v41, %v2734_v41 }
 0x123   :  { %v314_v48 = vpop.f32.mrf.mxu0 }
 0x124   :  { %v2742_v50 = vadd.f32 %v2696_v56, %v314_v48  ;;  %368 = vadd.xlane.f32.xlu0 %v349_v45  ;;  %v704_v56 = vld [vmem:[#allocation8 + $0xf0] sm:$0xff] }
 0x125   :  { %v2091_v54 = vpop.f32.mrf.mxu0  ;;  %1866 = vmatprep.subr.mxu0 %v704_v56 }
 0x126   :  { %v350_v57 = vmul.f32 %v2742_v50, %v2742_v50  ;;  %1867 = vmatpush3.msra.mxu0 %v688_v9 }
 0x127   :  { %1868 = vmatprep.subr.mxu0 %v703_v10 }
 0x128   :  { %372 = vadd.xlane.f32.xlu0 %v351_v52  ;;  %370 = vadd.xlane.f32.xlu1 %v350_v57 }
 0x129   :  { %1869 = vmatpush3.msra.mxu0 %v687_v11 }
 0x12a   :  { %1870 = vmatprep.subr.mxu0 %v702_v12 }
 0x12b   :  { %1871 = vmatpush3.msra.mxu0 %v686_v14 }
 0x12c   :  { %376 = vadd.xlane.f32.xlu0 %v353_v2  ;;  %374 = vadd.xlane.f32.xlu1 %v352_v60 }
 0x12d   :  { %1872 = vmatprep.subr.mxu0 %v701_v15 }
 0x12e   :  { %1873 = vmatpush3.msra.mxu0 %v685_v16 }
 0x12f   :  { %1874 = vmatprep.subr.mxu0 %v700_v17 }
 0x130   :  { %380 = vadd.xlane.f32.xlu0 %v355_v4  ;;  %378 = vadd.xlane.f32.xlu1 %v354_v5 }
 0x131   :  { %1875 = vmatpush3.msra.mxu0 %v684_v18 }
 0x132   :  { %1876 = vmatprep.subr.mxu0 %v699_v19 }
 0x133   :  { %1877 = vmatpush3.msra.mxu0 %v683_v20 }
 0x134   :  { %1878 = vmatprep.subr.mxu0 %v698_v21 }
 0x135   :  { %1879 = vmatpush3.msra.mxu0 %v682_v23 }
 0x136   :  { %1880 = vmatprep.subr.mxu0 %v697_v24 }
 0x137   :  { %1881 = vmatpush3.msra.mxu0 %v681_v25 }
 0x138   :  { %1882 = vmatprep.subr.mxu0 %v696_v26 }
 0x139   :  { %1883 = vmatpush3.msra.mxu0 %v680_v27 }
 0x13a   :  { %1884 = vmatprep.subr.mxu0 %v695_v28 }
 0x13b   :  { %1885 = vmatpush3.msra.mxu0 %v679_v29 }
 0x13c   :  { %1886 = vmatprep.subr.mxu0 %v694_v30 }
 0x195   :  { %v357_v31 = vpop.xlane.xlu0 %356 }
 0x196   :  { %v383_v33 = vmul.f32 0.0078125, %v357_v31 }
 0x198   :  { %v396_v34 = vadd.f32 1e-05, %v383_v33 }
 0x199   :  { %v359_v35 = vpop.xlane.xlu0 %358 }
 0x19a   :  { %2265 = vrsqrt.f32 %v396_v34  ;;  %v384_v36 = vmul.f32 0.0078125, %v359_v35 }
 0x19c   :  { %v397_v37 = vadd.f32 1e-05, %v384_v36 }
 0x19d   :  { %v361_v38 = vpop.xlane.xlu1 %360 }
 0x19e   :  { %2267 = vrsqrt.f32 %v397_v37  ;;  %v385_v39 = vmul.f32 0.0078125, %v361_v38 }
 0x1a0   :  { %v398_v42 = vadd.f32 1e-05, %v385_v39 }
 0x1a1   :  { %v363_v43 = vpop.xlane.xlu1 %362 }
 0x1a2   :  { %2269 = vrsqrt.f32 %v398_v42  ;;  %v386_v44 = vmul.f32 0.0078125, %v363_v43 }
 0x1a4   :  { %v399_v45 = vadd.f32 1e-05, %v386_v44 }
 0x1a5   :  { %v365_v46 = vpop.xlane.xlu0 %364 }
 0x1a6   :  { %2271 = vrsqrt.f32 %v399_v45  ;;  %v387_v48 = vmul.f32 0.0078125, %v365_v46 }
 0x1a7   :  { %v2266_v49 = vpop.eup %2265 }
 0x1a8   :  { %v400_v52 = vadd.f32 1e-05, %v387_v48  ;;  %v422_v53 = vmul.f32 %v2266_v49, %v2699_v58 }
 0x1a9   :  { %v367_v54 = vpop.xlane.xlu1 %366 }
 0x1aa   :  { %2273 = vrsqrt.f32 %v400_v52  ;;  %v388_v55 = vmul.f32 0.0078125, %v367_v54  ;;  %544 = vmatmul.mubr.f32.vlgmr.msra.gmra.mxu1 %v422_v53  ;;  %v678_v52 = vld [vmem:[#allocation8 + $0x20] sm:$0xff]  ;;  %v693_v53 = vld [vmem:[#allocation8 + $0x98] sm:$0xff] }
 0x1ab   :  { %v2268_v57 = vpop.eup %2267  ;;  %549 = vmatprep.mubr.f32.mxu1 %v2480_v0  ;;  %1887 = vmatpush3.msra.mxu0 %v678_v52  ;;  %v677_v54 = vld [vmem:[#allocation8 + $0x18] sm:$0xff] }
 0x1ac   :  { %v401_v59 = vadd.f32 1e-05, %v388_v55  ;;  %v423_v60 = vmul.f32 %v2268_v57, %v2704_v1  ;;  %1888 = vmatprep.subr.mxu0 %v693_v53  ;;  %v692_v55 = vld [vmem:[#allocation8 + $0x90] sm:$0xff] }
 0x1ad   :  { %v369_v61 = vpop.xlane.xlu0 %368  ;;  %1889 = vmatpush3.msra.mxu0 %v677_v54  ;;  %v676_v57 = vld [vmem:[#allocation8 + $0x10] sm:$0xff] }
 0x1ae   :  { %2275 = vrsqrt.f32 %v401_v59  ;;  %v389_v2 = vmul.f32 0.0078125, %v369_v61  ;;  %550 = vmatmul.mubr.f32.gmra.mxu1 %v423_v60  ;;  %1890 = vmatprep.subr.mxu0 %v692_v55  ;;  %v691_v59 = vld [vmem:[#allocation8 + $0x88] sm:$0xff]  ;;  %v690_v61 = vld [vmem:[#allocation8 + $0x80] sm:$0xff] }
 0x1af   :  { %v2270_v3 = vpop.eup %2269  ;;  %555 = vmatprep.mubr.f32.mxu1 %v2480_v0  ;;  %1891 = vmatpush3.msra.mxu0 %v676_v57  ;;  %v675_v60 = vld [vmem:[#allocation8 + $0x8] sm:$0xff] }
 0x1b0   :  { %v402_v4 = vadd.f32 1e-05, %v389_v2  ;;  %v424_v5 = vmul.f32 %v2270_v3, %v2709_v7  ;;  %1892 = vmatprep.subr.mxu0 %v691_v59  ;;  %v674_v2 = vld [vmem:[#allocation8] sm:$0xff]  ;;  %v469_v3 = vlaneseq }
 0x1b1   :  { %v373_v6 = vpop.xlane.xlu0 %372  ;;  %v371_v8 = vpop.xlane.xlu1 %370  ;;  %1893 = vmatpush3.msra.mxu0 %v675_v60 }
 0x1b2   :  { %2277 = vrsqrt.f32 %v402_v4  ;;  %v391_v56 = vmul.f32 0.0078125, %v373_v6  ;;  %v390_v9 = vmul.f32 0.0078125, %v371_v8  ;;  %556 = vmatmul.mubr.f32.gmra.mxu1 %v424_v5  ;;  %1894 = vmatprep.subr.mxu0 %v690_v61  ;;  %v2792_v4 = vshrl.u32 %v469_v3, 7  ;;  %v467_v6 = vld [vmem:[%s3239_s6] sm:$0x3] }
 0x1b3   :  { %v2272_v10 = vpop.eup %2271  ;;  %561 = vmatprep.mubr.f32.mxu1 %v2480_v0  ;;  %1895 = vmatpush3.msra.mxu0 %v674_v2 }
 0x1b4   :  { %v403_v11 = vadd.f32 1e-05, %v390_v9  ;;  %v425_v12 = vmul.f32 %v2272_v10, %v2714_v13  ;;  %v404_v14 = vadd.f32 1e-05, %v391_v56  ;;  %v471_v5 = vsub.s32 0, %v2792_v4 }
 0x1b5   :  { %v375_v15 = vpop.xlane.xlu1 %374  ;;  %v377_v16 = vpop.xlane.xlu0 %376  ;;  %v475_v8 = vsub.s32 1, %v2792_v4 }
 0x1b6   :  { %v392_v17 = vmul.f32 0.0078125, %v375_v15  ;;  %562 = vmatmul.mubr.f32.gmra.mxu1 %v425_v12  ;;  %2279 = vrsqrt.f32 %v403_v11  ;;  %v393_v20 = vmul.f32 0.0078125, %v377_v16  ;;  %v2801_v56 = vrot.slane %v467_v6, %v471_v5 }
 0x1b7   :  { %v2274_v18 = vpop.eup %2273  ;;  %567 = vmatprep.mubr.f32.mxu1 %v2480_v0  ;;  %2281 = vrsqrt.f32 %v404_v14  ;;  %v2805_v9 = vrot.slane %v467_v6, %v475_v8 }
 0x1b8   :  { %v426_v19 = vmul.f32 %v2274_v18, %v2721_v22  ;;  %v405_v21 = vadd.f32 1e-05, %v392_v17  ;;  %v406_v26 = vadd.f32 1e-05, %v393_v20 }
 0x1b9   :  { %v379_v23 = vpop.xlane.xlu1 %378  ;;  %v381_v28 = vpop.xlane.xlu0 %380 }
 0x1ba   :  { %568 = vmatmul.mubr.f32.gmra.mxu1 %v426_v19  ;;  %2283 = vrsqrt.f32 %v405_v21  ;;  %v394_v27 = vmul.f32 0.0078125, %v379_v23  ;;  %v395_v31 = vmul.f32 0.0078125, %v381_v28 }
 0x1bb   :  { %v2276_v24 = vpop.eup %2275  ;;  %573 = vmatprep.mubr.f32.mxu1 %v2480_v0  ;;  %2285 = vrsqrt.f32 %v406_v26 }
 0x1bc   :  { %v427_v25 = vmul.f32 %v2276_v24, %v2726_v32  ;;  %v407_v33 = vadd.f32 1e-05, %v394_v27  ;;  %v408_v35 = vadd.f32 1e-05, %v395_v31 }
 0x1be   :  { %574 = vmatmul.mubr.f32.gmra.mxu1 %v427_v25  ;;  %2287 = vrsqrt.f32 %v407_v33 }
 0x1bf   :  { %v2278_v29 = vpop.eup %2277  ;;  %579 = vmatprep.mubr.f32.mxu1 %v2480_v0  ;;  %2289 = vrsqrt.f32 %v408_v35 }
 0x1c0   :  { %v428_v30 = vmul.f32 %v2278_v29, %v2734_v41 }
 0x1c2   :  { %580 = vmatmul.mubr.f32.gmra.mxu1 %v428_v30 }
 0x1c3   :  { %585 = vmatprep.mubr.f32.mxu1 %v2480_v0  ;;  %v2280_v34 = vpop.eup %2279 }
 0x1c4   :  { %v429_v36 = vmul.f32 %v2280_v34, %v2742_v50  ;;  %v2282_v37 = vpop.eup %2281 }
 0x1c5   :  { %v430_v38 = vmul.f32 %v2282_v37, %v2731_v40 }
 0x1c6   :  { %586 = vmatmul.mubr.f32.gmra.mxu1 %v429_v36 }
 0x1c7   :  { %591 = vmatprep.mubr.f32.mxu1 %v2480_v0  ;;  %v2284_v39 = vpop.eup %2283 }
 0x1c8   :  { %v431_v42 = vmul.f32 %v2284_v39, %v2739_v47  ;;  %v2286_v43 = vpop.eup %2285 }
 0x1c9   :  { %v432_v44 = vmul.f32 %v2286_v43, %v2745_v51 }
 0x1ca   :  { %592 = vmatmul.mubr.f32.gmra.mxu1 %v430_v38 }
 0x1cb   :  { %597 = vmatprep.mubr.f32.mxu1 %v2480_v0  ;;  %v2288_v45 = vpop.eup %2287 }
 0x1cc   :  { %v433_v46 = vmul.f32 %v2288_v45, %v2755_v62  ;;  %v2290_v48 = vpop.eup %2289 }
 0x1cd   :  { %v434_v49 = vmul.f32 %v2290_v48, %v2758_v63 }
 0x1ce   :  { %598 = vmatmul.mubr.f32.gmra.mxu1 %v431_v42 }
 0x1cf   :  { %603 = vmatprep.mubr.f32.mxu1 %v2480_v0 }
 0x1d2   :  { %604 = vmatmul.mubr.f32.gmra.mxu1 %v432_v44 }
 0x1d3   :  { %609 = vmatprep.mubr.f32.mxu1 %v2480_v0 }
 0x1d6   :  { %610 = vmatmul.mubr.f32.gmra.mxu1 %v433_v46 }
 0x1d7   :  { %615 = vmatprep.mubr.f32.mxu1 %v2480_v0 }
 0x1da   :  { %616 = vmatmul.mubr.f32.gmra.mxu1 %v434_v49 }
 0x1db   :  { %1057 = vmatprep.mubr.f32.mxu1 %v2480_v0 }
 0x26a   :  { %v545_v10 = vpop.f32.mrf.mxu1 }
 0x26b   :  { %v546_v11 = vadd.f32 %v545_v10, %v2801_v56 }
 0x26c   :  { %v547_v12 = vpop.f32.mrf.mxu1 }
 0x26d   :  { %v548_v14 = vadd.f32 %v547_v12, %v2805_v9  ;;  %v622_v15 = vmax.f32 %v546_v11, 0.0 }
 0x26e   :  { %v551_v16 = vpop.f32.mrf.mxu1 }
 0x26f   :  { %v623_v17 = vmax.f32 %v548_v14, 0.0  ;;  %v552_v18 = vadd.f32 %v551_v16, %v2801_v56  ;;  %v648_v23 = vmul.f32 %v622_v15, %v622_v15 }
 0x270   :  { %v553_v19 = vpop.f32.mrf.mxu1 }
 0x271   :  { %v649_v20 = vmul.f32 %v623_v17, %v623_v17  ;;  %v554_v21 = vadd.f32 %v553_v19, %v2805_v9  ;;  %v624_v24 = vmax.f32 %v552_v18, 0.0 }
 0x272   :  { %v557_v25 = vpop.f32.mrf.mxu1 }
 0x273   :  { %v625_v26 = vmax.f32 %v554_v21, 0.0  ;;  %v558_v27 = vadd.f32 %v557_v25, %v2801_v56  ;;  %777 = vmatprep.mubr.f32.mxu0 %v649_v20  ;;  %v650_v31 = vmul.f32 %v624_v24, %v624_v24 }
 0x274   :  { %v559_v28 = vpop.f32.mrf.mxu1  ;;  %778 = vmatmul.mubr.f32.vlgmr.msra.gmra.mxu0 %v648_v23 }
 0x275   :  { %v651_v29 = vmul.f32 %v625_v26, %v625_v26  ;;  %v560_v30 = vadd.f32 %v559_v28, %v2805_v9  ;;  %v626_v33 = vmax.f32 %v558_v27, 0.0 }
 0x276   :  { %v563_v34 = vpop.f32.mrf.mxu1 }
 0x277   :  { %v627_v35 = vmax.f32 %v560_v30, 0.0  ;;  %v564_v36 = vadd.f32 %v563_v34, %v2801_v56  ;;  %782 = vmatprep.mubr.f32.mxu0 %v651_v29  ;;  %v652_v42 = vmul.f32 %v626_v33, %v626_v33 }
 0x278   :  { %v565_v37 = vpop.f32.mrf.mxu1  ;;  %783 = vmatmul.mubr.f32.gmra.mxu0 %v650_v31 }
 0x279   :  { %v653_v38 = vmul.f32 %v627_v35, %v627_v35  ;;  %v566_v39 = vadd.f32 %v565_v37, %v2805_v9  ;;  %v628_v43 = vmax.f32 %v564_v36, 0.0 }
 0x27a   :  { %v569_v44 = vpop.f32.mrf.mxu1 }
 0x27b   :  { %v629_v45 = vmax.f32 %v566_v39, 0.0  ;;  %v570_v46 = vadd.f32 %v569_v44, %v2801_v56  ;;  %787 = vmatprep.mubr.f32.mxu0 %v653_v38  ;;  %v654_v53 = vmul.f32 %v628_v43, %v628_v43 }
 0x27c   :  { %v571_v48 = vpop.f32.mrf.mxu1  ;;  %788 = vmatmul.mubr.f32.gmra.mxu0 %v652_v42 }
 0x27d   :  { %v655_v49 = vmul.f32 %v629_v45, %v629_v45  ;;  %v572_v52 = vadd.f32 %v571_v48, %v2805_v9  ;;  %v630_v54 = vmax.f32 %v570_v46, 0.0 }
 0x27e   :  { %v575_v55 = vpop.f32.mrf.mxu1 }
 0x27f   :  { %v631_v57 = vmax.f32 %v572_v52, 0.0  ;;  %v576_v59 = vadd.f32 %v575_v55, %v2801_v56  ;;  %792 = vmatprep.mubr.f32.mxu0 %v655_v49  ;;  %v656_v3 = vmul.f32 %v630_v54, %v630_v54 }
 0x280   :  { %v577_v60 = vpop.f32.mrf.mxu1  ;;  %793 = vmatmul.mubr.f32.gmra.mxu0 %v654_v53 }
 0x281   :  { %v657_v61 = vmul.f32 %v631_v57, %v631_v57  ;;  %v578_v2 = vadd.f32 %v577_v60, %v2805_v9  ;;  %v632_v6 = vmax.f32 %v576_v59, 0.0 }
 0x282   :  { %v581_v10 = vpop.f32.mrf.mxu1 }
 0x283   :  { %v633_v11 = vmax.f32 %v578_v2, 0.0  ;;  %v582_v12 = vadd.f32 %v581_v10, %v2801_v56  ;;  %797 = vmatprep.mubr.f32.mxu0 %v657_v61  ;;  %v658_v17 = vmul.f32 %v632_v6, %v632_v6 }
 0x284   :  { %v583_v14 = vpop.f32.mrf.mxu1  ;;  %798 = vmatmul.mubr.f32.gmra.mxu0 %v656_v3 }
 0x285   :  { %v659_v15 = vmul.f32 %v633_v11, %v633_v11  ;;  %v584_v16 = vadd.f32 %v583_v14, %v2805_v9  ;;  %v634_v18 = vmax.f32 %v582_v12, 0.0 }
 0x286   :  { %v587_v20 = vpop.f32.mrf.mxu1 }
 0x287   :  { %v635_v19 = vmax.f32 %v584_v16, 0.0  ;;  %802 = vmatprep.mubr.f32.mxu0 %v659_v15  ;;  %v588_v21 = vadd.f32 %v587_v20, %v2801_v56  ;;  %v660_v25 = vmul.f32 %v634_v18, %v634_v18 }
 0x288   :  { %803 = vmatmul.mubr.f32.gmra.mxu0 %v658_v17  ;;  %v589_v24 = vpop.f32.mrf.mxu1 }
 0x289   :  { %v661_v23 = vmul.f32 %v635_v19, %v635_v19  ;;  %v590_v26 = vadd.f32 %v589_v24, %v2805_v9  ;;  %v636_v27 = vmax.f32 %v588_v21, 0.0 }
 0x28a   :  { %v593_v28 = vpop.f32.mrf.mxu1 }
 0x28b   :  { %807 = vmatprep.mubr.f32.mxu0 %v661_v23  ;;  %v637_v29 = vmax.f32 %v590_v26, 0.0  ;;  %v594_v30 = vadd.f32 %v593_v28, %v2801_v56  ;;  %v662_v35 = vmul.f32 %v636_v27, %v636_v27  ;;  %v979_v26 = vld [vmem:[#allocation7 + $0x1f8] sm:$0xff]  ;;  %v978_v27 = vld [vmem:[#allocation7 + $0x1f0] sm:$0xff]  ;;  %v977_v28 = vld [vmem:[#allocation7 + $0x1e8] sm:$0xff] }
 0x28c   :  { %808 = vmatmul.mubr.f32.gmra.mxu0 %v660_v25  ;;  %v595_v31 = vpop.f32.mrf.mxu1  ;;  %993 = vmatprep.subr.mxu1 %v979_v26 }
 0x28d   :  { %v663_v33 = vmul.f32 %v637_v29, %v637_v29  ;;  %v596_v34 = vadd.f32 %v595_v31, %v2805_v9  ;;  %v638_v36 = vmax.f32 %v594_v30, 0.0  ;;  %994 = vmatpush1.msra.mxu1 %v978_v27  ;;  %v975_v29 = vld [vmem:[#allocation7 + $0x1d8] sm:$0xff]  ;;  %v974_v30 = vld [vmem:[#allocation7 + $0x1d0] sm:$0xff]  ;;  %v972_v31 = vld [vmem:[#allocation7 + $0x1c0] sm:$0xff] }
 0x28e   :  { %v599_v37 = vpop.f32.mrf.mxu1  ;;  %995 = vmatprep.subr.mxu1 %v977_v28 }
 0x28f   :  { %v639_v38 = vmax.f32 %v596_v34, 0.0  ;;  %v600_v39 = vadd.f32 %v599_v37, %v2801_v56  ;;  %812 = vmatprep.mubr.f32.mxu0 %v663_v33  ;;  %v664_v45 = vmul.f32 %v638_v36, %v638_v36  ;;  %v971_v33 = vld [vmem:[#allocation7 + $0x1b8] sm:$0xff]  ;;  %v970_v34 = vld [vmem:[#allocation7 + $0x1b0] sm:$0xff]  ;;  %v968_v36 = vld [vmem:[#allocation7 + $0x1a0] sm:$0xff] }
 0x290   :  { %v601_v42 = vpop.f32.mrf.mxu1  ;;  %813 = vmatmul.mubr.f32.gmra.mxu0 %v662_v35  ;;  %v969_v35 = vld [vmem:[#allocation7 + $0x1a8] sm:$0xff]  ;;  %v967_v37 = vld [vmem:[#allocation7 + $0x198] sm:$0xff] }
 0x291   :  { %v665_v43 = vmul.f32 %v639_v38, %v639_v38  ;;  %v602_v44 = vadd.f32 %v601_v42, %v2805_v9  ;;  %v640_v46 = vmax.f32 %v600_v39, 0.0  ;;  %v966_v38 = vld [vmem:[#allocation7 + $0x190] sm:$0xff]  ;;  %v965_v39 = vld [vmem:[#allocation7 + $0x188] sm:$0xff]  ;;  %v964_v42 = vld [vmem:[#allocation7 + $0x180] sm:$0xff] }
 0x292   :  { %v605_v48 = vpop.f32.mrf.mxu1 }
 0x293   :  { %v641_v49 = vmax.f32 %v602_v44, 0.0  ;;  %v606_v52 = vadd.f32 %v605_v48, %v2801_v56  ;;  %817 = vmatprep.mubr.f32.mxu0 %v665_v43  ;;  %v666_v57 = vmul.f32 %v640_v46, %v640_v46  ;;  %v963_v43 = vld [vmem:[#allocation7 + $0x178] sm:$0xff]  ;;  %v962_v44 = vld [vmem:[#allocation7 + $0x170] sm:$0xff]  ;;  %v960_v46 = vld [vmem:[#allocation7 + $0x160] sm:$0xff] }
 0x294   :  { %v607_v53 = vpop.f32.mrf.mxu1  ;;  %818 = vmatmul.mubr.f32.gmra.mxu0 %v664_v45  ;;  %v961_v45 = vld [vmem:[#allocation7 + $0x168] sm:$0xff] }
 0x295   :  { %v667_v54 = vmul.f32 %v641_v49, %v641_v49  ;;  %v608_v55 = vadd.f32 %v607_v53, %v2805_v9  ;;  %v642_v59 = vmax.f32 %v606_v52, 0.0  ;;  %v2836_v49 = vld [vmem:[%s3241_s8] ss:$0 sm:$0xff] }
 0x296   :  { %v611_v60 = vpop.f32.mrf.mxu1 }
 0x297   :  { %v643_v61 = vmax.f32 %v608_v55, 0.0  ;;  %v612_v2 = vadd.f32 %v611_v60, %v2801_v56  ;;  %822 = vmatprep.mubr.f32.mxu0 %v667_v54  ;;  %v668_v11 = vmul.f32 %v642_v59, %v642_v59 }
 0x298   :  { %v613_v3 = vpop.f32.mrf.mxu1  ;;  %823 = vmatmul.mubr.f32.gmra.mxu0 %v666_v57 }
 0x299   :  { %v669_v6 = vmul.f32 %v643_v61, %v643_v61  ;;  %v614_v10 = vadd.f32 %v613_v3, %v2805_v9  ;;  %v644_v12 = vmax.f32 %v612_v2, 0.0 }
 0x29a   :  { %v617_v14 = vpop.f32.mrf.mxu1 }
 0x29b   :  { %v645_v15 = vmax.f32 %v614_v10, 0.0  ;;  %v618_v16 = vadd.f32 %v617_v14, %v2801_v56  ;;  %827 = vmatprep.mubr.f32.mxu0 %v669_v6  ;;  %v670_v20 = vmul.f32 %v644_v12, %v644_v12  ;;  %v976_v56 = vld [vmem:[#allocation7 + $0x1e0] sm:$0xff] }
 0x29c   :  { %v619_v17 = vpop.f32.mrf.mxu1  ;;  %828 = vmatmul.mubr.f32.gmra.mxu0 %v668_v11  ;;  %996 = vmatpush1.msra.mxu1 %v976_v56 }
 0x29d   :  { %v671_v18 = vmul.f32 %v645_v15, %v645_v15  ;;  %v620_v19 = vadd.f32 %v619_v17, %v2805_v9  ;;  %v646_v21 = vmax.f32 %v618_v16, 0.0  ;;  %v973_v9 = vld [vmem:[#allocation7 + $0x1c8] sm:$0xff]  ;;  %997 = vmatprep.subr.mxu1 %v975_v29 }
 0x29e   :  { %998 = vmatpush1.msra.mxu1 %v974_v30  ;;  %v959_v30 = vld [vmem:[#allocation7 + $0x158] sm:$0xff] }
 0x29f   :  { %v647_v23 = vmax.f32 %v620_v19, 0.0  ;;  %832 = vmatprep.mubr.f32.mxu0 %v671_v18  ;;  %v672_v25 = vmul.f32 %v646_v21, %v646_v21  ;;  %999 = vmatprep.subr.mxu1 %v973_v9  ;;  %v958_v9 = vld [vmem:[#allocation7 + $0x150] sm:$0xff] }
 0x2a0   :  { %833 = vmatmul.mubr.f32.gmra.mxu0 %v670_v20  ;;  %1000 = vmatpush1.msra.mxu1 %v972_v31  ;;  %v957_v31 = vld [vmem:[#allocation7 + $0x148] sm:$0xff] }
 0x2a1   :  { %v673_v24 = vmul.f32 %v647_v23, %v647_v23  ;;  %1001 = vmatprep.subr.mxu1 %v971_v33 }
 0x2a2   :  { %1002 = vmatpush1.msra.mxu1 %v970_v34 }
 0x2a3   :  { %837 = vmatprep.mubr.f32.mxu0 %v673_v24  ;;  %1003 = vmatprep.subr.mxu1 %v969_v35 }
 0x2a4   :  { %838 = vmatmul.mubr.f32.gmra.mxu0 %v672_v25  ;;  %1004 = vmatpush1.msra.mxu1 %v968_v36 }
 0x2a5   :  { %1005 = vmatprep.subr.mxu1 %v967_v37 }
 0x2a6   :  { %1006 = vmatpush1.msra.mxu1 %v966_v38  ;;  %v956_v38 = vld [vmem:[#allocation7 + $0x140] sm:$0xff] }
 0x2a7   :  { %1007 = vmatprep.subr.mxu1 %v965_v39  ;;  %v955_v39 = vld [vmem:[#allocation7 + $0x138] sm:$0xff] }
 0x2a8   :  { %1008 = vmatpush1.msra.mxu1 %v964_v42  ;;  %v954_v42 = vld [vmem:[#allocation7 + $0x130] sm:$0xff] }
 0x2a9   :  { %1009 = vmatprep.subr.mxu1 %v963_v43 }
 0x2aa   :  { %1010 = vmatpush1.msra.mxu1 %v962_v44 }
 0x2ab   :  { %1011 = vmatprep.subr.mxu1 %v961_v45 }
 0x2ac   :  { %1012 = vmatpush1.msra.mxu1 %v960_v46 }
 0x2ad   :  { %1013 = vmatprep.subr.mxu1 %v959_v30 }
 0x2ae   :  { %1014 = vmatpush1.msra.mxu1 %v958_v9 }
 0x2af   :  { %1015 = vmatprep.subr.mxu1 %v957_v31 }
 0x2b0   :  { %1016 = vmatpush1.msra.mxu1 %v956_v38  ;;  %v1201_v38 = vld [vmem:[#allocation8 + $0x160] sm:$0xff] }
 0x2b1   :  { %1017 = vmatprep.subr.mxu1 %v955_v39  ;;  %v1200_v39 = vld [vmem:[#allocation8 + $0x158] sm:$0xff] }
 0x2b2   :  { %1018 = vmatpush1.msra.mxu1 %v954_v42  ;;  %v1215_v42 = vld [vmem:[#allocation8 + $0x1d0] sm:$0xff] }
 0x334   :  { %v1896_v48 = vpop.f32.mrf.mxu0 }
 0x336   :  { %v1897_v52 = vpop.f32.mrf.mxu0 }
 0x337   :  { %v1898_v53 = vadd.f32 %v1897_v52, %v1896_v48  ;;  %v953_v48 = vld [vmem:[#allocation7 + $0x128] sm:$0xff]  ;;  %v952_v52 = vld [vmem:[#allocation7 + $0x120] sm:$0xff] }
 0x338   :  { %v1899_v54 = vpop.f32.mrf.mxu0  ;;  %1019 = vmatprep.subr.mxu1 %v953_v48  ;;  %v1197_v48 = vld [vmem:[#allocation8 + $0x140] sm:$0xff] }
 0x339   :  { %v780_v55 = vadd.f32 %v1898_v53, %v2836_v49  ;;  %1020 = vmatpush1.msra.mxu1 %v952_v52  ;;  %v1212_v52 = vld [vmem:[#allocation8 + $0x1b8] sm:$0xff] }
 0x33a   :  { %v1900_v57 = vpop.f32.mrf.mxu0 }
 0x33b   :  { %v2840_v59 = vadd.f32 %v780_v55, %v2699_v58  ;;  %v1901_v60 = vadd.f32 %v1900_v57, %v1899_v54 }
 0x33c   :  { %v1902_v61 = vpop.f32.mrf.mxu0 }
 0x33d   :  { %v785_v2 = vadd.f32 %v1901_v60, %v2836_v49  ;;  %v856_v3 = vmul.f32 %v2840_v59, %v2840_v59  ;;  %v951_v60 = vld [vmem:[#allocation7 + $0x118] sm:$0xff] }
 0x33e   :  { %v1903_v6 = vpop.f32.mrf.mxu0  ;;  %1021 = vmatprep.subr.mxu1 %v951_v60  ;;  %v1194_v60 = vld [vmem:[#allocation8 + $0x128] sm:$0xff] }
 0x33f   :  { %v2846_v10 = vadd.f32 %v785_v2, %v2704_v1  ;;  %v1904_v11 = vadd.f32 %v1903_v6, %v1902_v61  ;;  %869 = vadd.xlane.f32.xlu1 %v856_v3  ;;  %v950_v61 = vld [vmem:[#allocation7 + $0x110] sm:$0xff] }
 0x340   :  { %v1905_v12 = vpop.f32.mrf.mxu0  ;;  %1022 = vmatpush1.msra.mxu1 %v950_v61  ;;  %v1209_v61 = vld [vmem:[#allocation8 + $0x1a0] sm:$0xff] }
 0x341   :  { %v790_v14 = vadd.f32 %v1904_v11, %v2836_v49  ;;  %v857_v58 = vmul.f32 %v2846_v10, %v2846_v10  ;;  %v949_v11 = vld [vmem:[#allocation7 + $0x108] sm:$0xff] }
 0x342   :  { %v1906_v15 = vpop.f32.mrf.mxu0  ;;  %1023 = vmatprep.subr.mxu1 %v949_v11 }
 0x343   :  { %v2852_v16 = vadd.f32 %v790_v14, %v2709_v7  ;;  %v1907_v17 = vadd.f32 %v1906_v15, %v1905_v12  ;;  %871 = vadd.xlane.f32.xlu0 %v857_v58 }
 0x344   :  { %v1908_v18 = vpop.f32.mrf.mxu0 }
 0x345   :  { %v795_v19 = vadd.f32 %v1907_v17, %v2836_v49  ;;  %v858_v1 = vmul.f32 %v2852_v16, %v2852_v16 }
 0x346   :  { %v1909_v20 = vpop.f32.mrf.mxu0 }
 0x347   :  { %v2858_v21 = vadd.f32 %v795_v19, %v2714_v13  ;;  %v1910_v23 = vadd.f32 %v1909_v20, %v1908_v18  ;;  %873 = vadd.xlane.f32.xlu1 %v858_v1 }
 0x348   :  { %v1911_v24 = vpop.f32.mrf.mxu0 }
 0x349   :  { %v800_v25 = vadd.f32 %v1910_v23, %v2836_v49  ;;  %v859_v7 = vmul.f32 %v2858_v21, %v2858_v21 }
 0x34a   :  { %v1912_v26 = vpop.f32.mrf.mxu0 }
 0x34b   :  { %v2864_v27 = vadd.f32 %v800_v25, %v2721_v22  ;;  %v1913_v28 = vadd.f32 %v1912_v26, %v1911_v24  ;;  %875 = vadd.xlane.f32.xlu0 %v859_v7 }
 0x34c   :  { %v1914_v56 = vpop.f32.mrf.mxu0 }
 0x34d   :  { %v805_v29 = vadd.f32 %v1913_v28, %v2836_v49  ;;  %v860_v13 = vmul.f32 %v2864_v27, %v2864_v27 }
 0x34e   :  { %v1915_v33 = vpop.f32.mrf.mxu0 }
 0x34f   :  { %v2870_v34 = vadd.f32 %v805_v29, %v2726_v32  ;;  %v1916_v35 = vadd.f32 %v1915_v33, %v1914_v56  ;;  %877 = vadd.xlane.f32.xlu1 %v860_v13  ;;  %v1220_v33 = vld [vmem:[#allocation8 + $0x1f8] sm:$0xff] }
 0x350   :  { %v1917_v36 = vpop.f32.mrf.mxu0  ;;  %1935 = vmatprep.subr.mxu0 %v1220_v33 }
 0x351   :  { %v810_v22 = vadd.f32 %v1916_v35, %v2836_v49  ;;  %v861_v37 = vmul.f32 %v2870_v34, %v2870_v34  ;;  %v1204_v35 = vld [vmem:[#allocation8 + $0x178] sm:$0xff] }
 0x352   :  { %v1918_v44 = vpop.f32.mrf.mxu0  ;;  %1936 = vmatpush3.msra.mxu0 %v1204_v35 }
 0x353   :  { %v2876_v43 = vadd.f32 %v810_v22, %v2734_v41  ;;  %879 = vadd.xlane.f32.xlu0 %v861_v37  ;;  %v1919_v32 = vadd.f32 %v1918_v44, %v1917_v36  ;;  %v1219_v22 = vld [vmem:[#allocation8 + $0x1f0] sm:$0xff]  ;;  %v1218_v36 = vld [vmem:[#allocation8 + $0x1e8] sm:$0xff]  ;;  %v1217_v37 = vld [vmem:[#allocation8 + $0x1e0] sm:$0xff] }
 0x354   :  { %v1920_v45 = vpop.f32.mrf.mxu0  ;;  %1937 = vmatprep.subr.mxu0 %v1219_v22  ;;  %v1199_v44 = vld [vmem:[#allocation8 + $0x150] sm:$0xff] }
 0x355   :  { %v862_v46 = vmul.f32 %v2876_v43, %v2876_v43  ;;  %v815_v53 = vadd.f32 %v1919_v32, %v2836_v49  ;;  %v1214_v32 = vld [vmem:[#allocation8 + $0x1c8] sm:$0xff] }
 0x356   :  { %v1921_v54 = vpop.f32.mrf.mxu0 }
 0x357   :  { %881 = vadd.xlane.f32.xlu1 %v862_v46  ;;  %v2882_v41 = vadd.f32 %v815_v53, %v2742_v50  ;;  %v1922_v55 = vadd.f32 %v1921_v54, %v1920_v45  ;;  %v948_v50 = vld [vmem:[#allocation7 + $0x100] sm:$0xff]  ;;  %v1198_v45 = vld [vmem:[#allocation8 + $0x148] sm:$0xff]  ;;  %v1196_v53 = vld [vmem:[#allocation8 + $0x138] sm:$0xff] }
 0x358   :  { %v1923_v57 = vpop.f32.mrf.mxu0  ;;  %1024 = vmatpush1.msra.mxu1 %v948_v50  ;;  %v1213_v46 = vld [vmem:[#allocation8 + $0x1c0] sm:$0xff]  ;;  %v1211_v54 = vld [vmem:[#allocation8 + $0x1b0] sm:$0xff] }
 0x359   :  { %v820_v2 = vadd.f32 %v1922_v55, %v2836_v49  ;;  %v863_v3 = vmul.f32 %v2882_v41, %v2882_v41  ;;  %2107 = vmatprep.subr.mxu1 %v2480_v0  ;;  %v1195_v55 = vld [vmem:[#allocation8 + $0x130] sm:$0xff] }
 0x35a   :  { %v1924_v6 = vpop.f32.mrf.mxu0 }
 0x35b   :  { %v2888_v12 = vadd.f32 %v820_v2, %v2731_v40  ;;  %v1925_v14 = vadd.f32 %v1924_v6, %v1923_v57  ;;  %883 = vadd.xlane.f32.xlu0 %v863_v3  ;;  %v1210_v57 = vld [vmem:[#allocation8 + $0x1a8] sm:$0xff]  ;;  %v1193_v2 = vld [vmem:[#allocation8 + $0x120] sm:$0xff]  ;;  %v1208_v3 = vld [vmem:[#allocation8 + $0x198] sm:$0xff] }
 0x35c   :  { %v1926_v58 = vpop.f32.mrf.mxu0  ;;  %v1192_v6 = vld [vmem:[#allocation8 + $0x118] sm:$0xff] }
 0x35d   :  { %v825_v15 = vadd.f32 %v1925_v14, %v2836_v49  ;;  %v864_v17 = vmul.f32 %v2888_v12, %v2888_v12 }
 0x35e   :  { %v1927_v18 = vpop.f32.mrf.mxu0 }
 0x35f   :  { %v2895_v19 = vadd.f32 %v825_v15, %v2739_v47  ;;  %v1928_v1 = vadd.f32 %v1927_v18, %v1926_v58  ;;  %885 = vadd.xlane.f32.xlu1 %v864_v17 }
 0x360   :  { %v1929_v40 = vpop.f32.mrf.mxu0 }
 0x361   :  { %v830_v20 = vadd.f32 %v1928_v1, %v2836_v49  ;;  %v865_v23 = vmul.f32 %v2895_v19, %v2895_v19 }
 0x362   :  { %v1930_v24 = vpop.f32.mrf.mxu0 }
 0x363   :  { %v2901_v25 = vadd.f32 %v830_v20, %v2745_v51  ;;  %v1931_v7 = vadd.f32 %v1930_v24, %v1929_v40  ;;  %887 = vadd.xlane.f32.xlu0 %v865_v23 }
 0x364   :  { %v1932_v26 = vpop.f32.mrf.mxu0 }
 0x365   :  { %v835_v28 = vadd.f32 %v1931_v7, %v2836_v49  ;;  %v866_v47 = vmul.f32 %v2901_v25, %v2901_v25 }
 0x366   :  { %v1933_v56 = vpop.f32.mrf.mxu0 }
 0x367   :  { %v2907_v29 = vadd.f32 %v835_v28, %v2755_v62  ;;  %v1934_v13 = vadd.f32 %v1933_v56, %v1932_v26  ;;  %889 = vadd.xlane.f32.xlu1 %v866_v47  ;;  %v1203_v62 = vld [vmem:[#allocation8 + $0x170] sm:$0xff] }
 0x368   :  { %1938 = vmatpush3.msra.mxu0 %v1203_v62 }
 0x369   :  { %v840_v30 = vadd.f32 %v1934_v13, %v2836_v49  ;;  %v867_v51 = vmul.f32 %v2907_v29, %v2907_v29  ;;  %v1202_v49 = vld [vmem:[#allocation8 + $0x168] sm:$0xff]  ;;  %1939 = vmatprep.subr.mxu0 %v1218_v36 }
 0x36a   :  { %1940 = vmatpush3.msra.mxu0 %v1202_v49 }
 0x36b   :  { %v2913_v9 = vadd.f32 %v840_v30, %v2758_v63  ;;  %891 = vadd.xlane.f32.xlu0 %v867_v51  ;;  %v1216_v63 = vld [vmem:[#allocation8 + $0x1d8] sm:$0xff]  ;;  %1941 = vmatprep.subr.mxu0 %v1217_v37 }
 0x36c   :  { %1942 = vmatpush3.msra.mxu0 %v1201_v38 }
 0x36d   :  { %v868_v31 = vmul.f32 %v2913_v9, %v2913_v9  ;;  %1943 = vmatprep.subr.mxu0 %v1216_v63 }
 0x36e   :  { %1944 = vmatpush3.msra.mxu0 %v1200_v39 }
 0x36f   :  { %893 = vadd.xlane.f32.xlu1 %v868_v31  ;;  %1945 = vmatprep.subr.mxu0 %v1215_v42 }
 0x370   :  { %1946 = vmatpush3.msra.mxu0 %v1199_v44 }
 0x371   :  { %1947 = vmatprep.subr.mxu0 %v1214_v32 }
 0x372   :  { %1948 = vmatpush3.msra.mxu0 %v1198_v45 }
 0x373   :  { %1949 = vmatprep.subr.mxu0 %v1213_v46 }
 0x374   :  { %1950 = vmatpush3.msra.mxu0 %v1197_v48 }
 0x375   :  { %1951 = vmatprep.subr.mxu0 %v1212_v52 }
 0x376   :  { %1952 = vmatpush3.msra.mxu0 %v1196_v53 }
 0x377   :  { %1953 = vmatprep.subr.mxu0 %v1211_v54 }
 0x378   :  { %1954 = vmatpush3.msra.mxu0 %v1195_v55 }
 0x379   :  { %1955 = vmatprep.subr.mxu0 %v1210_v57 }
 0x37a   :  { %1956 = vmatpush3.msra.mxu0 %v1194_v60 }
 0x37b   :  { %1957 = vmatprep.subr.mxu0 %v1209_v61 }
 0x37c   :  { %1958 = vmatpush3.msra.mxu0 %v1193_v2 }
 0x37d   :  { %1959 = vmatprep.subr.mxu0 %v1208_v3 }
 0x37e   :  { %1960 = vmatpush3.msra.mxu0 %v1192_v6 }
 0x3c8   :  { %v870_v11 = vpop.xlane.xlu1 %869 }
 0x3c9   :  { %v895_v14 = vmul.f32 0.0078125, %v870_v11 }
 0x3cb   :  { %v908_v50 = vadd.f32 1e-05, %v895_v14 }
 0x3cc   :  { %v872_v58 = vpop.xlane.xlu0 %871 }
 0x3cd   :  { %2291 = vrsqrt.f32 %v908_v50  ;;  %v896_v15 = vmul.f32 0.0078125, %v872_v58 }
 0x3cf   :  { %v909_v17 = vadd.f32 1e-05, %v896_v15 }
 0x3d0   :  { %v874_v18 = vpop.xlane.xlu1 %873 }
 0x3d1   :  { %2293 = vrsqrt.f32 %v909_v17  ;;  %v897_v1 = vmul.f32 0.0078125, %v874_v18 }
 0x3d3   :  { %v910_v40 = vadd.f32 1e-05, %v897_v1 }
 0x3d4   :  { %v876_v20 = vpop.xlane.xlu0 %875 }
 0x3d5   :  { %2295 = vrsqrt.f32 %v910_v40  ;;  %v898_v23 = vmul.f32 0.0078125, %v876_v20 }
 0x3d7   :  { %v911_v24 = vadd.f32 1e-05, %v898_v23 }
 0x3d8   :  { %v878_v7 = vpop.xlane.xlu1 %877 }
 0x3d9   :  { %2297 = vrsqrt.f32 %v911_v24  ;;  %v899_v26 = vmul.f32 0.0078125, %v878_v7 }
 0x3da   :  { %v2292_v28 = vpop.eup %2291 }
 0x3db   :  { %v912_v47 = vadd.f32 1e-05, %v899_v26  ;;  %v934_v56 = vmul.f32 %v2292_v28, %v2840_v59 }
 0x3dc   :  { %v880_v13 = vpop.xlane.xlu0 %879 }
 0x3dd   :  { %2299 = vrsqrt.f32 %v912_v47  ;;  %v900_v30 = vmul.f32 0.0078125, %v880_v13  ;;  %1058 = vmatmul.mubr.f32.vlgmr.msra.gmra.mxu1 %v934_v56 }
 0x3de   :  { %v2294_v51 = vpop.eup %2293  ;;  %1063 = vmatprep.mubr.f32.mxu1 %v2480_v0 }
 0x3df   :  { %v913_v31 = vadd.f32 1e-05, %v900_v30  ;;  %v935_v33 = vmul.f32 %v2294_v51, %v2846_v10  ;;  %v1207_v30 = vld [vmem:[#allocation8 + $0x190] sm:$0xff] }
 0x3e0   :  { %v882_v35 = vpop.xlane.xlu1 %881  ;;  %1961 = vmatprep.subr.mxu0 %v1207_v30  ;;  %v1191_v51 = vld [vmem:[#allocation8 + $0x110] sm:$0xff] }
 0x3e1   :  { %2301 = vrsqrt.f32 %v913_v31  ;;  %v901_v22 = vmul.f32 0.0078125, %v882_v35  ;;  %1064 = vmatmul.mubr.f32.gmra.mxu1 %v935_v33  ;;  %1962 = vmatpush3.msra.mxu0 %v1191_v51  ;;  %v1206_v31 = vld [vmem:[#allocation8 + $0x188] sm:$0xff]  ;;  %v1205_v35 = vld [vmem:[#allocation8 + $0x180] sm:$0xff] }
 0x3e2   :  { %v2296_v62 = vpop.eup %2295  ;;  %1069 = vmatprep.mubr.f32.mxu1 %v2480_v0  ;;  %1963 = vmatprep.subr.mxu0 %v1206_v31  ;;  %v1190_v33 = vld [vmem:[#allocation8 + $0x108] sm:$0xff] }
 0x3e3   :  { %v914_v36 = vadd.f32 1e-05, %v901_v22  ;;  %v936_v49 = vmul.f32 %v2296_v62, %v2852_v16  ;;  %1964 = vmatpush3.msra.mxu0 %v1190_v33  ;;  %v1189_v22 = vld [vmem:[#allocation8 + $0x100] sm:$0xff]  ;;  %v1844_v62 = vld [vmem:[%s3239_s6 + $0x2] sm:$0x3] }
 0x3e4   :  { %v884_v37 = vpop.xlane.xlu0 %883  ;;  %1965 = vmatprep.subr.mxu0 %v1205_v35 }
 0x3e5   :  { %2303 = vrsqrt.f32 %v914_v36  ;;  %1070 = vmatmul.mubr.f32.gmra.mxu1 %v936_v49  ;;  %v902_v63 = vmul.f32 0.0078125, %v884_v37  ;;  %1966 = vmatpush3.msra.mxu0 %v1189_v22  ;;  %v2950_v36 = vrot.slane %v1844_v62, %v471_v5  ;;  %v2954_v49 = vrot.slane %v1844_v62, %v475_v8 }
 0x3e6   :  { %v2298_v38 = vpop.eup %2297  ;;  %1075 = vmatprep.mubr.f32.mxu1 %v2480_v0  ;;  %2178 = vmatprep.subr.mxu0 %v2480_v0 }
 0x3e7   :  { %v937_v39 = vmul.f32 %v2298_v38, %v2858_v21  ;;  %v915_v42 = vadd.f32 1e-05, %v902_v63 }
 0x3e8   :  { %v886_v44 = vpop.xlane.xlu1 %885 }
 0x3e9   :  { %1076 = vmatmul.mubr.f32.gmra.mxu1 %v937_v39  ;;  %2305 = vrsqrt.f32 %v915_v42  ;;  %v903_v45 = vmul.f32 0.0078125, %v886_v44 }
 0x3ea   :  { %v2300_v32 = vpop.eup %2299  ;;  %1081 = vmatprep.mubr.f32.mxu1 %v2480_v0 }
 0x3eb   :  { %v938_v46 = vmul.f32 %v2300_v32, %v2864_v27  ;;  %v916_v48 = vadd.f32 1e-05, %v903_v45 }
 0x3ec   :  { %v888_v52 = vpop.xlane.xlu0 %887 }
 0x3ed   :  { %1082 = vmatmul.mubr.f32.gmra.mxu1 %v938_v46  ;;  %2307 = vrsqrt.f32 %v916_v48  ;;  %v904_v54 = vmul.f32 0.0078125, %v888_v52 }
 0x3ee   :  { %v2302_v53 = vpop.eup %2301  ;;  %1087 = vmatprep.mubr.f32.mxu1 %v2480_v0 }
 0x3ef   :  { %v939_v55 = vmul.f32 %v2302_v53, %v2870_v34  ;;  %v917_v57 = vadd.f32 1e-05, %v904_v54 }
 0x3f0   :  { %v890_v60 = vpop.xlane.xlu1 %889 }
 0x3f1   :  { %1088 = vmatmul.mubr.f32.gmra.mxu1 %v939_v55  ;;  %2309 = vrsqrt.f32 %v917_v57  ;;  %v905_v2 = vmul.f32 0.0078125, %v890_v60 }
 0x3f2   :  { %v2304_v61 = vpop.eup %2303  ;;  %1093 = vmatprep.mubr.f32.mxu1 %v2480_v0 }
 0x3f3   :  { %v940_v3 = vmul.f32 %v2304_v61, %v2876_v43  ;;  %v918_v6 = vadd.f32 1e-05, %v905_v2 }
 0x3f4   :  { %v892_v11 = vpop.xlane.xlu0 %891 }
 0x3f5   :  { %1094 = vmatmul.mubr.f32.gmra.mxu1 %v940_v3  ;;  %2311 = vrsqrt.f32 %v918_v6  ;;  %v906_v14 = vmul.f32 0.0078125, %v892_v11 }
 0x3f6   :  { %1099 = vmatprep.mubr.f32.mxu1 %v2480_v0  ;;  %v2306_v50 = vpop.eup %2305 }
 0x3f7   :  { %v919_v58 = vadd.f32 1e-05, %v906_v14  ;;  %v941_v15 = vmul.f32 %v2306_v50, %v2882_v41 }
 0x3f8   :  { %v894_v17 = vpop.xlane.xlu1 %893 }
 0x3f9   :  { %2313 = vrsqrt.f32 %v919_v58  ;;  %v907_v18 = vmul.f32 0.0078125, %v894_v17  ;;  %1100 = vmatmul.mubr.f32.gmra.mxu1 %v941_v15 }
 0x3fa   :  { %v2308_v1 = vpop.eup %2307  ;;  %1105 = vmatprep.mubr.f32.mxu1 %v2480_v0 }
 0x3fb   :  { %v920_v40 = vadd.f32 1e-05, %v907_v18  ;;  %v942_v20 = vmul.f32 %v2308_v1, %v2888_v12 }
 0x3fd   :  { %2315 = vrsqrt.f32 %v920_v40  ;;  %1106 = vmatmul.mubr.f32.gmra.mxu1 %v942_v20 }
 0x3fe   :  { %v2310_v23 = vpop.eup %2309  ;;  %1111 = vmatprep.mubr.f32.mxu1 %v2480_v0 }
 0x3ff   :  { %v943_v24 = vmul.f32 %v2310_v23, %v2895_v19 }
 0x401   :  { %1112 = vmatmul.mubr.f32.gmra.mxu1 %v943_v24 }
 0x402   :  { %v2312_v7 = vpop.eup %2311  ;;  %1117 = vmatprep.mubr.f32.mxu1 %v2480_v0 }
 0x403   :  { %v944_v26 = vmul.f32 %v2312_v7, %v2901_v25 }
 0x405   :  { %1118 = vmatmul.mubr.f32.gmra.mxu1 %v944_v26 }
 0x406   :  { %v2314_v28 = vpop.eup %2313  ;;  %1123 = vmatprep.mubr.f32.mxu1 %v2480_v0 }
 0x407   :  { %v945_v47 = vmul.f32 %v2314_v28, %v2907_v29 }
 0x409   :  { %1124 = vmatmul.mubr.f32.gmra.mxu1 %v945_v47 }
 0x40a   :  { %v2316_v56 = vpop.eup %2315  ;;  %1129 = vmatprep.mubr.f32.mxu1 %v2480_v0 }
 0x40b   :  { %v946_v13 = vmul.f32 %v2316_v56, %v2913_v9 }
 0x40d   :  { %1130 = vmatmul.mubr.f32.gmra.mxu1 %v946_v13 }
 0x40e   :  { %2139 = vmatprep.mubr.msk.f32.mxu1 %vm2481_vm0, %v2480_v0 }
 0x49d   :  { %v1059_v37 = vpop.f32.mrf.mxu1 }
 0x49e   :  { %v1060_v38 = vadd.f32 %v1059_v37, %v2950_v36 }
 0x49f   :  { %v1061_v63 = vpop.f32.mrf.mxu1 }
 0x4a0   :  { %v1062_v39 = vadd.f32 %v1061_v63, %v2954_v49  ;;  %v1136_v42 = vmax.f32 %v1060_v38, 0.0 }
 0x4a1   :  { %v1065_v44 = vpop.f32.mrf.mxu1 }
 0x4a2   :  { %v1137_v32 = vmax.f32 %v1062_v39, 0.0  ;;  %v1066_v45 = vadd.f32 %v1065_v44, %v2950_v36  ;;  %v1162_v52 = vmul.f32 %v1136_v42, %v1136_v42 }
 0x4a3   :  { %v1067_v46 = vpop.f32.mrf.mxu1 }
 0x4a4   :  { %v1163_v48 = vmul.f32 %v1137_v32, %v1137_v32  ;;  %v1068_v5 = vadd.f32 %v1067_v46, %v2954_v49  ;;  %v1138_v53 = vmax.f32 %v1066_v45, 0.0 }
 0x4a5   :  { %v1071_v4 = vpop.f32.mrf.mxu1 }
 0x4a6   :  { %v1139_v8 = vmax.f32 %v1068_v5, 0.0  ;;  %v1072_v54 = vadd.f32 %v1071_v4, %v2950_v36  ;;  %1293 = vmatprep.mubr.f32.mxu0 %v1163_v48  ;;  %v1164_v61 = vmul.f32 %v1138_v53, %v1138_v53 }
 0x4a7   :  { %v1073_v55 = vpop.f32.mrf.mxu1  ;;  %1294 = vmatmul.mubr.f32.vlgmr.msra.gmra.mxu0 %v1162_v52 }
 0x4a8   :  { %v1165_v57 = vmul.f32 %v1139_v8, %v1139_v8  ;;  %v1074_v60 = vadd.f32 %v1073_v55, %v2954_v49  ;;  %v1140_v2 = vmax.f32 %v1072_v54, 0.0 }
 0x4a9   :  { %v1077_v3 = vpop.f32.mrf.mxu1 }
 0x4aa   :  { %v1141_v6 = vmax.f32 %v1074_v60, 0.0  ;;  %v1078_v11 = vadd.f32 %v1077_v3, %v2950_v36  ;;  %1298 = vmatprep.mubr.f32.mxu0 %v1165_v57  ;;  %v1166_v15 = vmul.f32 %v1140_v2, %v1140_v2 }
 0x4ab   :  { %v1079_v14 = vpop.f32.mrf.mxu1  ;;  %1299 = vmatmul.mubr.f32.gmra.mxu0 %v1164_v61 }
 0x4ac   :  { %v1167_v50 = vmul.f32 %v1141_v6, %v1141_v6  ;;  %v1080_v58 = vadd.f32 %v1079_v14, %v2954_v49  ;;  %v1142_v17 = vmax.f32 %v1078_v11, 0.0 }
 0x4ad   :  { %v1083_v18 = vpop.f32.mrf.mxu1 }
 0x4ae   :  { %v1143_v1 = vmax.f32 %v1080_v58, 0.0  ;;  %v1084_v40 = vadd.f32 %v1083_v18, %v2950_v36  ;;  %1303 = vmatprep.mubr.f32.mxu0 %v1167_v50  ;;  %v1168_v7 = vmul.f32 %v1142_v17, %v1142_v17 }
 0x4af   :  { %v1085_v20 = vpop.f32.mrf.mxu1  ;;  %1304 = vmatmul.mubr.f32.gmra.mxu0 %v1166_v15 }
 0x4b0   :  { %v1169_v23 = vmul.f32 %v1143_v1, %v1143_v1  ;;  %v1086_v24 = vadd.f32 %v1085_v20, %v2954_v49  ;;  %v1144_v26 = vmax.f32 %v1084_v40, 0.0 }
 0x4b1   :  { %v1089_v28 = vpop.f32.mrf.mxu1 }
 0x4b2   :  { %v1145_v47 = vmax.f32 %v1086_v24, 0.0  ;;  %v1090_v56 = vadd.f32 %v1089_v28, %v2950_v36  ;;  %1308 = vmatprep.mubr.f32.mxu0 %v1169_v23  ;;  %v1170_v31 = vmul.f32 %v1144_v26, %v1144_v26 }
 0x4b3   :  { %v1091_v13 = vpop.f32.mrf.mxu1  ;;  %1309 = vmatmul.mubr.f32.gmra.mxu0 %v1168_v7 }
 0x4b4   :  { %v1171_v30 = vmul.f32 %v1145_v47, %v1145_v47  ;;  %v1092_v51 = vadd.f32 %v1091_v13, %v2954_v49  ;;  %v1146_v33 = vmax.f32 %v1090_v56, 0.0 }
 0x4b5   :  { %v1095_v35 = vpop.f32.mrf.mxu1 }
 0x4b6   :  { %v1147_v22 = vmax.f32 %v1092_v51, 0.0  ;;  %v1096_v62 = vadd.f32 %v1095_v35, %v2950_v36  ;;  %1313 = vmatprep.mubr.f32.mxu0 %v1171_v30  ;;  %v1172_v39 = vmul.f32 %v1146_v33, %v1146_v33 }
 0x4b7   :  { %v1097_v37 = vpop.f32.mrf.mxu1  ;;  %1314 = vmatmul.mubr.f32.gmra.mxu0 %v1170_v31 }
 0x4b8   :  { %v1173_v38 = vmul.f32 %v1147_v22, %v1147_v22  ;;  %v1098_v63 = vadd.f32 %v1097_v37, %v2954_v49  ;;  %v1148_v42 = vmax.f32 %v1096_v62, 0.0 }
 0x4b9   :  { %v1101_v32 = vpop.f32.mrf.mxu1 }
 0x4ba   :  { %v1149_v44 = vmax.f32 %v1098_v63, 0.0  ;;  %1318 = vmatprep.mubr.f32.mxu0 %v1173_v38  ;;  %v1102_v45 = vadd.f32 %v1101_v32, %v2950_v36  ;;  %v1174_v5 = vmul.f32 %v1148_v42, %v1148_v42 }
 0x4bb   :  { %1319 = vmatmul.mubr.f32.gmra.mxu0 %v1172_v39  ;;  %v1103_v48 = vpop.f32.mrf.mxu1 }
 0x4bc   :  { %v1175_v46 = vmul.f32 %v1149_v44, %v1149_v44  ;;  %v1104_v52 = vadd.f32 %v1103_v48, %v2954_v49  ;;  %v1150_v53 = vmax.f32 %v1102_v45, 0.0  ;;  %v1475_v48 = vld [vmem:[%s3242_s9 + $0x60] sm:$0xff] }
 0x4bd   :  { %v1107_v4 = vpop.f32.mrf.mxu1 }
 0x4be   :  { %1323 = vmatprep.mubr.f32.mxu0 %v1175_v46  ;;  %v1151_v8 = vmax.f32 %v1104_v52, 0.0  ;;  %v1108_v54 = vadd.f32 %v1107_v4, %v2950_v36  ;;  %v1176_v61 = vmul.f32 %v1150_v53, %v1150_v53  ;;  %v1476_v46 = vld [vmem:[%s3242_s9 + $0x68] sm:$0xff]  ;;  %v1473_v52 = vld [vmem:[%s3242_s9 + $0x50] sm:$0xff]  ;;  %v1471_v4 = vld [vmem:[%s3242_s9 + $0x40] sm:$0xff] }
 0x4bf   :  { %1324 = vmatmul.mubr.f32.gmra.mxu0 %v1174_v5  ;;  %v1109_v55 = vpop.f32.mrf.mxu1  ;;  %v1474_v5 = vld [vmem:[%s3242_s9 + $0x58] sm:$0xff]  ;;  %v1472_v53 = vld [vmem:[%s3242_s9 + $0x48] sm:$0xff] }
 0x4c0   :  { %v1177_v57 = vmul.f32 %v1151_v8, %v1151_v8  ;;  %v1110_v60 = vadd.f32 %v1109_v55, %v2954_v49  ;;  %v1152_v2 = vmax.f32 %v1108_v54, 0.0  ;;  %v1470_v8 = vld [vmem:[%s3242_s9 + $0x38] sm:$0xff]  ;;  %v1469_v54 = vld [vmem:[%s3242_s9 + $0x30] sm:$0xff] }
 0x4c1   :  { %v1113_v3 = vpop.f32.mrf.mxu1 }
 0x4c2   :  { %v1153_v6 = vmax.f32 %v1110_v60, 0.0  ;;  %v1114_v11 = vadd.f32 %v1113_v3, %v2950_v36  ;;  %1328 = vmatprep.mubr.f32.mxu0 %v1177_v57  ;;  %v1178_v15 = vmul.f32 %v1152_v2, %v1152_v2  ;;  %v3027_v57 = vld [vmem:[%s3241_s8 + $0x1] ss:$0 sm:$0xff] }
 0x4c3   :  { %v1115_v14 = vpop.f32.mrf.mxu1  ;;  %1329 = vmatmul.mubr.f32.gmra.mxu0 %v1176_v61 }
 0x4c4   :  { %v1179_v50 = vmul.f32 %v1153_v6, %v1153_v6  ;;  %v1116_v58 = vadd.f32 %v1115_v14, %v2954_v49  ;;  %v1154_v17 = vmax.f32 %v1114_v11, 0.0 }
 0x4c5   :  { %v1119_v18 = vpop.f32.mrf.mxu1 }
 0x4c6   :  { %v1155_v1 = vmax.f32 %v1116_v58, 0.0  ;;  %v1120_v40 = vadd.f32 %v1119_v18, %v2950_v36  ;;  %1333 = vmatprep.mubr.f32.mxu0 %v1179_v50  ;;  %v1180_v7 = vmul.f32 %v1154_v17, %v1154_v17 }
 0x4c7   :  { %v1121_v20 = vpop.f32.mrf.mxu1  ;;  %1334 = vmatmul.mubr.f32.gmra.mxu0 %v1178_v15 }
 0x4c8   :  { %v1181_v23 = vmul.f32 %v1155_v1, %v1155_v1  ;;  %v1122_v24 = vadd.f32 %v1121_v20, %v2954_v49  ;;  %v1156_v26 = vmax.f32 %v1120_v40, 0.0 }
 0x4c9   :  { %v1125_v28 = vpop.f32.mrf.mxu1 }
 0x4ca   :  { %v1157_v47 = vmax.f32 %v1122_v24, 0.0  ;;  %v1126_v56 = vadd.f32 %v1125_v28, %v2950_v36  ;;  %1338 = vmatprep.mubr.f32.mxu0 %v1181_v23  ;;  %v1182_v31 = vmul.f32 %v1156_v26, %v1156_v26 }
 0x4cb   :  { %v1127_v13 = vpop.f32.mrf.mxu1  ;;  %1339 = vmatmul.mubr.f32.gmra.mxu0 %v1180_v7 }
 0x4cc   :  { %v1183_v30 = vmul.f32 %v1157_v47, %v1157_v47  ;;  %v1128_v51 = vadd.f32 %v1127_v13, %v2954_v49  ;;  %v1158_v33 = vmax.f32 %v1126_v56, 0.0 }
 0x4cd   :  { %v1131_v35 = vpop.f32.mrf.mxu1 }
 0x4ce   :  { %v1159_v22 = vmax.f32 %v1128_v51, 0.0  ;;  %v1132_v62 = vadd.f32 %v1131_v35, %v2950_v36  ;;  %1343 = vmatprep.mubr.f32.mxu0 %v1183_v30  ;;  %v1184_v39 = vmul.f32 %v1158_v33, %v1158_v33  ;;  %v1478_v36 = vld [vmem:[%s3242_s9 + $0x78] sm:$0xff] }
 0x4cf   :  { %v1133_v37 = vpop.f32.mrf.mxu1  ;;  %1344 = vmatmul.mubr.f32.gmra.mxu0 %v1182_v31  ;;  %2108 = vmatpush3.msra.mxu1 %v1478_v36 }
 0x4d0   :  { %v1185_v38 = vmul.f32 %v1159_v22, %v1159_v22  ;;  %v1134_v63 = vadd.f32 %v1133_v37, %v2954_v49  ;;  %v1160_v42 = vmax.f32 %v1132_v62, 0.0  ;;  %v1477_v49 = vld [vmem:[%s3242_s9 + $0x70] sm:$0xff]  ;;  %2109 = vmatprep.subr.mxu1 %v2480_v0 }
 0x4d1   :  { %2110 = vmatpush3.msra.mxu1 %v1477_v49 }
 0x4d2   :  { %v1161_v44 = vmax.f32 %v1134_v63, 0.0  ;;  %1348 = vmatprep.mubr.f32.mxu0 %v1185_v38  ;;  %v1186_v45 = vmul.f32 %v1160_v42, %v1160_v42  ;;  %2111 = vmatprep.subr.mxu1 %v2480_v0 }
 0x4d3   :  { %1349 = vmatmul.mubr.f32.gmra.mxu0 %v1184_v39  ;;  %2112 = vmatpush3.msra.mxu1 %v1476_v46 }
 0x4d4   :  { %v1187_v32 = vmul.f32 %v1161_v44, %v1161_v44  ;;  %2113 = vmatprep.subr.mxu1 %v2480_v0 }
 0x4d5   :  { %2114 = vmatpush3.msra.mxu1 %v1475_v48 }
 0x4d6   :  { %1353 = vmatprep.mubr.f32.mxu0 %v1187_v32  ;;  %2115 = vmatprep.subr.mxu1 %v2480_v0  ;;  %v1467_v32 = vld [vmem:[%s3242_s9 + $0x20] sm:$0xff] }
 0x4d7   :  { %1354 = vmatmul.mubr.f32.gmra.mxu0 %v1186_v45  ;;  %2116 = vmatpush3.msra.mxu1 %v1474_v5  ;;  %v1466_v45 = vld [vmem:[%s3242_s9 + $0x18] sm:$0xff]  ;;  %v1465_v5 = vld [vmem:[%s3242_s9 + $0x10] sm:$0xff] }
 0x4d8   :  { %2210 = vmatprep.mubr.msk.f32.mxu0 %vm2481_vm0, %v2480_v0  ;;  %2117 = vmatprep.subr.mxu1 %v2480_v0 }
 0x4d9   :  { %2118 = vmatpush3.msra.mxu1 %v1473_v52 }
 0x4da   :  { %2119 = vmatprep.subr.mxu1 %v2480_v0 }
 0x4db   :  { %2120 = vmatpush3.msra.mxu1 %v1472_v53 }
 0x4dc   :  { %2121 = vmatprep.subr.mxu1 %v2480_v0 }
 0x4dd   :  { %2122 = vmatpush3.msra.mxu1 %v1471_v4 }
 0x4de   :  { %2123 = vmatprep.subr.mxu1 %v2480_v0 }
 0x4df   :  { %2124 = vmatpush3.msra.mxu1 %v1470_v8 }
 0x4e0   :  { %2125 = vmatprep.subr.mxu1 %v2480_v0 }
 0x4e1   :  { %2126 = vmatpush3.msra.mxu1 %v1469_v54  ;;  %v1464_v54 = vld [vmem:[%s3242_s9 + $0x8] sm:$0xff] }
 0x4e2   :  { %2127 = vmatprep.subr.mxu1 %v2480_v0 }
 0x567   :  { %v1967_v55 = vpop.f32.mrf.mxu0 }
 0x569   :  { %v1968_v60 = vpop.f32.mrf.mxu0 }
 0x56a   :  { %v1969_v61 = vadd.f32 %v1968_v60, %v1967_v55 }
 0x56b   :  { %v1970_v2 = vpop.f32.mrf.mxu0 }
 0x56c   :  { %v1296_v3 = vadd.f32 %v1969_v61, %v3027_v57 }
 0x56d   :  { %v1971_v6 = vpop.f32.mrf.mxu0 }
 0x56e   :  { %v1972_v11 = vadd.f32 %v1971_v6, %v1970_v2  ;;  %v3031_v14 = vadd.f32 %v1296_v3, %v2840_v59 }
 0x56f   :  { %v1973_v50 = vpop.f32.mrf.mxu0 }
 0x570   :  { %v1301_v58 = vadd.f32 %v1972_v11, %v3027_v57  ;;  %v1372_v15 = vmul.f32 %v3031_v14, %v3031_v14 }
 0x571   :  { %v1974_v17 = vpop.f32.mrf.mxu0 }
 0x572   :  { %v1975_v18 = vadd.f32 %v1974_v17, %v1973_v50  ;;  %1385 = vadd.xlane.f32.xlu0 %v1372_v15  ;;  %v3037_v1 = vadd.f32 %v1301_v58, %v2846_v10 }
 0x573   :  { %v1976_v40 = vpop.f32.mrf.mxu0 }
 0x574   :  { %v1306_v20 = vadd.f32 %v1975_v18, %v3027_v57  ;;  %v1373_v23 = vmul.f32 %v3037_v1, %v3037_v1 }
 0x575   :  { %v1977_v59 = vpop.f32.mrf.mxu0 }
 0x576   :  { %v1978_v24 = vadd.f32 %v1977_v59, %v1976_v40  ;;  %1387 = vadd.xlane.f32.xlu1 %v1373_v23  ;;  %v3043_v7 = vadd.f32 %v1306_v20, %v2852_v16 }
 0x577   :  { %v1979_v26 = vpop.f32.mrf.mxu0 }
 0x578   :  { %v1311_v28 = vadd.f32 %v1978_v24, %v3027_v57  ;;  %v1374_v47 = vmul.f32 %v3043_v7, %v3043_v7 }
 0x579   :  { %v1980_v10 = vpop.f32.mrf.mxu0 }
 0x57a   :  { %v1981_v56 = vadd.f32 %v1980_v10, %v1979_v26  ;;  %1389 = vadd.xlane.f32.xlu0 %v1374_v47  ;;  %v3049_v13 = vadd.f32 %v1311_v28, %v2858_v21  ;;  %v1468_v21 = vld [vmem:[%s3242_s9 + $0x28] sm:$0xff] }
 0x57b   :  { %v1982_v30 = vpop.f32.mrf.mxu0  ;;  %2128 = vmatpush3.msra.mxu1 %v1468_v21  ;;  %v1648_v21 = vld [vmem:[#allocation10 + $0x30] sm:$0xff] }
 0x57c   :  { %v1316_v51 = vadd.f32 %v1981_v56, %v3027_v57  ;;  %v1375_v31 = vmul.f32 %v3049_v13, %v3049_v13  ;;  %2129 = vmatprep.subr.mxu1 %v2480_v0 }
 0x57d   :  { %v1983_v16 = vpop.f32.mrf.mxu0  ;;  %2130 = vmatpush3.msra.mxu1 %v1467_v32 }
 0x57e   :  { %v1984_v33 = vadd.f32 %v1983_v16, %v1982_v30  ;;  %1391 = vadd.xlane.f32.xlu1 %v1375_v31  ;;  %v3055_v35 = vadd.f32 %v1316_v51, %v2864_v27  ;;  %2131 = vmatprep.subr.mxu1 %v2480_v0  ;;  %v1657_v31 = vld [vmem:[#allocation10 + $0x78] sm:$0xff]  ;;  %v1656_v16 = vld [vmem:[#allocation10 + $0x70] sm:$0xff] }
 0x57f   :  { %v1985_v22 = vpop.f32.mrf.mxu0  ;;  %2132 = vmatpush3.msra.mxu1 %v1466_v45  ;;  %2179 = vmatpush3.msra.mxu0 %v1657_v31 }
 0x580   :  { %v1321_v62 = vadd.f32 %v1984_v33, %v3027_v57  ;;  %v1376_v37 = vmul.f32 %v3055_v35, %v3055_v35  ;;  %2133 = vmatprep.subr.mxu1 %v2480_v0  ;;  %2180 = vmatprep.subr.mxu0 %v2480_v0  ;;  %v1653_v33 = vld [vmem:[#allocation10 + $0x58] sm:$0xff] }
 0x581   :  { %v1986_v38 = vpop.f32.mrf.mxu0  ;;  %2134 = vmatpush3.msra.mxu1 %v1465_v5  ;;  %2181 = vmatpush3.msra.mxu0 %v1656_v16 }
 0x582   :  { %v1987_v63 = vadd.f32 %v1986_v38, %v1985_v22  ;;  %1393 = vadd.xlane.f32.xlu0 %v1376_v37  ;;  %v3064_v39 = vadd.f32 %v1321_v62, %v2870_v34  ;;  %2135 = vmatprep.subr.mxu1 %v2480_v0  ;;  %v1651_v22 = vld [vmem:[#allocation10 + $0x48] sm:$0xff]  ;;  %v1650_v62 = vld [vmem:[#allocation10 + $0x40] sm:$0xff]  ;;  %v1649_v37 = vld [vmem:[#allocation10 + $0x38] sm:$0xff] }
 0x583   :  { %v1988_v42 = vpop.f32.mrf.mxu0  ;;  %2136 = vmatpush3.msra.mxu1 %v1464_v54  ;;  %2182 = vmatprep.subr.mxu0 %v2480_v0  ;;  %v1647_v38 = vld [vmem:[#allocation10 + $0x28] sm:$0xff] }
 0x584   :  { %v1326_v27 = vadd.f32 %v1987_v63, %v3027_v57  ;;  %v1377_v44 = vmul.f32 %v3064_v39, %v3064_v39  ;;  %2137 = vmatprep.subr.mxu1 %v2480_v0  ;;  %v1646_v63 = vld [vmem:[#allocation10 + $0x20] sm:$0xff] }
 0x585   :  { %v1989_v36 = vpop.f32.mrf.mxu0 }
 0x586   :  { %1395 = vadd.xlane.f32.xlu1 %v1377_v44  ;;  %v3077_v34 = vadd.f32 %v1326_v27, %v2876_v43  ;;  %v1990_v49 = vadd.f32 %v1989_v36, %v1988_v42  ;;  %v1645_v27 = vld [vmem:[#allocation10 + $0x18] sm:$0xff]  ;;  %v1644_v42 = vld [vmem:[#allocation10 + $0x10] sm:$0xff] }
 0x587   :  { %v1991_v46 = vpop.f32.mrf.mxu0 }
 0x588   :  { %v1378_v48 = vmul.f32 %v3077_v34, %v3077_v34  ;;  %v1331_v52 = vadd.f32 %v1990_v49, %v3027_v57 }
 0x589   :  { %v1992_v53 = vpop.f32.mrf.mxu0 }
 0x58a   :  { %1397 = vadd.xlane.f32.xlu0 %v1378_v48  ;;  %v1993_v43 = vadd.f32 %v1992_v53, %v1991_v46  ;;  %v3089_v4 = vadd.f32 %v1331_v52, %v2882_v41  ;;  %v1463_v41 = vld [vmem:[%s3242_s9] sm:$0xff] }
 0x58b   :  { %v1994_v8 = vpop.f32.mrf.mxu0  ;;  %2138 = vmatpush3.msra.mxu1 %v1463_v41 }
 0x58c   :  { %v1336_v55 = vadd.f32 %v1993_v43, %v3027_v57  ;;  %v1379_v60 = vmul.f32 %v3089_v4, %v3089_v4 }
 0x58d   :  { %v1995_v61 = vpop.f32.mrf.mxu0 }
 0x58e   :  { %v1996_v2 = vadd.f32 %v1995_v61, %v1994_v8  ;;  %1399 = vadd.xlane.f32.xlu1 %v1379_v60  ;;  %v3099_v3 = vadd.f32 %v1336_v55, %v2888_v12 }
 0x58f   :  { %v1997_v6 = vpop.f32.mrf.mxu0 }
 0x590   :  { %v1341_v11 = vadd.f32 %v1996_v2, %v3027_v57  ;;  %v1380_v50 = vmul.f32 %v3099_v3, %v3099_v3 }
 0x591   :  { %v1998_v58 = vpop.f32.mrf.mxu0 }
 0x592   :  { %v1999_v15 = vadd.f32 %v1998_v58, %v1997_v6  ;;  %1401 = vadd.xlane.f32.xlu0 %v1380_v50  ;;  %v3108_v17 = vadd.f32 %v1341_v11, %v2895_v19 }
 0x593   :  { %v2000_v18 = vpop.f32.mrf.mxu0 }
 0x594   :  { %v1346_v12 = vadd.f32 %v1999_v15, %v3027_v57  ;;  %v1381_v40 = vmul.f32 %v3108_v17, %v3108_v17 }
 0x595   :  { %v2001_v20 = vpop.f32.mrf.mxu0 }
 0x596   :  { %v2002_v23 = vadd.f32 %v2001_v20, %v2000_v18  ;;  %1403 = vadd.xlane.f32.xlu1 %v1381_v40  ;;  %v3114_v59 = vadd.f32 %v1346_v12, %v2901_v25 }
 0x597   :  { %v2003_v24 = vpop.f32.mrf.mxu0 }
 0x598   :  { %v1351_v26 = vadd.f32 %v2002_v23, %v3027_v57  ;;  %v1382_v28 = vmul.f32 %v3114_v59, %v3114_v59 }
 0x599   :  { %v2004_v19 = vpop.f32.mrf.mxu0 }
 0x59a   :  { %v2005_v47 = vadd.f32 %v2004_v19, %v2003_v24  ;;  %1405 = vadd.xlane.f32.xlu0 %v1382_v28  ;;  %v3120_v10 = vadd.f32 %v1351_v26, %v2907_v29  ;;  %v1655_v29 = vld [vmem:[#allocation10 + $0x68] sm:$0xff] }
 0x59b   :  { %2183 = vmatpush3.msra.mxu0 %v1655_v29 }
 0x59c   :  { %v1356_v56 = vadd.f32 %v2005_v47, %v3027_v57  ;;  %v1383_v30 = vmul.f32 %v3120_v10, %v3120_v10  ;;  %v1654_v57 = vld [vmem:[#allocation10 + $0x60] sm:$0xff]  ;;  %2184 = vmatprep.subr.mxu0 %v2480_v0 }
 0x59d   :  { %2185 = vmatpush3.msra.mxu0 %v1654_v57 }
 0x59e   :  { %1407 = vadd.xlane.f32.xlu1 %v1383_v30  ;;  %v3126_v25 = vadd.f32 %v1356_v56, %v2913_v9  ;;  %2186 = vmatprep.subr.mxu0 %v2480_v0  ;;  %v1652_v9 = vld [vmem:[#allocation10 + $0x50] sm:$0xff] }
 0x59f   :  { %2187 = vmatpush3.msra.mxu0 %v1653_v33 }
 0x5a0   :  { %v1384_v51 = vmul.f32 %v3126_v25, %v3126_v25  ;;  %2188 = vmatprep.subr.mxu0 %v2480_v0 }
 0x5a1   :  { %2189 = vmatpush3.msra.mxu0 %v1652_v9 }
 0x5a2   :  { %1409 = vadd.xlane.f32.xlu0 %v1384_v51  ;;  %2190 = vmatprep.subr.mxu0 %v2480_v0 }
 0x5a3   :  { %2191 = vmatpush3.msra.mxu0 %v1651_v22 }
 0x5a4   :  { %2192 = vmatprep.subr.mxu0 %v2480_v0 }
 0x5a5   :  { %2193 = vmatpush3.msra.mxu0 %v1650_v62 }
 0x5a6   :  { %2194 = vmatprep.subr.mxu0 %v2480_v0 }
 0x5a7   :  { %2195 = vmatpush3.msra.mxu0 %v1649_v37 }
 0x5a8   :  { %2196 = vmatprep.subr.mxu0 %v2480_v0 }
 0x5a9   :  { %2197 = vmatpush3.msra.mxu0 %v1648_v21 }
 0x5aa   :  { %2198 = vmatprep.subr.mxu0 %v2480_v0 }
 0x5ab   :  { %2199 = vmatpush3.msra.mxu0 %v1647_v38 }
 0x5ac   :  { %2200 = vmatprep.subr.mxu0 %v2480_v0 }
 0x5ad   :  { %2201 = vmatpush3.msra.mxu0 %v1646_v63 }
 0x5ae   :  { %2202 = vmatprep.subr.mxu0 %v2480_v0 }
 0x5af   :  { %2203 = vmatpush3.msra.mxu0 %v1645_v27 }
 0x5b0   :  { %2204 = vmatprep.subr.mxu0 %v2480_v0 }
 0x5b1   :  { %2205 = vmatpush3.msra.mxu0 %v1644_v42 }
 0x5b2   :  { %2206 = vmatprep.subr.mxu0 %v2480_v0 }
 0x5fb   :  { %v1386_v44 = vpop.xlane.xlu0 %1385 }
 0x5fc   :  { %v1411_v32 = vmul.f32 0.0078125, %v1386_v44 }
 0x5fe   :  { %v1424_v45 = vadd.f32 1e-05, %v1411_v32 }
 0x5ff   :  { %v1388_v36 = vpop.xlane.xlu1 %1387 }
 0x600   :  { %2317 = vrsqrt.f32 %v1424_v45  ;;  %v1412_v49 = vmul.f32 0.0078125, %v1388_v36 }
 0x602   :  { %v1425_v46 = vadd.f32 1e-05, %v1412_v49 }
 0x603   :  { %v1390_v48 = vpop.xlane.xlu0 %1389 }
 0x604   :  { %2319 = vrsqrt.f32 %v1425_v46  ;;  %v1413_v5 = vmul.f32 0.0078125, %v1390_v48  ;;  %v1643_v46 = vld [vmem:[#allocation10 + $0x8] sm:$0xff] }
 0x605   :  { %2207 = vmatpush3.msra.mxu0 %v1643_v46  ;;  %v3185_v48 = vld [vmem:[%s3243_s10] ss:$0 sm:$0xff] }
 0x606   :  { %v1426_v52 = vadd.f32 1e-05, %v1413_v5  ;;  %2208 = vmatprep.subr.mxu0 %v2480_v0 }
 0x607   :  { %v1392_v53 = vpop.xlane.xlu1 %1391 }
 0x608   :  { %2321 = vrsqrt.f32 %v1426_v52  ;;  %v1414_v43 = vmul.f32 0.0078125, %v1392_v53 }
 0x60a   :  { %v1427_v8 = vadd.f32 1e-05, %v1414_v43 }
 0x60b   :  { %v1394_v54 = vpop.xlane.xlu0 %1393 }
 0x60c   :  { %2323 = vrsqrt.f32 %v1427_v8  ;;  %v1415_v55 = vmul.f32 0.0078125, %v1394_v54 }
 0x60d   :  { %v2318_v60 = vpop.eup %2317 }
 0x60e   :  { %v1428_v61 = vadd.f32 1e-05, %v1415_v55  ;;  %v1450_v2 = vmul.f32 %v2318_v60, %v3031_v14 }
 0x60f   :  { %v1396_v41 = vpop.xlane.xlu1 %1395 }
 0x610   :  { %2325 = vrsqrt.f32 %v1428_v61  ;;  %v1416_v6 = vmul.f32 0.0078125, %v1396_v41  ;;  %2140 = vmatmul.mubr.f32.vlgmr.msra.gmra.mxu1 %v1450_v2 }
 0x611   :  { %v2320_v11 = vpop.eup %2319  ;;  %2142 = vmatprep.mubr.msk.f32.mxu1 %vm2481_vm0, %v2480_v0 }
 0x612   :  { %v1429_v50 = vadd.f32 1e-05, %v1416_v6  ;;  %v1451_v58 = vmul.f32 %v2320_v11, %v3037_v1 }
 0x613   :  { %v1398_v15 = vpop.xlane.xlu0 %1397 }
 0x614   :  { %2327 = vrsqrt.f32 %v1429_v50  ;;  %v1417_v18 = vmul.f32 0.0078125, %v1398_v15  ;;  %2143 = vmatmul.mubr.f32.gmra.mxu1 %v1451_v58 }
 0x615   :  { %v2322_v12 = vpop.eup %2321  ;;  %2145 = vmatprep.mubr.msk.f32.mxu1 %vm2481_vm0, %v2480_v0 }
 0x616   :  { %v1430_v14 = vadd.f32 1e-05, %v1417_v18  ;;  %v1452_v40 = vmul.f32 %v2322_v12, %v3043_v7 }
 0x617   :  { %v1400_v20 = vpop.xlane.xlu1 %1399 }
 0x618   :  { %2329 = vrsqrt.f32 %v1430_v14  ;;  %2146 = vmatmul.mubr.f32.gmra.mxu1 %v1452_v40  ;;  %v1418_v24 = vmul.f32 0.0078125, %v1400_v20 }
 0x619   :  { %v2324_v23 = vpop.eup %2323  ;;  %2148 = vmatprep.mubr.msk.f32.mxu1 %vm2481_vm0, %v2480_v0 }
 0x61a   :  { %v1453_v1 = vmul.f32 %v2324_v23, %v3049_v13  ;;  %v1431_v26 = vadd.f32 1e-05, %v1418_v24 }
 0x61b   :  { %v1402_v28 = vpop.xlane.xlu0 %1401 }
 0x61c   :  { %2149 = vmatmul.mubr.f32.gmra.mxu1 %v1453_v1  ;;  %2331 = vrsqrt.f32 %v1431_v26  ;;  %v1419_v47 = vmul.f32 0.0078125, %v1402_v28 }
 0x61d   :  { %v2326_v19 = vpop.eup %2325  ;;  %2151 = vmatprep.mubr.msk.f32.mxu1 %vm2481_vm0, %v2480_v0 }
 0x61e   :  { %v1454_v7 = vmul.f32 %v2326_v19, %v3055_v35  ;;  %v1432_v56 = vadd.f32 1e-05, %v1419_v47 }
 0x61f   :  { %v1404_v30 = vpop.xlane.xlu1 %1403 }
 0x620   :  { %2152 = vmatmul.mubr.f32.gmra.mxu1 %v1454_v7  ;;  %2333 = vrsqrt.f32 %v1432_v56  ;;  %v1420_v31 = vmul.f32 0.0078125, %v1404_v30 }
 0x621   :  { %v2328_v51 = vpop.eup %2327  ;;  %2154 = vmatprep.mubr.msk.f32.mxu1 %vm2481_vm0, %v2480_v0 }
 0x622   :  { %v1455_v13 = vmul.f32 %v2328_v51, %v3064_v39  ;;  %v1433_v16 = vadd.f32 1e-05, %v1420_v31 }
 0x623   :  { %v1406_v29 = vpop.xlane.xlu0 %1405 }
 0x624   :  { %2155 = vmatmul.mubr.f32.gmra.mxu1 %v1455_v13  ;;  %2335 = vrsqrt.f32 %v1433_v16  ;;  %v1421_v33 = vmul.f32 0.0078125, %v1406_v29 }
 0x625   :  { %v2330_v57 = vpop.eup %2329  ;;  %2157 = vmatprep.mubr.msk.f32.mxu1 %vm2481_vm0, %v2480_v0 }
 0x626   :  { %v1456_v35 = vmul.f32 %v2330_v57, %v3077_v34  ;;  %v1434_v9 = vadd.f32 1e-05, %v1421_v33 }
 0x627   :  { %v1408_v22 = vpop.xlane.xlu1 %1407 }
 0x628   :  { %2158 = vmatmul.mubr.f32.gmra.mxu1 %v1456_v35  ;;  %2337 = vrsqrt.f32 %v1434_v9  ;;  %v1422_v62 = vmul.f32 0.0078125, %v1408_v22 }
 0x629   :  { %2160 = vmatprep.mubr.msk.f32.mxu1 %vm2481_vm0, %v2480_v0  ;;  %v2332_v39 = vpop.eup %2331 }
 0x62a   :  { %v1435_v37 = vadd.f32 1e-05, %v1422_v62  ;;  %v1457_v21 = vmul.f32 %v2332_v39, %v3089_v4 }
 0x62b   :  { %v1410_v38 = vpop.xlane.xlu0 %1409 }
 0x62c   :  { %2339 = vrsqrt.f32 %v1435_v37  ;;  %v1423_v63 = vmul.f32 0.0078125, %v1410_v38  ;;  %2161 = vmatmul.mubr.f32.gmra.mxu1 %v1457_v21 }
 0x62d   :  { %v2334_v27 = vpop.eup %2333  ;;  %2163 = vmatprep.mubr.msk.f32.mxu1 %vm2481_vm0, %v2480_v0 }
 0x62e   :  { %v1436_v34 = vadd.f32 1e-05, %v1423_v63  ;;  %v1458_v42 = vmul.f32 %v2334_v27, %v3099_v3 }
 0x630   :  { %2341 = vrsqrt.f32 %v1436_v34  ;;  %2164 = vmatmul.mubr.f32.gmra.mxu1 %v1458_v42 }
 0x631   :  { %v2336_v44 = vpop.eup %2335  ;;  %2166 = vmatprep.mubr.msk.f32.mxu1 %vm2481_vm0, %v2480_v0 }
 0x632   :  { %v1459_v32 = vmul.f32 %v2336_v44, %v3108_v17 }
 0x634   :  { %2167 = vmatmul.mubr.f32.gmra.mxu1 %v1459_v32 }
 0x635   :  { %v2338_v4 = vpop.eup %2337  ;;  %2169 = vmatprep.mubr.msk.f32.mxu1 %vm2481_vm0, %v2480_v0 }
 0x636   :  { %v1460_v45 = vmul.f32 %v2338_v4, %v3114_v59  ;;  %v1642_v59 = vld [vmem:[#allocation10] sm:$0xff] }
 0x637   :  { %2209 = vmatpush3.msra.mxu0 %v1642_v59 }
 0x638   :  { %2170 = vmatmul.mubr.f32.gmra.mxu1 %v1460_v45 }
 0x639   :  { %v2340_v36 = vpop.eup %2339  ;;  %2172 = vmatprep.mubr.msk.f32.mxu1 %vm2481_vm0, %v2480_v0 }
 0x63a   :  { %v1461_v3 = vmul.f32 %v2340_v36, %v3120_v10 }
 0x63c   :  { %2173 = vmatmul.mubr.f32.gmra.mxu1 %v1461_v3 }
 0x63d   :  { %v2342_v49 = vpop.eup %2341  ;;  %2175 = vmatprep.mubr.msk.f32.mxu1 %vm2481_vm0, %v2480_v0 }
 0x63e   :  { %v1462_v17 = vmul.f32 %v2342_v49, %v3126_v25 }
 0x640   :  { %2176 = vmatmul.mubr.f32.gmra.mxu1 %v1462_v17 }
 0x6d0   :  { %v1552_v10 = vpop.f32.mrf.mxu1 }
 0x6d1   :  { %v1553_v5 = vadd.f32 %v3185_v48, %v1552_v10 }
 0x6d2   :  { %v2141_v52 = vpop.f32.mrf.mxu1 }
 0x6d3   :  { %v1616_v53 = vmax.f32 %v1553_v5, 0.0 }
 0x6d4   :  { %v1557_v43 = vpop.f32.mrf.mxu1 }
 0x6d5   :  { %v1629_v8 = vmul.f32 %v1616_v53, %v1616_v53  ;;  %v1558_v25 = vadd.f32 %v3185_v48, %v1557_v43  ;;  %v1848_v53 = vld [vmem:[%s3245_s12] ss:$0 sm:$0xff]  ;;  %s2482_s12 = smov [#allocation11]  }
 0x6d6   :  { %v2144_v54 = vpop.f32.mrf.mxu1  ;;  %s1813_s11 = sshll.u32 %s2482_s12, 4  ;;  %s1814_s11 = int_to_ptr.vmem [resolvable:$true] %s1813_s11 }
 0x6d7   :  { %v1617_v55 = vmax.f32 %v1558_v25, 0.0  ;;  %2211 = vmatmul.mubr.f32.vlgmr.msra.gmra.mxu0 %v1629_v8  ;;  %s2443_s18 = scalar_lea.vmem %s1814_s11, 1664  ;;  %p2448_p12 = scmp.lt.s32.totalorder %s1814_s11, %s1814_s11 }
 0x6d8   :  { %v1562_v60 = vpop.f32.mrf.mxu1  ;;  %2213 = vmatprep.mubr.msk.f32.mxu0 %vm2481_vm0, %v2480_v0  ;;  %p2444_p11 = scmp.ne.s32.totalorder %s1814_s11, %s2443_s18  ;;  %p2449_p13 = scmp.lt.s32.totalorder %s2443_s18, %s2443_s18 }
 0x6d9   :  { %v1630_v61 = vmul.f32 %v1617_v55, %v1617_v55  ;;  %v1563_v2 = vadd.f32 %v3185_v48, %v1562_v60 }
 0x6da   :  { %v2147_v41 = vpop.f32.mrf.mxu1  ;;  %p2450_p0 = por %p2449_p13, %p2448_p12 }
 0x6db   :  { %v1618_v6 = vmax.f32 %v1563_v2, 0.0  ;;  %2214 = vmatmul.mubr.f32.gmra.mxu0 %v1630_v61 }
 0x6dc   :  { %v1567_v11 = vpop.f32.mrf.mxu1  ;;  %2216 = vmatprep.mubr.msk.f32.mxu0 %vm2481_vm0, %v2480_v0  ;;  %p2451_p1 = pnand %p2450_p0, %p2444_p11 }
 0x6dd   :  { %v1631_v50 = vmul.f32 %v1618_v6, %v1618_v6  ;;  %v1568_v58 = vadd.f32 %v3185_v48, %v1567_v11 }
 0x6de   :  { %v2150_v15 = vpop.f32.mrf.mxu1 }
 0x6df   :  { %v1619_v18 = vmax.f32 %v1568_v58, 0.0  ;;  %2217 = vmatmul.mubr.f32.gmra.mxu0 %v1631_v50 }
 0x6e0   :  { %v1572_v12 = vpop.f32.mrf.mxu1  ;;  %2219 = vmatprep.mubr.msk.f32.mxu0 %vm2481_vm0, %v2480_v0 }
 0x6e1   :  { %v1632_v14 = vmul.f32 %v1619_v18, %v1619_v18  ;;  %v1573_v40 = vadd.f32 %v3185_v48, %v1572_v12 }
 0x6e2   :  { %v2153_v20 = vpop.f32.mrf.mxu1 }
 0x6e3   :  { %v1620_v23 = vmax.f32 %v1573_v40, 0.0  ;;  %2220 = vmatmul.mubr.f32.gmra.mxu0 %v1632_v14 }
 0x6e4   :  { %v1577_v24 = vpop.f32.mrf.mxu1  ;;  %2222 = vmatprep.mubr.msk.f32.mxu0 %vm2481_vm0, %v2480_v0 }
 0x6e5   :  { %v1633_v1 = vmul.f32 %v1620_v23, %v1620_v23  ;;  %v1578_v26 = vadd.f32 %v3185_v48, %v1577_v24 }
 0x6e6   :  { %v2156_v28 = vpop.f32.mrf.mxu1 }
 0x6e7   :  { %v1621_v19 = vmax.f32 %v1578_v26, 0.0  ;;  %2223 = vmatmul.mubr.f32.gmra.mxu0 %v1633_v1 }
 0x6e8   :  { %v1582_v47 = vpop.f32.mrf.mxu1  ;;  %2225 = vmatprep.mubr.msk.f32.mxu0 %vm2481_vm0, %v2480_v0 }
 0x6e9   :  { %v1634_v7 = vmul.f32 %v1621_v19, %v1621_v19  ;;  %v1583_v56 = vadd.f32 %v3185_v48, %v1582_v47 }
 0x6ea   :  { %v2159_v30 = vpop.f32.mrf.mxu1 }
 0x6eb   :  { %v1622_v51 = vmax.f32 %v1583_v56, 0.0  ;;  %2226 = vmatmul.mubr.f32.gmra.mxu0 %v1634_v7 }
 0x6ec   :  { %2228 = vmatprep.mubr.msk.f32.mxu0 %vm2481_vm0, %v2480_v0  ;;  %v1587_v13 = vpop.f32.mrf.mxu1 }
 0x6ed   :  { %v1635_v31 = vmul.f32 %v1622_v51, %v1622_v51  ;;  %v1588_v16 = vadd.f32 %v3185_v48, %v1587_v13 }
 0x6ee   :  { %v2162_v29 = vpop.f32.mrf.mxu1 }
 0x6ef   :  { %2229 = vmatmul.mubr.f32.gmra.mxu0 %v1635_v31  ;;  %v1623_v57 = vmax.f32 %v1588_v16, 0.0 }
 0x6f0   :  { %2231 = vmatprep.mubr.msk.f32.mxu0 %vm2481_vm0, %v2480_v0  ;;  %v1592_v33 = vpop.f32.mrf.mxu1 }
 0x6f1   :  { %v1636_v35 = vmul.f32 %v1623_v57, %v1623_v57  ;;  %v1593_v9 = vadd.f32 %v3185_v48, %v1592_v33 }
 0x6f2   :  { %v2165_v22 = vpop.f32.mrf.mxu1 }
 0x6f3   :  { %v1624_v62 = vmax.f32 %v1593_v9, 0.0  ;;  %2232 = vmatmul.mubr.f32.gmra.mxu0 %v1636_v35 }
 0x6f4   :  { %v1597_v39 = vpop.f32.mrf.mxu1  ;;  %2234 = vmatprep.mubr.msk.f32.mxu0 %vm2481_vm0, %v2480_v0 }
 0x6f5   :  { %v1637_v37 = vmul.f32 %v1624_v62, %v1624_v62  ;;  %v1598_v21 = vadd.f32 %v3185_v48, %v1597_v39 }
 0x6f6   :  { %v2168_v38 = vpop.f32.mrf.mxu1 }
 0x6f7   :  { %v1625_v63 = vmax.f32 %v1598_v21, 0.0  ;;  %2235 = vmatmul.mubr.f32.gmra.mxu0 %v1637_v37 }
 0x6f8   :  { %v1602_v27 = vpop.f32.mrf.mxu1  ;;  %2237 = vmatprep.mubr.msk.f32.mxu0 %vm2481_vm0, %v2480_v0 }
 0x6f9   :  { %v1638_v34 = vmul.f32 %v1625_v63, %v1625_v63  ;;  %v1603_v42 = vadd.f32 %v3185_v48, %v1602_v27 }
 0x6fa   :  { %v2171_v44 = vpop.f32.mrf.mxu1 }
 0x6fb   :  { %v1626_v32 = vmax.f32 %v1603_v42, 0.0  ;;  %2238 = vmatmul.mubr.f32.gmra.mxu0 %v1638_v34 }
 0x6fc   :  { %v1607_v4 = vpop.f32.mrf.mxu1  ;;  %2240 = vmatprep.mubr.msk.f32.mxu0 %vm2481_vm0, %v2480_v0 }
 0x6fd   :  { %v1639_v45 = vmul.f32 %v1626_v32, %v1626_v32  ;;  %v1608_v36 = vadd.f32 %v3185_v48, %v1607_v4 }
 0x6fe   :  { %v2174_v3 = vpop.f32.mrf.mxu1 }
 0x6ff   :  { %v1627_v49 = vmax.f32 %v1608_v36, 0.0  ;;  %2241 = vmatmul.mubr.f32.gmra.mxu0 %v1639_v45 }
 0x700   :  { %v1612_v17 = vpop.f32.mrf.mxu1  ;;  %2243 = vmatprep.mubr.msk.f32.mxu0 %vm2481_vm0, %v2480_v0 }
 0x701   :  { %v1640_v46 = vmul.f32 %v1627_v49, %v1627_v49  ;;  %v1613_v59 = vadd.f32 %v3185_v48, %v1612_v17 }
 0x702   :  { %v2177_v10 = vpop.f32.mrf.mxu1 }
 0x703   :  { %v1628_v5 = vmax.f32 %v1613_v59, 0.0  ;;  %2244 = vmatmul.mubr.f32.gmra.mxu0 %v1640_v46 }
 0x704   :  { %2246 = vmatprep.mubr.msk.f32.mxu0 %vm2481_vm0, %v2480_v0 }
 0x705   :  { %v1641_v52 = vmul.f32 %v1628_v5, %v1628_v5 }
 0x707   :  { %2247 = vmatmul.mubr.f32.gmra.mxu0 %v1641_v52 }
 0x797   :  { %v1731_v43 = vpop.f32.mrf.mxu0 }
 0x798   :  { %v1732_v8 = vadd.f32 %v1848_v53, %v1731_v43 }
 0x799   :  { %v2212_v25 = vpop.f32.mrf.mxu0 }
 0x79a   :  { %1795 = vst [vmem:[#allocation11] sm:$0xff] %v1732_v8 }
 0x79b   :  { %v1736_v54 = vpop.f32.mrf.mxu0 }
 0x79c   :  { %v1737_v55 = vadd.f32 %v1848_v53, %v1736_v54 }
 0x79d   :  { %v2215_v60 = vpop.f32.mrf.mxu0 }
 0x79e   :  { %1796 = vst [vmem:[#allocation11 + $0x8] sm:$0xff] %v1737_v55 }
 0x79f   :  { %v1741_v48 = vpop.f32.mrf.mxu0 }
 0x7a0   :  { %v1742_v61 = vadd.f32 %v1848_v53, %v1741_v48 }
 0x7a1   :  { %v2218_v2 = vpop.f32.mrf.mxu0 }
 0x7a2   :  { %1797 = vst [vmem:[#allocation11 + $0x10] sm:$0xff] %v1742_v61 }
 0x7a3   :  { %v1746_v41 = vpop.f32.mrf.mxu0 }
 0x7a4   :  { %v1747_v0 = vadd.f32 %v1848_v53, %v1746_v41 }
 0x7a5   :  { %v2221_v6 = vpop.f32.mrf.mxu0 }
 0x7a6   :  { %1798 = vst [vmem:[#allocation11 + $0x18] sm:$0xff] %v1747_v0 }
 0x7a7   :  { %v1751_v11 = vpop.f32.mrf.mxu0 }
 0x7a8   :  { %v1752_v50 = vadd.f32 %v1848_v53, %v1751_v11 }
 0x7a9   :  { %v2224_v58 = vpop.f32.mrf.mxu0 }
 0x7aa   :  { %1799 = vst [vmem:[#allocation11 + $0x20] sm:$0xff] %v1752_v50 }
 0x7ab   :  { %v1756_v15 = vpop.f32.mrf.mxu0 }
 0x7ac   :  { %v1757_v18 = vadd.f32 %v1848_v53, %v1756_v15 }
 0x7ad   :  { %v2227_v12 = vpop.f32.mrf.mxu0 }
 0x7ae   :  { %1800 = vst [vmem:[#allocation11 + $0x28] sm:$0xff] %v1757_v18 }
 0x7af   :  { %v1761_v14 = vpop.f32.mrf.mxu0 }
 0x7b0   :  { %v1762_v40 = vadd.f32 %v1848_v53, %v1761_v14 }
 0x7b1   :  { %v2230_v20 = vpop.f32.mrf.mxu0 }
 0x7b2   :  { %1801 = vst [vmem:[#allocation11 + $0x30] sm:$0xff] %v1762_v40 }
 0x7b3   :  { %v1766_v23 = vpop.f32.mrf.mxu0 }
 0x7b4   :  { %v1767_v24 = vadd.f32 %v1848_v53, %v1766_v23 }
 0x7b5   :  { %v2233_v1 = vpop.f32.mrf.mxu0 }
 0x7b6   :  { %1802 = vst [vmem:[#allocation11 + $0x38] sm:$0xff] %v1767_v24 }
 0x7b7   :  { %v1771_v26 = vpop.f32.mrf.mxu0 }
 0x7b8   :  { %v1772_v28 = vadd.f32 %v1848_v53, %v1771_v26 }
 0x7b9   :  { %v2236_v19 = vpop.f32.mrf.mxu0 }
 0x7ba   :  { %1803 = vst [vmem:[#allocation11 + $0x40] sm:$0xff] %v1772_v28 }
 0x7bb   :  { %v1776_v47 = vpop.f32.mrf.mxu0 }
 0x7bc   :  { %v1777_v7 = vadd.f32 %v1848_v53, %v1776_v47 }
 0x7bd   :  { %v2239_v56 = vpop.f32.mrf.mxu0 }
 0x7be   :  { %1804 = vst [vmem:[#allocation11 + $0x48] sm:$0xff] %v1777_v7 }
 0x7bf   :  { %v1781_v30 = vpop.f32.mrf.mxu0 }
 0x7c0   :  { %v1782_v51 = vadd.f32 %v1848_v53, %v1781_v30 }
 0x7c1   :  { %v2242_v31 = vpop.f32.mrf.mxu0 }
 0x7c2   :  { %1805 = vst [vmem:[#allocation11 + $0x50] sm:$0xff] %v1782_v51 }
 0x7c3   :  { %v1786_v13 = vpop.f32.mrf.mxu0 }
 0x7c4   :  { %v1787_v16 = vadd.f32 %v1848_v53, %v1786_v13 }
 0x7c5   :  { %v2245_v29 = vpop.f32.mrf.mxu0 }
 0x7c6   :  { %1806 = vst [vmem:[#allocation11 + $0x58] sm:$0xff] %v1787_v16 }
 0x7c7   :  { %v1791_v57 = vpop.f32.mrf.mxu0 }
 0x7c8   :  { %v1792_v33 = vadd.f32 %v1848_v53, %v1791_v57 }
 0x7c9   :  { %v2248_v35 = vpop.f32.mrf.mxu0 }
 0x7ca   :  { %1807 = vst [vmem:[#allocation11 + $0x60] sm:$0xff] %v1792_v33 }
 0x7cb   :  { %2454 = shalt.err (!%p2451_p1)
}
 0x7cc   :  { %1819 = dma.vmem_to_hbm [thread:$0]  %s1814_s11, 1664, %s3246_s13, [#allocation4], %s2474_s19, %s2474_s19, %s2475_s20  }
 0x7cd   :  { %2469 = dma.done.wait [#allocation4], 1664  }
 0x7ce   :  { %2470 = vsyncadd [#allocation4], 4294965632 }
 0x7cf   :  { %1823 = vsyncpa [#allocation3], 1 }
 0x7d0   :  { %1824 = vsyncpa [#allocation6], 1 }
 0x7d1   :  { %1825 = vsyncpa [#allocation9], 1 }
 0x7d2   :  { %1826 = vsyncpa [#allocation4], 1 }

// kernel: tpu_custom_call.1
= control target key start
LH: loop header
LB: loop body
LE: loop exit
PB: predicated region body
PF: predicated region fallthrough
CT: control target
= control target key end

     0   :  { %18 = vsyncpa [#allocation3], 0  ;;  %s3233_s0 = inlined_call_operand.vmem [shape: f32[104,16], index: 0, kind: input, shape index: {}]   ;;  %s3234_s1 = inlined_call_operand.vmem [shape: f32[1,16], index: 1, kind: input, shape index: {}]   ;;  %s3235_s2 = inlined_call_operand.vmem [shape: f32[1,16], index: 2, kind: input, shape index: {}]   ;;  %s3236_s3 = inlined_call_operand.hbm [shape: f32[16,128], index: 3, kind: input, shape index: {}]   ;;  %s3237_s4 = inlined_call_operand.hbm [shape: f32[1,128], index: 4, kind: input, shape index: {}]   ;;  %s3238_s5 = inlined_call_operand.hbm [shape: f32[2,128,256], index: 5, kind: input, shape index: {}]   ;;  %s3239_s6 = inlined_call_operand.vmem [shape: f32[2,1,256], index: 6, kind: input, shape index: {}]   ;;  %s3240_s7 = inlined_call_operand.hbm [shape: f32[2,256,128], index: 7, kind: input, shape index: {}]   ;;  %s3241_s8 = inlined_call_operand.vmem [shape: f32[2,1,128], index: 8, kind: input, shape index: {}]   ;;  %s3242_s9 = inlined_call_operand.vmem [shape: f32[128,128], index: 9, kind: input, shape index: {}]   ;;  %s3243_s10 = inlined_call_operand.vmem [shape: f32[1,128], index: 10, kind: input, shape index: {}]   ;;  %s3244_s11 = inlined_call_operand.hbm [shape: f32[128,128], index: 11, kind: input, shape index: {}]   ;;  %s3245_s12 = inlined_call_operand.vmem [shape: f32[1,128], index: 12, kind: input, shape index: {}]   ;;  %s3246_s13 = inlined_call_operand.hbm [shape: f32[104,128], index: 13, kind: output, shape index: {}]  }
   0x1   :  { %19 = vsyncpa [#allocation6], 0 }
   0x2   :  { %20 = vsyncpa [#allocation9], 0 }
   0x3   :  { %21 = vsyncpa [#allocation4], 0  ;;  %s2471_s25 = smov [#allocation5]  }
   0x4   :  { %s46_s26 = sshll.u32 %s2471_s25, 4  ;;  %s47_s26 = int_to_ptr.vmem [resolvable:$true] %s46_s26 }
   0x5   :  { %s2351_s27 = scalar_lea.vmem %s47_s26, 16  ;;  %s2355_s28 = scalar_lea.vmem %s47_s26, 32 }
   0x6   :  { %p2352_p0 = scmp.ne.s32.totalorder %s47_s26, %s2351_s27  ;;  %p2356_p1 = scmp.lt.s32.totalorder %s47_s26, %s47_s26 }
   0x7   :  { %p2357_p2 = scmp.lt.s32.totalorder %s2355_s28, %s2351_s27 }
   0x9   :  { %p2358_p3 = por %p2357_p2, %p2356_p1 }
   0xb   :  { %p2359_p4 = pnand %p2358_p3, %p2352_p0 }
   0xd   :  { %2362 = shalt.err (!%p2359_p4)
}
   0xe   :  { %49 = dma.hbm_to_vmem [thread:$0]  %s3237_s4, 16, %s47_s26, [#allocation6]  }
   0xf   :  { %s2472_s14 = smov [#allocation8]   ;;  %s2473_s16 = smov [#allocation2]  }
  0x10   :  { %s69_s15 = sshll.u32 %s2472_s14, 4  ;;  %s33_s17 = sshll.u32 %s2473_s16, 4  ;;  %s70_s15 = int_to_ptr.vmem [resolvable:$true] %s69_s15  ;;  %s34_s17 = int_to_ptr.vmem [resolvable:$true] %s33_s17 }
  0x11   :  { %s2371_s18 = scalar_lea.vmem %s70_s15, 8192  ;;  %p2376_p6 = scmp.lt.s32.totalorder %s70_s15, %s70_s15 }
  0x12   :  { %p2372_p5 = scmp.ne.s32.totalorder %s70_s15, %s2371_s18  ;;  %p2377_p7 = scmp.lt.s32.totalorder %s2371_s18, %s2371_s18 }
  0x14   :  { %p2378_p8 = por %p2377_p7, %p2376_p6 }
  0x16   :  { %p2379_p9 = pnand %p2378_p8, %p2372_p5 }
  0x18   :  { %2382 = shalt.err (!%p2379_p9)
}
  0x19   :  { %s2474_s19 = smov 128   ;;  %s2475_s20 = smov 8  }
  0x1a   :  { %75 = dma.hbm_to_vmem [thread:$0]  %s3240_s7, 8192, %s70_s15, [#allocation9], %s2474_s19, %s2474_s19, %s2475_s20  }
  0x1b   :  { %s2391_s4 = scalar_lea.vmem %s34_s17, 256  ;;  %p2396_p11 = scmp.lt.s32.totalorder %s34_s17, %s34_s17 }
  0x1c   :  { %p2392_p10 = scmp.ne.s32.totalorder %s34_s17, %s2391_s4  ;;  %p2397_p12 = scmp.lt.s32.totalorder %s2391_s4, %s2391_s4 }
  0x1e   :  { %p2398_p13 = por %p2397_p12, %p2396_p11 }
  0x20   :  { %p2399_p0 = pnand %p2398_p13, %p2392_p10 }
  0x22   :  { %2402 = shalt.err (!%p2399_p0)
}
  0x23   :  { %39 = dma.hbm_to_vmem [thread:$0]  %s3236_s3, 256, %s34_s17, [#allocation3], %s2474_s19, %s2474_s19, %s2475_s20  }
  0x24   :  { %s2476_s25 = smov [#allocation7]  }
  0x25   :  { %s55_s26 = sshll.u32 %s2476_s25, 4  ;;  %s56_s26 = int_to_ptr.vmem [resolvable:$true] %s55_s26 }
  0x26   :  { %s2411_s27 = scalar_lea.vmem %s56_s26, 8192  ;;  %p2416_p2 = scmp.lt.s32.totalorder %s56_s26, %s56_s26 }
  0x27   :  { %p2412_p1 = scmp.ne.s32.totalorder %s56_s26, %s2411_s27  ;;  %p2417_p3 = scmp.lt.s32.totalorder %s2411_s27, %s2411_s27 }
  0x29   :  { %p2418_p4 = por %p2417_p3, %p2416_p2 }
  0x2b   :  { %p2419_p5 = pnand %p2418_p4, %p2412_p1 }
  0x2d   :  { %2422 = shalt.err (!%p2419_p5)
}
  0x2e   :  { %s2477_s7 = smov 256   ;;  %s2478_s28 = smov 16  }
  0x2f   :  { %61 = dma.hbm_to_vmem [thread:$0]  %s3238_s5, 8192, %s56_s26, [#allocation6], %s2477_s7, %s2477_s7, %s2478_s28  }
  0x30   :  { %s2479_s14 = smov [#allocation10]  }
  0x31   :  { %s87_s15 = sshll.u32 %s2479_s14, 4  ;;  %s88_s15 = int_to_ptr.vmem [resolvable:$true] %s87_s15 }
  0x32   :  { %s2431_s3 = scalar_lea.vmem %s88_s15, 2048  ;;  %p2436_p7 = scmp.lt.s32.totalorder %s88_s15, %s88_s15 }
  0x33   :  { %p2432_p6 = scmp.ne.s32.totalorder %s88_s15, %s2431_s3  ;;  %p2437_p8 = scmp.lt.s32.totalorder %s2431_s3, %s2431_s3 }
  0x35   :  { %p2438_p9 = por %p2437_p8, %p2436_p7 }
  0x37   :  { %p2439_p10 = pnand %p2438_p9, %p2432_p6 }
  0x39   :  { %2442 = shalt.err (!%p2439_p10)
}
  0x3a   :  { %93 = dma.hbm_to_vmem [thread:$0]  %s3244_s11, 2048, %s88_s15, [#allocation9], %s2474_s19, %s2474_s19, %s2475_s20  }
  0x3b   :  { %2463 = dma.done.wait [#allocation3], 256  }
  0x3c   :  { %2464 = vsyncadd [#allocation3], 4294967040 }
  0x3d   :  { %2465 = dma.done.wait [#allocation6], 8208  }
  0x3e   :  { %2466 = vsyncadd [#allocation6], 4294959088 }
  0x3f   :  { %2467 = dma.done.wait [#allocation9], 10240  }
  0x40   :  { %2468 = vsyncadd [#allocation9], 4294957056  ;;  %v2480_v0 = vmov 0.0   ;;  %vm2481_vm0 = vmmov 0   ;;  %v165_v1 = vld [vmem:[#allocation2 + $0x8] sm:$0xff]  ;;  %v164_v2 = vld [vmem:[#allocation2] sm:$0xff] }
  0x41   :  { %2064 = vmatprep.subr.mxu0 %v2480_v0  ;;  %2068 = vmatprep.mubr.msk.f32.mxu0 %vm2481_vm0, %v2480_v0  ;;  %v111_v3 = vld [vmem:[%s3233_s0] sm:$0xff]  ;;  %v112_v6 = vld [vmem:[%s3233_s0 + $0x8] sm:$0xff]  ;;  %vm173_vm1 = vcmask 130048   ;;  %v113_v9 = vld [vmem:[%s3233_s0 + $0x10] sm:$0xff] }
  0x42   :  { %2249 = vmatprep.subr.mxu1 %v2480_v0  ;;  %2092 = vmatprep.mubr.msk.f32.mxu1 %vm2481_vm0, %v2480_v0  ;;  %v2589_v4 = vld [vmem:[%s3234_s1] ss:$0 sm:$0xff]  ;;  %v120_v13 = vld [vmem:[%s3233_s0 + $0x48] sm:$0xff]  ;;  %v121_v14 = vld [vmem:[%s3233_s0 + $0x50] sm:$0xff] }
  0x43   :  { %2065 = vmatpush3.msra.mxu0 %v165_v1  ;;  %v2594_v5 = vld [vmem:[%s3235_s2] ss:$0 sm:$0xff]  ;;  %2251 = vmatpush3.msra.mxu1 %v165_v1  ;;  %v131_v7 = vsub.f32 %v111_v3, %v2589_v4  ;;  %v132_v8 = vsub.f32 %v112_v6, %v2589_v4  ;;  %v133_v16 = vsub.f32 %v113_v9, %v2589_v4  ;;  %v114_v19 = vld [vmem:[%s3233_s0 + $0x18] sm:$0xff]  ;;  %v116_v31 = vld [vmem:[%s3233_s0 + $0x28] sm:$0xff] }
  0x44   :  { %2066 = vmatprep.subr.mxu0 %v2480_v0  ;;  %2250 = vmatprep.subr.mxu1 %v2480_v0  ;;  %v119_v10 = vld [vmem:[%s3233_s0 + $0x40] sm:$0xff]  ;;  %v140_v18 = vsub.f32 %v120_v13, %v2589_v4  ;;  %v141_v21 = vsub.f32 %v121_v14, %v2589_v4  ;;  %v122_v22 = vld [vmem:[%s3233_s0 + $0x58] sm:$0xff]  ;;  %v134_v24 = vsub.f32 %v114_v19, %v2589_v4  ;;  %v117_v36 = vld [vmem:[%s3233_s0 + $0x30] sm:$0xff] }
  0x45   :  { %2067 = vmatpush3.msra.mxu0 %v164_v2  ;;  %2252 = vmatpush3.msra.mxu1 %v164_v2  ;;  %v151_v11 = vmul.f32 %v2594_v5, %v131_v7  ;;  %v139_v12 = vsub.f32 %v119_v10, %v2589_v4  ;;  %v152_v15 = vmul.f32 %v2594_v5, %v132_v8  ;;  %v115_v25 = vld [vmem:[%s3233_s0 + $0x20] sm:$0xff]  ;;  %v118_v40 = vld [vmem:[%s3233_s0 + $0x38] sm:$0xff]  ;;  %v466_v44 = vld [vmem:[#allocation7 + $0xf8] sm:$0xff] }
  0x46   :  { %v160_v20 = vmul.f32 %v2594_v5, %v140_v18  ;;  %v153_v23 = vmul.f32 %v2594_v5, %v133_v16  ;;  %v161_v26 = vmul.f32 %v2594_v5, %v141_v21  ;;  %v142_v27 = vsub.f32 %v122_v22, %v2589_v4  ;;  %v123_v28 = vld [vmem:[%s3233_s0 + $0x60] sm:$0xff]  ;;  %479 = vmatprep.subr.mxu1 %v466_v44  ;;  %v463_v47 = vld [vmem:[#allocation7 + $0xe0] sm:$0xff]  ;;  %v462_v48 = vld [vmem:[#allocation7 + $0xd8] sm:$0xff] }
  0x47   :  { %2069 = vmatmul.mubr.msk.f32.vlgmr.msra.gmra.mxu0 %vm173_vm1, %v151_v11  ;;  %v159_v17 = vmul.f32 %v2594_v5, %v139_v12  ;;  %v154_v29 = vmul.f32 %v2594_v5, %v134_v24  ;;  %v135_v30 = vsub.f32 %v115_v25, %v2589_v4  ;;  %v143_v33 = vsub.f32 %v123_v28, %v2589_v4  ;;  %v465_v45 = vld [vmem:[#allocation7 + $0xf0] sm:$0xff]  ;;  %v464_v46 = vld [vmem:[#allocation7 + $0xe8] sm:$0xff]  ;;  %v459_v51 = vld [vmem:[#allocation7 + $0xc0] sm:$0xff] }
  0x48   :  { %2071 = vmatprep.mubr.msk.f32.mxu0 %vm2481_vm0, %v2480_v0  ;;  %v162_v32 = vmul.f32 %v2594_v5, %v142_v27  ;;  %v136_v35 = vsub.f32 %v116_v31, %v2589_v4  ;;  %v137_v39 = vsub.f32 %v117_v36, %v2589_v4  ;;  %v138_v42 = vsub.f32 %v118_v40, %v2589_v4  ;;  %v461_v49 = vld [vmem:[#allocation7 + $0xd0] sm:$0xff]  ;;  %v460_v50 = vld [vmem:[#allocation7 + $0xc8] sm:$0xff]  ;;  %v458_v52 = vld [vmem:[#allocation7 + $0xb8] sm:$0xff] }
  0x49   :  { %2093 = vmatmul.mubr.msk.f32.vlgmr.msra.gmra.mxu1 %vm173_vm1, %v159_v17  ;;  %v155_v34 = vmul.f32 %v2594_v5, %v135_v30  ;;  %v163_v37 = vmul.f32 %v2594_v5, %v143_v33  ;;  %v457_v53 = vld [vmem:[#allocation7 + $0xb0] sm:$0xff]  ;;  %v456_v54 = vld [vmem:[#allocation7 + $0xa8] sm:$0xff]  ;;  %v455_v55 = vld [vmem:[#allocation7 + $0xa0] sm:$0xff] }
  0x4a   :  { %2095 = vmatprep.mubr.msk.f32.mxu1 %vm2481_vm0, %v2480_v0  ;;  %v156_v38 = vmul.f32 %v2594_v5, %v136_v35  ;;  %v157_v41 = vmul.f32 %v2594_v5, %v137_v39  ;;  %v158_v43 = vmul.f32 %v2594_v5, %v138_v42  ;;  %480 = vmatpush1.msra.mxu1 %v465_v45  ;;  %v2696_v56 = vld [vmem:[#allocation5] ss:$0 sm:$0xff]  ;;  %v453_v18 = vld [vmem:[#allocation7 + $0x90] sm:$0xff]  ;;  %v452_v21 = vld [vmem:[#allocation7 + $0x88] sm:$0xff] }
  0x4b   :  { %2072 = vmatmul.mubr.msk.f32.gmra.mxu0 %vm173_vm1, %v152_v15  ;;  %481 = vmatprep.subr.mxu1 %v464_v46  ;;  %v454_v16 = vld [vmem:[#allocation7 + $0x98] sm:$0xff]  ;;  %v449_v28 = vld [vmem:[#allocation7 + $0x70] sm:$0xff]  ;;  %v448_v31 = vld [vmem:[#allocation7 + $0x68] sm:$0xff] }
  0x4c   :  { %2074 = vmatprep.mubr.msk.f32.mxu0 %vm2481_vm0, %v2480_v0  ;;  %482 = vmatpush1.msra.mxu1 %v463_v47  ;;  %v447_v33 = vld [vmem:[#allocation7 + $0x60] sm:$0xff]  ;;  %v446_v35 = vld [vmem:[#allocation7 + $0x58] sm:$0xff]  ;;  %v444_v39 = vld [vmem:[#allocation7 + $0x48] sm:$0xff] }
  0x4d   :  { %2096 = vmatmul.mubr.msk.f32.gmra.mxu1 %vm173_vm1, %v160_v20  ;;  %483 = vmatprep.subr.mxu1 %v462_v48  ;;  %v443_v42 = vld [vmem:[#allocation7 + $0x40] sm:$0xff]  ;;  %v442_v44 = vld [vmem:[#allocation7 + $0x38] sm:$0xff]  ;;  %v441_v46 = vld [vmem:[#allocation7 + $0x30] sm:$0xff] }
  0x4e   :  { %2098 = vmatprep.mubr.msk.f32.mxu1 %vm2481_vm0, %v2480_v0  ;;  %484 = vmatpush1.msra.mxu1 %v461_v49  ;;  %v440_v49 = vld [vmem:[#allocation7 + $0x28] sm:$0xff] }
  0x4f   :  { %2075 = vmatmul.mubr.msk.f32.gmra.mxu0 %vm173_vm1, %v153_v23  ;;  %485 = vmatprep.subr.mxu1 %v460_v50  ;;  %v451_v23 = vld [vmem:[#allocation7 + $0x80] sm:$0xff] }
  0x50   :  { %2077 = vmatprep.mubr.msk.f32.mxu0 %vm2481_vm0, %v2480_v0  ;;  %486 = vmatpush1.msra.mxu1 %v459_v51 }
  0x51   :  { %2099 = vmatmul.mubr.msk.f32.gmra.mxu1 %vm173_vm1, %v161_v26  ;;  %487 = vmatprep.subr.mxu1 %v458_v52  ;;  %v450_v26 = vld [vmem:[#allocation7 + $0x78] sm:$0xff] }
  0x52   :  { %2101 = vmatprep.mubr.msk.f32.mxu1 %vm2481_vm0, %v2480_v0  ;;  %488 = vmatpush1.msra.mxu1 %v457_v53  ;;  %v439_v53 = vld [vmem:[#allocation7 + $0x20] sm:$0xff] }
  0x53   :  { %2078 = vmatmul.mubr.msk.f32.gmra.mxu0 %vm173_vm1, %v154_v29  ;;  %489 = vmatprep.subr.mxu1 %v456_v54 }
  0x54   :  { %2080 = vmatprep.mubr.msk.f32.mxu0 %vm2481_vm0, %v2480_v0  ;;  %490 = vmatpush1.msra.mxu1 %v455_v55  ;;  %v438_v55 = vld [vmem:[#allocation7 + $0x18] sm:$0xff] }
  0x55   :  { %2102 = vmatmul.mubr.msk.f32.gmra.mxu1 %vm173_vm1, %v162_v32  ;;  %491 = vmatprep.subr.mxu1 %v454_v16  ;;  %v685_v16 = vld [vmem:[#allocation8 + $0x58] sm:$0xff] }
  0x56   :  { %2104 = vmatprep.mubr.msk.f32.mxu1 %vm2481_vm0, %v2480_v0  ;;  %492 = vmatpush1.msra.mxu1 %v453_v18  ;;  %v684_v18 = vld [vmem:[#allocation8 + $0x50] sm:$0xff] }
  0x57   :  { %2081 = vmatmul.mubr.msk.f32.gmra.mxu0 %vm173_vm1, %v155_v34  ;;  %493 = vmatprep.subr.mxu1 %v452_v21  ;;  %v698_v21 = vld [vmem:[#allocation8 + $0xc0] sm:$0xff] }
  0x58   :  { %2083 = vmatprep.mubr.msk.f32.mxu0 %vm2481_vm0, %v2480_v0  ;;  %494 = vmatpush1.msra.mxu1 %v451_v23  ;;  %v682_v23 = vld [vmem:[#allocation8 + $0x40] sm:$0xff] }
  0x59   :  { %2105 = vmatmul.mubr.msk.f32.gmra.mxu1 %vm173_vm1, %v163_v37  ;;  %495 = vmatprep.subr.mxu1 %v450_v26  ;;  %v445_v37 = vld [vmem:[#allocation7 + $0x50] sm:$0xff] }
  0x5a   :  { %543 = vmatprep.mubr.f32.mxu1 %v2480_v0  ;;  %496 = vmatpush1.msra.mxu1 %v449_v28  ;;  %v696_v26 = vld [vmem:[#allocation8 + $0xb0] sm:$0xff]  ;;  %v695_v28 = vld [vmem:[#allocation8 + $0xa8] sm:$0xff] }
  0x5b   :  { %2084 = vmatmul.mubr.msk.f32.gmra.mxu0 %vm173_vm1, %v156_v38  ;;  %497 = vmatprep.subr.mxu1 %v448_v31 }
  0x5c   :  { %2086 = vmatprep.mubr.msk.f32.mxu0 %vm2481_vm0, %v2480_v0  ;;  %498 = vmatpush1.msra.mxu1 %v447_v33 }
  0x5d   :  { %499 = vmatprep.subr.mxu1 %v446_v35 }
  0x5e   :  { %500 = vmatpush1.msra.mxu1 %v445_v37 }
  0x5f   :  { %2087 = vmatmul.mubr.msk.f32.gmra.mxu0 %vm173_vm1, %v157_v41  ;;  %501 = vmatprep.subr.mxu1 %v444_v39 }
  0x60   :  { %2089 = vmatprep.mubr.msk.f32.mxu0 %vm2481_vm0, %v2480_v0  ;;  %502 = vmatpush1.msra.mxu1 %v443_v42 }
  0x61   :  { %503 = vmatprep.subr.mxu1 %v442_v44 }
  0x62   :  { %504 = vmatpush1.msra.mxu1 %v441_v46 }
  0x63   :  { %2090 = vmatmul.mubr.msk.f32.gmra.mxu0 %vm173_vm1, %v158_v43  ;;  %505 = vmatprep.subr.mxu1 %v440_v49 }
  0x64   :  { %506 = vmatpush1.msra.mxu1 %v439_v53 }
  0x65   :  { %507 = vmatprep.subr.mxu1 %v438_v55 }
 0x107   :  { %v279_v57 = vpop.f32.mrf.mxu0 }
 0x108   :  { %v2699_v58 = vadd.f32 %v2696_v56, %v279_v57 }
 0x109   :  { %v2070_v59 = vpop.f32.mrf.mxu0  ;;  %v319_v60 = vpop.f32.mrf.mxu1 }
 0x10a   :  { %v343_v61 = vmul.f32 %v2699_v58, %v2699_v58  ;;  %v2731_v40 = vadd.f32 %v2696_v56, %v319_v60  ;;  %v437_v59 = vld [vmem:[#allocation7 + $0x10] sm:$0xff] }
 0x10b   :  { %v284_v62 = vpop.f32.mrf.mxu0  ;;  %v2094_v63 = vpop.f32.mrf.mxu1  ;;  %508 = vmatpush1.msra.mxu1 %v437_v59 }
 0x10c   :  { %v2704_v1 = vadd.f32 %v2696_v56, %v284_v62  ;;  %356 = vadd.xlane.f32.xlu0 %v343_v61  ;;  %v351_v52 = vmul.f32 %v2731_v40, %v2731_v40  ;;  %v436_v61 = vld [vmem:[#allocation7 + $0x8] sm:$0xff] }
 0x10d   :  { %v2073_v2 = vpop.f32.mrf.mxu0  ;;  %v324_v3 = vpop.f32.mrf.mxu1  ;;  %509 = vmatprep.subr.mxu1 %v436_v61 }
 0x10e   :  { %v344_v4 = vmul.f32 %v2704_v1, %v2704_v1  ;;  %v2739_v47 = vadd.f32 %v2696_v56, %v324_v3  ;;  %v435_v3 = vld [vmem:[#allocation7] sm:$0xff] }
 0x10f   :  { %v289_v5 = vpop.f32.mrf.mxu0  ;;  %v2097_v6 = vpop.f32.mrf.mxu1  ;;  %510 = vmatpush1.msra.mxu1 %v435_v3 }
 0x110   :  { %v2709_v7 = vadd.f32 %v2696_v56, %v289_v5  ;;  %358 = vadd.xlane.f32.xlu0 %v344_v4  ;;  %v352_v60 = vmul.f32 %v2739_v47, %v2739_v47  ;;  %v705_v6 = vld [vmem:[#allocation8 + $0xf8] sm:$0xff] }
 0x111   :  { %v2076_v8 = vpop.f32.mrf.mxu0  ;;  %v329_v9 = vpop.f32.mrf.mxu1  ;;  %1864 = vmatprep.subr.mxu0 %v705_v6 }
 0x112   :  { %v345_v10 = vmul.f32 %v2709_v7, %v2709_v7  ;;  %v2745_v51 = vadd.f32 %v2696_v56, %v329_v9  ;;  %v689_v8 = vld [vmem:[#allocation8 + $0x78] sm:$0xff]  ;;  %v688_v9 = vld [vmem:[#allocation8 + $0x70] sm:$0xff] }
 0x113   :  { %v294_v11 = vpop.f32.mrf.mxu0  ;;  %v2100_v12 = vpop.f32.mrf.mxu1  ;;  %1865 = vmatpush3.msra.mxu0 %v689_v8 }
 0x114   :  { %v2714_v13 = vadd.f32 %v2696_v56, %v294_v11  ;;  %360 = vadd.xlane.f32.xlu1 %v345_v10  ;;  %v353_v2 = vmul.f32 %v2745_v51, %v2745_v51  ;;  %v703_v10 = vld [vmem:[#allocation8 + $0xe8] sm:$0xff]  ;;  %v702_v12 = vld [vmem:[#allocation8 + $0xe0] sm:$0xff] }
 0x115   :  { %v2079_v14 = vpop.f32.mrf.mxu0  ;;  %v2716_v15 = vpop.f32.mrf.mxu1  ;;  %v687_v11 = vld [vmem:[#allocation8 + $0x68] sm:$0xff] }
 0x116   :  { %v346_v17 = vmul.f32 %v2714_v13, %v2714_v13  ;;  %v2755_v62 = vadd.f32 %v2696_v56, %v2716_v15  ;;  %v686_v14 = vld [vmem:[#allocation8 + $0x60] sm:$0xff]  ;;  %v701_v15 = vld [vmem:[#allocation8 + $0xd8] sm:$0xff] }
 0x117   :  { %v299_v19 = vpop.f32.mrf.mxu0  ;;  %v2103_v20 = vpop.f32.mrf.mxu1 }
 0x118   :  { %v2721_v22 = vadd.f32 %v2696_v56, %v299_v19  ;;  %362 = vadd.xlane.f32.xlu1 %v346_v17  ;;  %v354_v5 = vmul.f32 %v2755_v62, %v2755_v62  ;;  %v700_v17 = vld [vmem:[#allocation8 + $0xd0] sm:$0xff]  ;;  %v699_v19 = vld [vmem:[#allocation8 + $0xc8] sm:$0xff] }
 0x119   :  { %v2082_v24 = vpop.f32.mrf.mxu0  ;;  %v339_v25 = vpop.f32.mrf.mxu1  ;;  %v683_v20 = vld [vmem:[#allocation8 + $0x48] sm:$0xff] }
 0x11a   :  { %v347_v27 = vmul.f32 %v2721_v22, %v2721_v22  ;;  %v2758_v63 = vadd.f32 %v2696_v56, %v339_v25  ;;  %v697_v24 = vld [vmem:[#allocation8 + $0xb8] sm:$0xff] }
 0x11b   :  { %v304_v29 = vpop.f32.mrf.mxu0  ;;  %v2106_v30 = vpop.f32.mrf.mxu1  ;;  %v681_v25 = vld [vmem:[#allocation8 + $0x38] sm:$0xff] }
 0x11c   :  { %v2726_v32 = vadd.f32 %v2696_v56, %v304_v29  ;;  %364 = vadd.xlane.f32.xlu0 %v347_v27  ;;  %v355_v4 = vmul.f32 %v2758_v63, %v2758_v63  ;;  %v680_v27 = vld [vmem:[#allocation8 + $0x30] sm:$0xff]  ;;  %v679_v29 = vld [vmem:[#allocation8 + $0x28] sm:$0xff]  ;;  %v694_v30 = vld [vmem:[#allocation8 + $0xa0] sm:$0xff] }
 0x11d   :  { %v2085_v34 = vpop.f32.mrf.mxu0 }
 0x11e   :  { %v348_v36 = vmul.f32 %v2726_v32, %v2726_v32 }
 0x11f   :  { %v309_v38 = vpop.f32.mrf.mxu0 }
 0x120   :  { %v2734_v41 = vadd.f32 %v2696_v56, %v309_v38  ;;  %366 = vadd.xlane.f32.xlu1 %v348_v36 }
 0x121   :  { %v2088_v43 = vpop.f32.mrf.mxu0 }
 0x122   :  { %v349_v45 = vmul.f32 %v2734_v41, %v2734_v41 }
 0x123   :  { %v314_v48 = vpop.f32.mrf.mxu0 }
 0x124   :  { %v2742_v50 = vadd.f32 %v2696_v56, %v314_v48  ;;  %368 = vadd.xlane.f32.xlu0 %v349_v45  ;;  %v704_v56 = vld [vmem:[#allocation8 + $0xf0] sm:$0xff] }
 0x125   :  { %v2091_v54 = vpop.f32.mrf.mxu0  ;;  %1866 = vmatprep.subr.mxu0 %v704_v56 }
 0x126   :  { %v350_v57 = vmul.f32 %v2742_v50, %v2742_v50  ;;  %1867 = vmatpush3.msra.mxu0 %v688_v9 }
 0x127   :  { %1868 = vmatprep.subr.mxu0 %v703_v10 }
 0x128   :  { %372 = vadd.xlane.f32.xlu0 %v351_v52  ;;  %370 = vadd.xlane.f32.xlu1 %v350_v57 }
 0x129   :  { %1869 = vmatpush3.msra.mxu0 %v687_v11 }
 0x12a   :  { %1870 = vmatprep.subr.mxu0 %v702_v12 }
 0x12b   :  { %1871 = vmatpush3.msra.mxu0 %v686_v14 }
 0x12c   :  { %376 = vadd.xlane.f32.xlu0 %v353_v2  ;;  %374 = vadd.xlane.f32.xlu1 %v352_v60 }
 0x12d   :  { %1872 = vmatprep.subr.mxu0 %v701_v15 }
 0x12e   :  { %1873 = vmatpush3.msra.mxu0 %v685_v16 }
 0x12f   :  { %1874 = vmatprep.subr.mxu0 %v700_v17 }
 0x130   :  { %380 = vadd.xlane.f32.xlu0 %v355_v4  ;;  %378 = vadd.xlane.f32.xlu1 %v354_v5 }
 0x131   :  { %1875 = vmatpush3.msra.mxu0 %v684_v18 }
 0x132   :  { %1876 = vmatprep.subr.mxu0 %v699_v19 }
 0x133   :  { %1877 = vmatpush3.msra.mxu0 %v683_v20 }
 0x134   :  { %1878 = vmatprep.subr.mxu0 %v698_v21 }
 0x135   :  { %1879 = vmatpush3.msra.mxu0 %v682_v23 }
 0x136   :  { %1880 = vmatprep.subr.mxu0 %v697_v24 }
 0x137   :  { %1881 = vmatpush3.msra.mxu0 %v681_v25 }
 0x138   :  { %1882 = vmatprep.subr.mxu0 %v696_v26 }
 0x139   :  { %1883 = vmatpush3.msra.mxu0 %v680_v27 }
 0x13a   :  { %1884 = vmatprep.subr.mxu0 %v695_v28 }
 0x13b   :  { %1885 = vmatpush3.msra.mxu0 %v679_v29 }
 0x13c   :  { %1886 = vmatprep.subr.mxu0 %v694_v30 }
 0x195   :  { %v357_v31 = vpop.xlane.xlu0 %356 }
 0x196   :  { %v383_v33 = vmul.f32 0.0078125, %v357_v31 }
 0x198   :  { %v396_v34 = vadd.f32 1e-05, %v383_v33 }
 0x199   :  { %v359_v35 = vpop.xlane.xlu0 %358 }
 0x19a   :  { %2265 = vrsqrt.f32 %v396_v34  ;;  %v384_v36 = vmul.f32 0.0078125, %v359_v35 }
 0x19c   :  { %v397_v37 = vadd.f32 1e-05, %v384_v36 }
 0x19d   :  { %v361_v38 = vpop.xlane.xlu1 %360 }
 0x19e   :  { %2267 = vrsqrt.f32 %v397_v37  ;;  %v385_v39 = vmul.f32 0.0078125, %v361_v38 }
 0x1a0   :  { %v398_v42 = vadd.f32 1e-05, %v385_v39 }
 0x1a1   :  { %v363_v43 = vpop.xlane.xlu1 %362 }
 0x1a2   :  { %2269 = vrsqrt.f32 %v398_v42  ;;  %v386_v44 = vmul.f32 0.0078125, %v363_v43 }
 0x1a4   :  { %v399_v45 = vadd.f32 1e-05, %v386_v44 }
 0x1a5   :  { %v365_v46 = vpop.xlane.xlu0 %364 }
 0x1a6   :  { %2271 = vrsqrt.f32 %v399_v45  ;;  %v387_v48 = vmul.f32 0.0078125, %v365_v46 }
 0x1a7   :  { %v2266_v49 = vpop.eup %2265 }
 0x1a8   :  { %v400_v52 = vadd.f32 1e-05, %v387_v48  ;;  %v422_v53 = vmul.f32 %v2266_v49, %v2699_v58 }
 0x1a9   :  { %v367_v54 = vpop.xlane.xlu1 %366 }
 0x1aa   :  { %2273 = vrsqrt.f32 %v400_v52  ;;  %v388_v55 = vmul.f32 0.0078125, %v367_v54  ;;  %544 = vmatmul.mubr.f32.vlgmr.msra.gmra.mxu1 %v422_v53  ;;  %v678_v52 = vld [vmem:[#allocation8 + $0x20] sm:$0xff]  ;;  %v693_v53 = vld [vmem:[#allocation8 + $0x98] sm:$0xff] }
 0x1ab   :  { %v2268_v57 = vpop.eup %2267  ;;  %549 = vmatprep.mubr.f32.mxu1 %v2480_v0  ;;  %1887 = vmatpush3.msra.mxu0 %v678_v52  ;;  %v677_v54 = vld [vmem:[#allocation8 + $0x18] sm:$0xff] }
 0x1ac   :  { %v401_v59 = vadd.f32 1e-05, %v388_v55  ;;  %v423_v60 = vmul.f32 %v2268_v57, %v2704_v1  ;;  %1888 = vmatprep.subr.mxu0 %v693_v53  ;;  %v692_v55 = vld [vmem:[#allocation8 + $0x90] sm:$0xff] }
 0x1ad   :  { %v369_v61 = vpop.xlane.xlu0 %368  ;;  %1889 = vmatpush3.msra.mxu0 %v677_v54  ;;  %v676_v57 = vld [vmem:[#allocation8 + $0x10] sm:$0xff] }
 0x1ae   :  { %2275 = vrsqrt.f32 %v401_v59  ;;  %v389_v2 = vmul.f32 0.0078125, %v369_v61  ;;  %550 = vmatmul.mubr.f32.gmra.mxu1 %v423_v60  ;;  %1890 = vmatprep.subr.mxu0 %v692_v55  ;;  %v691_v59 = vld [vmem:[#allocation8 + $0x88] sm:$0xff]  ;;  %v690_v61 = vld [vmem:[#allocation8 + $0x80] sm:$0xff] }
 0x1af   :  { %v2270_v3 = vpop.eup %2269  ;;  %555 = vmatprep.mubr.f32.mxu1 %v2480_v0  ;;  %1891 = vmatpush3.msra.mxu0 %v676_v57  ;;  %v675_v60 = vld [vmem:[#allocation8 + $0x8] sm:$0xff] }
 0x1b0   :  { %v402_v4 = vadd.f32 1e-05, %v389_v2  ;;  %v424_v5 = vmul.f32 %v2270_v3, %v2709_v7  ;;  %1892 = vmatprep.subr.mxu0 %v691_v59  ;;  %v674_v2 = vld [vmem:[#allocation8] sm:$0xff]  ;;  %v469_v3 = vlaneseq }
 0x1b1   :  { %v373_v6 = vpop.xlane.xlu0 %372  ;;  %v371_v8 = vpop.xlane.xlu1 %370  ;;  %1893 = vmatpush3.msra.mxu0 %v675_v60 }
 0x1b2   :  { %2277 = vrsqrt.f32 %v402_v4  ;;  %v391_v56 = vmul.f32 0.0078125, %v373_v6  ;;  %v390_v9 = vmul.f32 0.0078125, %v371_v8  ;;  %556 = vmatmul.mubr.f32.gmra.mxu1 %v424_v5  ;;  %1894 = vmatprep.subr.mxu0 %v690_v61  ;;  %v2792_v4 = vshrl.u32 %v469_v3, 7  ;;  %v467_v6 = vld [vmem:[%s3239_s6] sm:$0x3] }
 0x1b3   :  { %v2272_v10 = vpop.eup %2271  ;;  %561 = vmatprep.mubr.f32.mxu1 %v2480_v0  ;;  %1895 = vmatpush3.msra.mxu0 %v674_v2 }
 0x1b4   :  { %v403_v11 = vadd.f32 1e-05, %v390_v9  ;;  %v425_v12 = vmul.f32 %v2272_v10, %v2714_v13  ;;  %v404_v14 = vadd.f32 1e-05, %v391_v56  ;;  %v471_v5 = vsub.s32 0, %v2792_v4 }
 0x1b5   :  { %v375_v15 = vpop.xlane.xlu1 %374  ;;  %v377_v16 = vpop.xlane.xlu0 %376  ;;  %v475_v8 = vsub.s32 1, %v2792_v4 }
 0x1b6   :  { %v392_v17 = vmul.f32 0.0078125, %v375_v15  ;;  %562 = vmatmul.mubr.f32.gmra.mxu1 %v425_v12  ;;  %2279 = vrsqrt.f32 %v403_v11  ;;  %v393_v20 = vmul.f32 0.0078125, %v377_v16  ;;  %v2801_v56 = vrot.slane %v467_v6, %v471_v5 }
 0x1b7   :  { %v2274_v18 = vpop.eup %2273  ;;  %567 = vmatprep.mubr.f32.mxu1 %v2480_v0  ;;  %2281 = vrsqrt.f32 %v404_v14  ;;  %v2805_v9 = vrot.slane %v467_v6, %v475_v8 }
 0x1b8   :  { %v426_v19 = vmul.f32 %v2274_v18, %v2721_v22  ;;  %v405_v21 = vadd.f32 1e-05, %v392_v17  ;;  %v406_v26 = vadd.f32 1e-05, %v393_v20 }
 0x1b9   :  { %v379_v23 = vpop.xlane.xlu1 %378  ;;  %v381_v28 = vpop.xlane.xlu0 %380 }
 0x1ba   :  { %568 = vmatmul.mubr.f32.gmra.mxu1 %v426_v19  ;;  %2283 = vrsqrt.f32 %v405_v21  ;;  %v394_v27 = vmul.f32 0.0078125, %v379_v23  ;;  %v395_v31 = vmul.f32 0.0078125, %v381_v28 }
 0x1bb   :  { %v2276_v24 = vpop.eup %2275  ;;  %573 = vmatprep.mubr.f32.mxu1 %v2480_v0  ;;  %2285 = vrsqrt.f32 %v406_v26 }
 0x1bc   :  { %v427_v25 = vmul.f32 %v2276_v24, %v2726_v32  ;;  %v407_v33 = vadd.f32 1e-05, %v394_v27  ;;  %v408_v35 = vadd.f32 1e-05, %v395_v31 }
 0x1be   :  { %574 = vmatmul.mubr.f32.gmra.mxu1 %v427_v25  ;;  %2287 = vrsqrt.f32 %v407_v33 }
 0x1bf   :  { %v2278_v29 = vpop.eup %2277  ;;  %579 = vmatprep.mubr.f32.mxu1 %v2480_v0  ;;  %2289 = vrsqrt.f32 %v408_v35 }
 0x1c0   :  { %v428_v30 = vmul.f32 %v2278_v29, %v2734_v41 }
 0x1c2   :  { %580 = vmatmul.mubr.f32.gmra.mxu1 %v428_v30 }
 0x1c3   :  { %585 = vmatprep.mubr.f32.mxu1 %v2480_v0  ;;  %v2280_v34 = vpop.eup %2279 }
 0x1c4   :  { %v429_v36 = vmul.f32 %v2280_v34, %v2742_v50  ;;  %v2282_v37 = vpop.eup %2281 }
 0x1c5   :  { %v430_v38 = vmul.f32 %v2282_v37, %v2731_v40 }
 0x1c6   :  { %586 = vmatmul.mubr.f32.gmra.mxu1 %v429_v36 }
 0x1c7   :  { %591 = vmatprep.mubr.f32.mxu1 %v2480_v0  ;;  %v2284_v39 = vpop.eup %2283 }
 0x1c8   :  { %v431_v42 = vmul.f32 %v2284_v39, %v2739_v47  ;;  %v2286_v43 = vpop.eup %2285 }
 0x1c9   :  { %v432_v44 = vmul.f32 %v2286_v43, %v2745_v51 }
 0x1ca   :  { %592 = vmatmul.mubr.f32.gmra.mxu1 %v430_v38 }
 0x1cb   :  { %597 = vmatprep.mubr.f32.mxu1 %v2480_v0  ;;  %v2288_v45 = vpop.eup %2287 }
 0x1cc   :  { %v433_v46 = vmul.f32 %v2288_v45, %v2755_v62  ;;  %v2290_v48 = vpop.eup %2289 }
 0x1cd   :  { %v434_v49 = vmul.f32 %v2290_v48, %v2758_v63 }
 0x1ce   :  { %598 = vmatmul.mubr.f32.gmra.mxu1 %v431_v42 }
 0x1cf   :  { %603 = vmatprep.mubr.f32.mxu1 %v2480_v0 }
 0x1d2   :  { %604 = vmatmul.mubr.f32.gmra.mxu1 %v432_v44 }
 0x1d3   :  { %609 = vmatprep.mubr.f32.mxu1 %v2480_v0 }
 0x1d6   :  { %610 = vmatmul.mubr.f32.gmra.mxu1 %v433_v46 }
 0x1d7   :  { %615 = vmatprep.mubr.f32.mxu1 %v2480_v0 }
 0x1da   :  { %616 = vmatmul.mubr.f32.gmra.mxu1 %v434_v49 }
 0x1db   :  { %1057 = vmatprep.mubr.f32.mxu1 %v2480_v0 }
 0x26a   :  { %v545_v10 = vpop.f32.mrf.mxu1 }
 0x26b   :  { %v546_v11 = vadd.f32 %v545_v10, %v2801_v56 }
 0x26c   :  { %v547_v12 = vpop.f32.mrf.mxu1 }
 0x26d   :  { %v548_v14 = vadd.f32 %v547_v12, %v2805_v9  ;;  %v622_v15 = vmax.f32 %v546_v11, 0.0 }
 0x26e   :  { %v551_v16 = vpop.f32.mrf.mxu1 }
 0x26f   :  { %v623_v17 = vmax.f32 %v548_v14, 0.0  ;;  %v552_v18 = vadd.f32 %v551_v16, %v2801_v56  ;;  %v648_v23 = vmul.f32 %v622_v15, %v622_v15 }
 0x270   :  { %v553_v19 = vpop.f32.mrf.mxu1 }
 0x271   :  { %v649_v20 = vmul.f32 %v623_v17, %v623_v17  ;;  %v554_v21 = vadd.f32 %v553_v19, %v2805_v9  ;;  %v624_v24 = vmax.f32 %v552_v18, 0.0 }
 0x272   :  { %v557_v25 = vpop.f32.mrf.mxu1 }
 0x273   :  { %v625_v26 = vmax.f32 %v554_v21, 0.0  ;;  %v558_v27 = vadd.f32 %v557_v25, %v2801_v56  ;;  %777 = vmatprep.mubr.f32.mxu0 %v649_v20  ;;  %v650_v31 = vmul.f32 %v624_v24, %v624_v24 }
 0x274   :  { %v559_v28 = vpop.f32.mrf.mxu1  ;;  %778 = vmatmul.mubr.f32.vlgmr.msra.gmra.mxu0 %v648_v23 }
 0x275   :  { %v651_v29 = vmul.f32 %v625_v26, %v625_v26  ;;  %v560_v30 = vadd.f32 %v559_v28, %v2805_v9  ;;  %v626_v33 = vmax.f32 %v558_v27, 0.0 }
 0x276   :  { %v563_v34 = vpop.f32.mrf.mxu1 }
 0x277   :  { %v627_v35 = vmax.f32 %v560_v30, 0.0  ;;  %v564_v36 = vadd.f32 %v563_v34, %v2801_v56  ;;  %782 = vmatprep.mubr.f32.mxu0 %v651_v29  ;;  %v652_v42 = vmul.f32 %v626_v33, %v626_v33 }
 0x278   :  { %v565_v37 = vpop.f32.mrf.mxu1  ;;  %783 = vmatmul.mubr.f32.gmra.mxu0 %v650_v31 }
 0x279   :  { %v653_v38 = vmul.f32 %v627_v35, %v627_v35  ;;  %v566_v39 = vadd.f32 %v565_v37, %v2805_v9  ;;  %v628_v43 = vmax.f32 %v564_v36, 0.0 }
 0x27a   :  { %v569_v44 = vpop.f32.mrf.mxu1 }
 0x27b   :  { %v629_v45 = vmax.f32 %v566_v39, 0.0  ;;  %v570_v46 = vadd.f32 %v569_v44, %v2801_v56  ;;  %787 = vmatprep.mubr.f32.mxu0 %v653_v38  ;;  %v654_v53 = vmul.f32 %v628_v43, %v628_v43 }
 0x27c   :  { %v571_v48 = vpop.f32.mrf.mxu1  ;;  %788 = vmatmul.mubr.f32.gmra.mxu0 %v652_v42 }
 0x27d   :  { %v655_v49 = vmul.f32 %v629_v45, %v629_v45  ;;  %v572_v52 = vadd.f32 %v571_v48, %v2805_v9  ;;  %v630_v54 = vmax.f32 %v570_v46, 0.0 }
 0x27e   :  { %v575_v55 = vpop.f32.mrf.mxu1 }
 0x27f   :  { %v631_v57 = vmax.f32 %v572_v52, 0.0  ;;  %v576_v59 = vadd.f32 %v575_v55, %v2801_v56  ;;  %792 = vmatprep.mubr.f32.mxu0 %v655_v49  ;;  %v656_v3 = vmul.f32 %v630_v54, %v630_v54 }
 0x280   :  { %v577_v60 = vpop.f32.mrf.mxu1  ;;  %793 = vmatmul.mubr.f32.gmra.mxu0 %v654_v53 }
 0x281   :  { %v657_v61 = vmul.f32 %v631_v57, %v631_v57  ;;  %v578_v2 = vadd.f32 %v577_v60, %v2805_v9  ;;  %v632_v6 = vmax.f32 %v576_v59, 0.0 }
 0x282   :  { %v581_v10 = vpop.f32.mrf.mxu1 }
 0x283   :  { %v633_v11 = vmax.f32 %v578_v2, 0.0  ;;  %v582_v12 = vadd.f32 %v581_v10, %v2801_v56  ;;  %797 = vmatprep.mubr.f32.mxu0 %v657_v61  ;;  %v658_v17 = vmul.f32 %v632_v6, %v632_v6 }
 0x284   :  { %v583_v14 = vpop.f32.mrf.mxu1  ;;  %798 = vmatmul.mubr.f32.gmra.mxu0 %v656_v3 }
 0x285   :  { %v659_v15 = vmul.f32 %v633_v11, %v633_v11  ;;  %v584_v16 = vadd.f32 %v583_v14, %v2805_v9  ;;  %v634_v18 = vmax.f32 %v582_v12, 0.0 }
 0x286   :  { %v587_v20 = vpop.f32.mrf.mxu1 }
 0x287   :  { %v635_v19 = vmax.f32 %v584_v16, 0.0  ;;  %802 = vmatprep.mubr.f32.mxu0 %v659_v15  ;;  %v588_v21 = vadd.f32 %v587_v20, %v2801_v56  ;;  %v660_v25 = vmul.f32 %v634_v18, %v634_v18 }
 0x288   :  { %803 = vmatmul.mubr.f32.gmra.mxu0 %v658_v17  ;;  %v589_v24 = vpop.f32.mrf.mxu1 }
 0x289   :  { %v661_v23 = vmul.f32 %v635_v19, %v635_v19  ;;  %v590_v26 = vadd.f32 %v589_v24, %v2805_v9  ;;  %v636_v27 = vmax.f32 %v588_v21, 0.0 }
 0x28a   :  { %v593_v28 = vpop.f32.mrf.mxu1 }
 0x28b   :  { %807 = vmatprep.mubr.f32.mxu0 %v661_v23  ;;  %v637_v29 = vmax.f32 %v590_v26, 0.0  ;;  %v594_v30 = vadd.f32 %v593_v28, %v2801_v56  ;;  %v662_v35 = vmul.f32 %v636_v27, %v636_v27  ;;  %v979_v26 = vld [vmem:[#allocation7 + $0x1f8] sm:$0xff]  ;;  %v978_v27 = vld [vmem:[#allocation7 + $0x1f0] sm:$0xff]  ;;  %v977_v28 = vld [vmem:[#allocation7 + $0x1e8] sm:$0xff] }
 0x28c   :  { %808 = vmatmul.mubr.f32.gmra.mxu0 %v660_v25  ;;  %v595_v31 = vpop.f32.mrf.mxu1  ;;  %993 = vmatprep.subr.mxu1 %v979_v26 }
 0x28d   :  { %v663_v33 = vmul.f32 %v637_v29, %v637_v29  ;;  %v596_v34 = vadd.f32 %v595_v31, %v2805_v9  ;;  %v638_v36 = vmax.f32 %v594_v30, 0.0  ;;  %994 = vmatpush1.msra.mxu1 %v978_v27  ;;  %v975_v29 = vld [vmem:[#allocation7 + $0x1d8] sm:$0xff]  ;;  %v974_v30 = vld [vmem:[#allocation7 + $0x1d0] sm:$0xff]  ;;  %v972_v31 = vld [vmem:[#allocation7 + $0x1c0] sm:$0xff] }
 0x28e   :  { %v599_v37 = vpop.f32.mrf.mxu1  ;;  %995 = vmatprep.subr.mxu1 %v977_v28 }
 0x28f   :  { %v639_v38 = vmax.f32 %v596_v34, 0.0  ;;  %v600_v39 = vadd.f32 %v599_v37, %v2801_v56  ;;  %812 = vmatprep.mubr.f32.mxu0 %v663_v33  ;;  %v664_v45 = vmul.f32 %v638_v36, %v638_v36  ;;  %v971_v33 = vld [vmem:[#allocation7 + $0x1b8] sm:$0xff]  ;;  %v970_v34 = vld [vmem:[#allocation7 + $0x1b0] sm:$0xff]  ;;  %v968_v36 = vld [vmem:[#allocation7 + $0x1a0] sm:$0xff] }
 0x290   :  { %v601_v42 = vpop.f32.mrf.mxu1  ;;  %813 = vmatmul.mubr.f32.gmra.mxu0 %v662_v35  ;;  %v969_v35 = vld [vmem:[#allocation7 + $0x1a8] sm:$0xff]  ;;  %v967_v37 = vld [vmem:[#allocation7 + $0x198] sm:$0xff] }
 0x291   :  { %v665_v43 = vmul.f32 %v639_v38, %v639_v38  ;;  %v602_v44 = vadd.f32 %v601_v42, %v2805_v9  ;;  %v640_v46 = vmax.f32 %v600_v39, 0.0  ;;  %v966_v38 = vld [vmem:[#allocation7 + $0x190] sm:$0xff]  ;;  %v965_v39 = vld [vmem:[#allocation7 + $0x188] sm:$0xff]  ;;  %v964_v42 = vld [vmem:[#allocation7 + $0x180] sm:$0xff] }
 0x292   :  { %v605_v48 = vpop.f32.mrf.mxu1 }
 0x293   :  { %v641_v49 = vmax.f32 %v602_v44, 0.0  ;;  %v606_v52 = vadd.f32 %v605_v48, %v2801_v56  ;;  %817 = vmatprep.mubr.f32.mxu0 %v665_v43  ;;  %v666_v57 = vmul.f32 %v640_v46, %v640_v46  ;;  %v963_v43 = vld [vmem:[#allocation7 + $0x178] sm:$0xff]  ;;  %v962_v44 = vld [vmem:[#allocation7 + $0x170] sm:$0xff]  ;;  %v960_v46 = vld [vmem:[#allocation7 + $0x160] sm:$0xff] }
 0x294   :  { %v607_v53 = vpop.f32.mrf.mxu1  ;;  %818 = vmatmul.mubr.f32.gmra.mxu0 %v664_v45  ;;  %v961_v45 = vld [vmem:[#allocation7 + $0x168] sm:$0xff] }
 0x295   :  { %v667_v54 = vmul.f32 %v641_v49, %v641_v49  ;;  %v608_v55 = vadd.f32 %v607_v53, %v2805_v9  ;;  %v642_v59 = vmax.f32 %v606_v52, 0.0  ;;  %v2836_v49 = vld [vmem:[%s3241_s8] ss:$0 sm:$0xff] }
 0x296   :  { %v611_v60 = vpop.f32.mrf.mxu1 }
 0x297   :  { %v643_v61 = vmax.f32 %v608_v55, 0.0  ;;  %v612_v2 = vadd.f32 %v611_v60, %v2801_v56  ;;  %822 = vmatprep.mubr.f32.mxu0 %v667_v54  ;;  %v668_v11 = vmul.f32 %v642_v59, %v642_v59 }
 0x298   :  { %v613_v3 = vpop.f32.mrf.mxu1  ;;  %823 = vmatmul.mubr.f32.gmra.mxu0 %v666_v57 }
 0x299   :  { %v669_v6 = vmul.f32 %v643_v61, %v643_v61  ;;  %v614_v10 = vadd.f32 %v613_v3, %v2805_v9  ;;  %v644_v12 = vmax.f32 %v612_v2, 0.0 }
 0x29a   :  { %v617_v14 = vpop.f32.mrf.mxu1 }
 0x29b   :  { %v645_v15 = vmax.f32 %v614_v10, 0.0  ;;  %v618_v16 = vadd.f32 %v617_v14, %v2801_v56  ;;  %827 = vmatprep.mubr.f32.mxu0 %v669_v6  ;;  %v670_v20 = vmul.f32 %v644_v12, %v644_v12  ;;  %v976_v56 = vld [vmem:[#allocation7 + $0x1e0] sm:$0xff] }
 0x29c   :  { %v619_v17 = vpop.f32.mrf.mxu1  ;;  %828 = vmatmul.mubr.f32.gmra.mxu0 %v668_v11  ;;  %996 = vmatpush1.msra.mxu1 %v976_v56 }
 0x29d   :  { %v671_v18 = vmul.f32 %v645_v15, %v645_v15  ;;  %v620_v19 = vadd.f32 %v619_v17, %v2805_v9  ;;  %v646_v21 = vmax.f32 %v618_v16, 0.0  ;;  %v973_v9 = vld [vmem:[#allocation7 + $0x1c8] sm:$0xff]  ;;  %997 = vmatprep.subr.mxu1 %v975_v29 }
 0x29e   :  { %998 = vmatpush1.msra.mxu1 %v974_v30  ;;  %v959_v30 = vld [vmem:[#allocation7 + $0x158] sm:$0xff] }
 0x29f   :  { %v647_v23 = vmax.f32 %v620_v19, 0.0  ;;  %832 = vmatprep.mubr.f32.mxu0 %v671_v18  ;;  %v672_v25 = vmul.f32 %v646_v21, %v646_v21  ;;  %999 = vmatprep.subr.mxu1 %v973_v9  ;;  %v958_v9 = vld [vmem:[#allocation7 + $0x150] sm:$0xff] }
 0x2a0   :  { %833 = vmatmul.mubr.f32.gmra.mxu0 %v670_v20  ;;  %1000 = vmatpush1.msra.mxu1 %v972_v31  ;;  %v957_v31 = vld [vmem:[#allocation7 + $0x148] sm:$0xff] }
 0x2a1   :  { %v673_v24 = vmul.f32 %v647_v23, %v647_v23  ;;  %1001 = vmatprep.subr.mxu1 %v971_v33 }
 0x2a2   :  { %1002 = vmatpush1.msra.mxu1 %v970_v34 }
 0x2a3   :  { %837 = vmatprep.mubr.f32.mxu0 %v673_v24  ;;  %1003 = vmatprep.subr.mxu1 %v969_v35 }
 0x2a4   :  { %838 = vmatmul.mubr.f32.gmra.mxu0 %v672_v25  ;;  %1004 = vmatpush1.msra.mxu1 %v968_v36 }
 0x2a5   :  { %1005 = vmatprep.subr.mxu1 %v967_v37 }
 0x2a6   :  { %1006 = vmatpush1.msra.mxu1 %v966_v38  ;;  %v956_v38 = vld [vmem:[#allocation7 + $0x140] sm:$0xff] }
 0x2a7   :  { %1007 = vmatprep.subr.mxu1 %v965_v39  ;;  %v955_v39 = vld [vmem:[#allocation7 + $0x138] sm:$0xff] }
 0x2a8   :  { %1008 = vmatpush1.msra.mxu1 %v964_v42  ;;  %v954_v42 = vld [vmem:[#allocation7 + $0x130] sm:$0xff] }
 0x2a9   :  { %1009 = vmatprep.subr.mxu1 %v963_v43 }
 0x2aa   :  { %1010 = vmatpush1.msra.mxu1 %v962_v44 }
 0x2ab   :  { %1011 = vmatprep.subr.mxu1 %v961_v45 }
 0x2ac   :  { %1012 = vmatpush1.msra.mxu1 %v960_v46 }
 0x2ad   :  { %1013 = vmatprep.subr.mxu1 %v959_v30 }
 0x2ae   :  { %1014 = vmatpush1.msra.mxu1 %v958_v9 }
 0x2af   :  { %1015 = vmatprep.subr.mxu1 %v957_v31 }
 0x2b0   :  { %1016 = vmatpush1.msra.mxu1 %v956_v38  ;;  %v1201_v38 = vld [vmem:[#allocation8 + $0x160] sm:$0xff] }
 0x2b1   :  { %1017 = vmatprep.subr.mxu1 %v955_v39  ;;  %v1200_v39 = vld [vmem:[#allocation8 + $0x158] sm:$0xff] }
 0x2b2   :  { %1018 = vmatpush1.msra.mxu1 %v954_v42  ;;  %v1215_v42 = vld [vmem:[#allocation8 + $0x1d0] sm:$0xff] }
 0x334   :  { %v1896_v48 = vpop.f32.mrf.mxu0 }
 0x336   :  { %v1897_v52 = vpop.f32.mrf.mxu0 }
 0x337   :  { %v1898_v53 = vadd.f32 %v1897_v52, %v1896_v48  ;;  %v953_v48 = vld [vmem:[#allocation7 + $0x128] sm:$0xff]  ;;  %v952_v52 = vld [vmem:[#allocation7 + $0x120] sm:$0xff] }
 0x338   :  { %v1899_v54 = vpop.f32.mrf.mxu0  ;;  %1019 = vmatprep.subr.mxu1 %v953_v48  ;;  %v1197_v48 = vld [vmem:[#allocation8 + $0x140] sm:$0xff] }
 0x339   :  { %v780_v55 = vadd.f32 %v1898_v53, %v2836_v49  ;;  %1020 = vmatpush1.msra.mxu1 %v952_v52  ;;  %v1212_v52 = vld [vmem:[#allocation8 + $0x1b8] sm:$0xff] }
 0x33a   :  { %v1900_v57 = vpop.f32.mrf.mxu0 }
 0x33b   :  { %v2840_v59 = vadd.f32 %v780_v55, %v2699_v58  ;;  %v1901_v60 = vadd.f32 %v1900_v57, %v1899_v54 }
 0x33c   :  { %v1902_v61 = vpop.f32.mrf.mxu0 }
 0x33d   :  { %v785_v2 = vadd.f32 %v1901_v60, %v2836_v49  ;;  %v856_v3 = vmul.f32 %v2840_v59, %v2840_v59  ;;  %v951_v60 = vld [vmem:[#allocation7 + $0x118] sm:$0xff] }
 0x33e   :  { %v1903_v6 = vpop.f32.mrf.mxu0  ;;  %1021 = vmatprep.subr.mxu1 %v951_v60  ;;  %v1194_v60 = vld [vmem:[#allocation8 + $0x128] sm:$0xff] }
 0x33f   :  { %v2846_v10 = vadd.f32 %v785_v2, %v2704_v1  ;;  %v1904_v11 = vadd.f32 %v1903_v6, %v1902_v61  ;;  %869 = vadd.xlane.f32.xlu1 %v856_v3  ;;  %v950_v61 = vld [vmem:[#allocation7 + $0x110] sm:$0xff] }
 0x340   :  { %v1905_v12 = vpop.f32.mrf.mxu0  ;;  %1022 = vmatpush1.msra.mxu1 %v950_v61  ;;  %v1209_v61 = vld [vmem:[#allocation8 + $0x1a0] sm:$0xff] }
 0x341   :  { %v790_v14 = vadd.f32 %v1904_v11, %v2836_v49  ;;  %v857_v58 = vmul.f32 %v2846_v10, %v2846_v10  ;;  %v949_v11 = vld [vmem:[#allocation7 + $0x108] sm:$0xff] }
 0x342   :  { %v1906_v15 = vpop.f32.mrf.mxu0  ;;  %1023 = vmatprep.subr.mxu1 %v949_v11 }
 0x343   :  { %v2852_v16 = vadd.f32 %v790_v14, %v2709_v7  ;;  %v1907_v17 = vadd.f32 %v1906_v15, %v1905_v12  ;;  %871 = vadd.xlane.f32.xlu0 %v857_v58 }
 0x344   :  { %v1908_v18 = vpop.f32.mrf.mxu0 }
 0x345   :  { %v795_v19 = vadd.f32 %v1907_v17, %v2836_v49  ;;  %v858_v1 = vmul.f32 %v2852_v16, %v2852_v16 }
 0x346   :  { %v1909_v20 = vpop.f32.mrf.mxu0 }
 0x347   :  { %v2858_v21 = vadd.f32 %v795_v19, %v2714_v13  ;;  %v1910_v23 = vadd.f32 %v1909_v20, %v1908_v18  ;;  %873 = vadd.xlane.f32.xlu1 %v858_v1 }
 0x348   :  { %v1911_v24 = vpop.f32.mrf.mxu0 }
 0x349   :  { %v800_v25 = vadd.f32 %v1910_v23, %v2836_v49  ;;  %v859_v7 = vmul.f32 %v2858_v21, %v2858_v21 }
 0x34a   :  { %v1912_v26 = vpop.f32.mrf.mxu0 }
 0x34b   :  { %v2864_v27 = vadd.f32 %v800_v25, %v2721_v22  ;;  %v1913_v28 = vadd.f32 %v1912_v26, %v1911_v24  ;;  %875 = vadd.xlane.f32.xlu0 %v859_v7 }
 0x34c   :  { %v1914_v56 = vpop.f32.mrf.mxu0 }
 0x34d   :  { %v805_v29 = vadd.f32 %v1913_v28, %v2836_v49  ;;  %v860_v13 = vmul.f32 %v2864_v27, %v2864_v27 }
 0x34e   :  { %v1915_v33 = vpop.f32.mrf.mxu0 }
 0x34f   :  { %v2870_v34 = vadd.f32 %v805_v29, %v2726_v32  ;;  %v1916_v35 = vadd.f32 %v1915_v33, %v1914_v56  ;;  %877 = vadd.xlane.f32.xlu1 %v860_v13  ;;  %v1220_v33 = vld [vmem:[#allocation8 + $0x1f8] sm:$0xff] }
 0x350   :  { %v1917_v36 = vpop.f32.mrf.mxu0  ;;  %1935 = vmatprep.subr.mxu0 %v1220_v33 }
 0x351   :  { %v810_v22 = vadd.f32 %v1916_v35, %v2836_v49  ;;  %v861_v37 = vmul.f32 %v2870_v34, %v2870_v34  ;;  %v1204_v35 = vld [vmem:[#allocation8 + $0x178] sm:$0xff] }
 0x352   :  { %v1918_v44 = vpop.f32.mrf.mxu0  ;;  %1936 = vmatpush3.msra.mxu0 %v1204_v35 }
 0x353   :  { %v2876_v43 = vadd.f32 %v810_v22, %v2734_v41  ;;  %879 = vadd.xlane.f32.xlu0 %v861_v37  ;;  %v1919_v32 = vadd.f32 %v1918_v44, %v1917_v36  ;;  %v1219_v22 = vld [vmem:[#allocation8 + $0x1f0] sm:$0xff]  ;;  %v1218_v36 = vld [vmem:[#allocation8 + $0x1e8] sm:$0xff]  ;;  %v1217_v37 = vld [vmem:[#allocation8 + $0x1e0] sm:$0xff] }
 0x354   :  { %v1920_v45 = vpop.f32.mrf.mxu0  ;;  %1937 = vmatprep.subr.mxu0 %v1219_v22  ;;  %v1199_v44 = vld [vmem:[#allocation8 + $0x150] sm:$0xff] }
 0x355   :  { %v862_v46 = vmul.f32 %v2876_v43, %v2876_v43  ;;  %v815_v53 = vadd.f32 %v1919_v32, %v2836_v49  ;;  %v1214_v32 = vld [vmem:[#allocation8 + $0x1c8] sm:$0xff] }
 0x356   :  { %v1921_v54 = vpop.f32.mrf.mxu0 }
 0x357   :  { %881 = vadd.xlane.f32.xlu1 %v862_v46  ;;  %v2882_v41 = vadd.f32 %v815_v53, %v2742_v50  ;;  %v1922_v55 = vadd.f32 %v1921_v54, %v1920_v45  ;;  %v948_v50 = vld [vmem:[#allocation7 + $0x100] sm:$0xff]  ;;  %v1198_v45 = vld [vmem:[#allocation8 + $0x148] sm:$0xff]  ;;  %v1196_v53 = vld [vmem:[#allocation8 + $0x138] sm:$0xff] }
 0x358   :  { %v1923_v57 = vpop.f32.mrf.mxu0  ;;  %1024 = vmatpush1.msra.mxu1 %v948_v50  ;;  %v1213_v46 = vld [vmem:[#allocation8 + $0x1c0] sm:$0xff]  ;;  %v1211_v54 = vld [vmem:[#allocation8 + $0x1b0] sm:$0xff] }
 0x359   :  { %v820_v2 = vadd.f32 %v1922_v55, %v2836_v49  ;;  %v863_v3 = vmul.f32 %v2882_v41, %v2882_v41  ;;  %2107 = vmatprep.subr.mxu1 %v2480_v0  ;;  %v1195_v55 = vld [vmem:[#allocation8 + $0x130] sm:$0xff] }
 0x35a   :  { %v1924_v6 = vpop.f32.mrf.mxu0 }
 0x35b   :  { %v2888_v12 = vadd.f32 %v820_v2, %v2731_v40  ;;  %v1925_v14 = vadd.f32 %v1924_v6, %v1923_v57  ;;  %883 = vadd.xlane.f32.xlu0 %v863_v3  ;;  %v1210_v57 = vld [vmem:[#allocation8 + $0x1a8] sm:$0xff]  ;;  %v1193_v2 = vld [vmem:[#allocation8 + $0x120] sm:$0xff]  ;;  %v1208_v3 = vld [vmem:[#allocation8 + $0x198] sm:$0xff] }
 0x35c   :  { %v1926_v58 = vpop.f32.mrf.mxu0  ;;  %v1192_v6 = vld [vmem:[#allocation8 + $0x118] sm:$0xff] }
 0x35d   :  { %v825_v15 = vadd.f32 %v1925_v14, %v2836_v49  ;;  %v864_v17 = vmul.f32 %v2888_v12, %v2888_v12 }
 0x35e   :  { %v1927_v18 = vpop.f32.mrf.mxu0 }
 0x35f   :  { %v2895_v19 = vadd.f32 %v825_v15, %v2739_v47  ;;  %v1928_v1 = vadd.f32 %v1927_v18, %v1926_v58  ;;  %885 = vadd.xlane.f32.xlu1 %v864_v17 }
 0x360   :  { %v1929_v40 = vpop.f32.mrf.mxu0 }
 0x361   :  { %v830_v20 = vadd.f32 %v1928_v1, %v2836_v49  ;;  %v865_v23 = vmul.f32 %v2895_v19, %v2895_v19 }
 0x362   :  { %v1930_v24 = vpop.f32.mrf.mxu0 }
 0x363   :  { %v2901_v25 = vadd.f32 %v830_v20, %v2745_v51  ;;  %v1931_v7 = vadd.f32 %v1930_v24, %v1929_v40  ;;  %887 = vadd.xlane.f32.xlu0 %v865_v23 }
 0x364   :  { %v1932_v26 = vpop.f32.mrf.mxu0 }
 0x365   :  { %v835_v28 = vadd.f32 %v1931_v7, %v2836_v49  ;;  %v866_v47 = vmul.f32 %v2901_v25, %v2901_v25 }
 0x366   :  { %v1933_v56 = vpop.f32.mrf.mxu0 }
 0x367   :  { %v2907_v29 = vadd.f32 %v835_v28, %v2755_v62  ;;  %v1934_v13 = vadd.f32 %v1933_v56, %v1932_v26  ;;  %889 = vadd.xlane.f32.xlu1 %v866_v47  ;;  %v1203_v62 = vld [vmem:[#allocation8 + $0x170] sm:$0xff] }
 0x368   :  { %1938 = vmatpush3.msra.mxu0 %v1203_v62 }
 0x369   :  { %v840_v30 = vadd.f32 %v1934_v13, %v2836_v49  ;;  %v867_v51 = vmul.f32 %v2907_v29, %v2907_v29  ;;  %v1202_v49 = vld [vmem:[#allocation8 + $0x168] sm:$0xff]  ;;  %1939 = vmatprep.subr.mxu0 %v1218_v36 }
 0x36a   :  { %1940 = vmatpush3.msra.mxu0 %v1202_v49 }
 0x36b   :  { %v2913_v9 = vadd.f32 %v840_v30, %v2758_v63  ;;  %891 = vadd.xlane.f32.xlu0 %v867_v51  ;;  %v1216_v63 = vld [vmem:[#allocation8 + $0x1d8] sm:$0xff]  ;;  %1941 = vmatprep.subr.mxu0 %v1217_v37 }
 0x36c   :  { %1942 = vmatpush3.msra.mxu0 %v1201_v38 }
 0x36d   :  { %v868_v31 = vmul.f32 %v2913_v9, %v2913_v9  ;;  %1943 = vmatprep.subr.mxu0 %v1216_v63 }
 0x36e   :  { %1944 = vmatpush3.msra.mxu0 %v1200_v39 }
 0x36f   :  { %893 = vadd.xlane.f32.xlu1 %v868_v31  ;;  %1945 = vmatprep.subr.mxu0 %v1215_v42 }
 0x370   :  { %1946 = vmatpush3.msra.mxu0 %v1199_v44 }
 0x371   :  { %1947 = vmatprep.subr.mxu0 %v1214_v32 }
 0x372   :  { %1948 = vmatpush3.msra.mxu0 %v1198_v45 }
 0x373   :  { %1949 = vmatprep.subr.mxu0 %v1213_v46 }
 0x374   :  { %1950 = vmatpush3.msra.mxu0 %v1197_v48 }
 0x375   :  { %1951 = vmatprep.subr.mxu0 %v1212_v52 }
 0x376   :  { %1952 = vmatpush3.msra.mxu0 %v1196_v53 }
 0x377   :  { %1953 = vmatprep.subr.mxu0 %v1211_v54 }
 0x378   :  { %1954 = vmatpush3.msra.mxu0 %v1195_v55 }
 0x379   :  { %1955 = vmatprep.subr.mxu0 %v1210_v57 }
 0x37a   :  { %1956 = vmatpush3.msra.mxu0 %v1194_v60 }
 0x37b   :  { %1957 = vmatprep.subr.mxu0 %v1209_v61 }
 0x37c   :  { %1958 = vmatpush3.msra.mxu0 %v1193_v2 }
 0x37d   :  { %1959 = vmatprep.subr.mxu0 %v1208_v3 }
 0x37e   :  { %1960 = vmatpush3.msra.mxu0 %v1192_v6 }
 0x3c8   :  { %v870_v11 = vpop.xlane.xlu1 %869 }
 0x3c9   :  { %v895_v14 = vmul.f32 0.0078125, %v870_v11 }
 0x3cb   :  { %v908_v50 = vadd.f32 1e-05, %v895_v14 }
 0x3cc   :  { %v872_v58 = vpop.xlane.xlu0 %871 }
 0x3cd   :  { %2291 = vrsqrt.f32 %v908_v50  ;;  %v896_v15 = vmul.f32 0.0078125, %v872_v58 }
 0x3cf   :  { %v909_v17 = vadd.f32 1e-05, %v896_v15 }
 0x3d0   :  { %v874_v18 = vpop.xlane.xlu1 %873 }
 0x3d1   :  { %2293 = vrsqrt.f32 %v909_v17  ;;  %v897_v1 = vmul.f32 0.0078125, %v874_v18 }
 0x3d3   :  { %v910_v40 = vadd.f32 1e-05, %v897_v1 }
 0x3d4   :  { %v876_v20 = vpop.xlane.xlu0 %875 }
 0x3d5   :  { %2295 = vrsqrt.f32 %v910_v40  ;;  %v898_v23 = vmul.f32 0.0078125, %v876_v20 }
 0x3d7   :  { %v911_v24 = vadd.f32 1e-05, %v898_v23 }
 0x3d8   :  { %v878_v7 = vpop.xlane.xlu1 %877 }
 0x3d9   :  { %2297 = vrsqrt.f32 %v911_v24  ;;  %v899_v26 = vmul.f32 0.0078125, %v878_v7 }
 0x3da   :  { %v2292_v28 = vpop.eup %2291 }
 0x3db   :  { %v912_v47 = vadd.f32 1e-05, %v899_v26  ;;  %v934_v56 = vmul.f32 %v2292_v28, %v2840_v59 }
 0x3dc   :  { %v880_v13 = vpop.xlane.xlu0 %879 }
 0x3dd   :  { %2299 = vrsqrt.f32 %v912_v47  ;;  %v900_v30 = vmul.f32 0.0078125, %v880_v13  ;;  %1058 = vmatmul.mubr.f32.vlgmr.msra.gmra.mxu1 %v934_v56 }
 0x3de   :  { %v2294_v51 = vpop.eup %2293  ;;  %1063 = vmatprep.mubr.f32.mxu1 %v2480_v0 }
 0x3df   :  { %v913_v31 = vadd.f32 1e-05, %v900_v30  ;;  %v935_v33 = vmul.f32 %v2294_v51, %v2846_v10  ;;  %v1207_v30 = vld [vmem:[#allocation8 + $0x190] sm:$0xff] }
 0x3e0   :  { %v882_v35 = vpop.xlane.xlu1 %881  ;;  %1961 = vmatprep.subr.mxu0 %v1207_v30  ;;  %v1191_v51 = vld [vmem:[#allocation8 + $0x110] sm:$0xff] }
 0x3e1   :  { %2301 = vrsqrt.f32 %v913_v31  ;;  %v901_v22 = vmul.f32 0.0078125, %v882_v35  ;;  %1064 = vmatmul.mubr.f32.gmra.mxu1 %v935_v33  ;;  %1962 = vmatpush3.msra.mxu0 %v1191_v51  ;;  %v1206_v31 = vld [vmem:[#allocation8 + $0x188] sm:$0xff]  ;;  %v1205_v35 = vld [vmem:[#allocation8 + $0x180] sm:$0xff] }
 0x3e2   :  { %v2296_v62 = vpop.eup %2295  ;;  %1069 = vmatprep.mubr.f32.mxu1 %v2480_v0  ;;  %1963 = vmatprep.subr.mxu0 %v1206_v31  ;;  %v1190_v33 = vld [vmem:[#allocation8 + $0x108] sm:$0xff] }
 0x3e3   :  { %v914_v36 = vadd.f32 1e-05, %v901_v22  ;;  %v936_v49 = vmul.f32 %v2296_v62, %v2852_v16  ;;  %1964 = vmatpush3.msra.mxu0 %v1190_v33  ;;  %v1189_v22 = vld [vmem:[#allocation8 + $0x100] sm:$0xff]  ;;  %v1844_v62 = vld [vmem:[%s3239_s6 + $0x2] sm:$0x3] }
 0x3e4   :  { %v884_v37 = vpop.xlane.xlu0 %883  ;;  %1965 = vmatprep.subr.mxu0 %v1205_v35 }
 0x3e5   :  { %2303 = vrsqrt.f32 %v914_v36  ;;  %1070 = vmatmul.mubr.f32.gmra.mxu1 %v936_v49  ;;  %v902_v63 = vmul.f32 0.0078125, %v884_v37  ;;  %1966 = vmatpush3.msra.mxu0 %v1189_v22  ;;  %v2950_v36 = vrot.slane %v1844_v62, %v471_v5  ;;  %v2954_v49 = vrot.slane %v1844_v62, %v475_v8 }
 0x3e6   :  { %v2298_v38 = vpop.eup %2297  ;;  %1075 = vmatprep.mubr.f32.mxu1 %v2480_v0  ;;  %2178 = vmatprep.subr.mxu0 %v2480_v0 }
 0x3e7   :  { %v937_v39 = vmul.f32 %v2298_v38, %v2858_v21  ;;  %v915_v42 = vadd.f32 1e-05, %v902_v63 }
 0x3e8   :  { %v886_v44 = vpop.xlane.xlu1 %885 }
 0x3e9   :  { %1076 = vmatmul.mubr.f32.gmra.mxu1 %v937_v39  ;;  %2305 = vrsqrt.f32 %v915_v42  ;;  %v903_v45 = vmul.f32 0.0078125, %v886_v44 }
 0x3ea   :  { %v2300_v32 = vpop.eup %2299  ;;  %1081 = vmatprep.mubr.f32.mxu1 %v2480_v0 }
 0x3eb   :  { %v938_v46 = vmul.f32 %v2300_v32, %v2864_v27  ;;  %v916_v48 = vadd.f32 1e-05, %v903_v45 }
 0x3ec   :  { %v888_v52 = vpop.xlane.xlu0 %887 }
 0x3ed   :  { %1082 = vmatmul.mubr.f32.gmra.mxu1 %v938_v46  ;;  %2307 = vrsqrt.f32 %v916_v48  ;;  %v904_v54 = vmul.f32 0.0078125, %v888_v52 }
 0x3ee   :  { %v2302_v53 = vpop.eup %2301  ;;  %1087 = vmatprep.mubr.f32.mxu1 %v2480_v0 }
 0x3ef   :  { %v939_v55 = vmul.f32 %v2302_v53, %v2870_v34  ;;  %v917_v57 = vadd.f32 1e-05, %v904_v54 }
 0x3f0   :  { %v890_v60 = vpop.xlane.xlu1 %889 }
 0x3f1   :  { %1088 = vmatmul.mubr.f32.gmra.mxu1 %v939_v55  ;;  %2309 = vrsqrt.f32 %v917_v57  ;;  %v905_v2 = vmul.f32 0.0078125, %v890_v60 }
 0x3f2   :  { %v2304_v61 = vpop.eup %2303  ;;  %1093 = vmatprep.mubr.f32.mxu1 %v2480_v0 }
 0x3f3   :  { %v940_v3 = vmul.f32 %v2304_v61, %v2876_v43  ;;  %v918_v6 = vadd.f32 1e-05, %v905_v2 }
 0x3f4   :  { %v892_v11 = vpop.xlane.xlu0 %891 }
 0x3f5   :  { %1094 = vmatmul.mubr.f32.gmra.mxu1 %v940_v3  ;;  %2311 = vrsqrt.f32 %v918_v6  ;;  %v906_v14 = vmul.f32 0.0078125, %v892_v11 }
 0x3f6   :  { %1099 = vmatprep.mubr.f32.mxu1 %v2480_v0  ;;  %v2306_v50 = vpop.eup %2305 }
 0x3f7   :  { %v919_v58 = vadd.f32 1e-05, %v906_v14  ;;  %v941_v15 = vmul.f32 %v2306_v50, %v2882_v41 }
 0x3f8   :  { %v894_v17 = vpop.xlane.xlu1 %893 }
 0x3f9   :  { %2313 = vrsqrt.f32 %v919_v58  ;;  %v907_v18 = vmul.f32 0.0078125, %v894_v17  ;;  %1100 = vmatmul.mubr.f32.gmra.mxu1 %v941_v15 }
 0x3fa   :  { %v2308_v1 = vpop.eup %2307  ;;  %1105 = vmatprep.mubr.f32.mxu1 %v2480_v0 }
 0x3fb   :  { %v920_v40 = vadd.f32 1e-05, %v907_v18  ;;  %v942_v20 = vmul.f32 %v2308_v1, %v2888_v12 }
 0x3fd   :  { %2315 = vrsqrt.f32 %v920_v40  ;;  %1106 = vmatmul.mubr.f32.gmra.mxu1 %v942_v20 }
 0x3fe   :  { %v2310_v23 = vpop.eup %2309  ;;  %1111 = vmatprep.mubr.f32.mxu1 %v2480_v0 }
 0x3ff   :  { %v943_v24 = vmul.f32 %v2310_v23, %v2895_v19 }
 0x401   :  { %1112 = vmatmul.mubr.f32.gmra.mxu1 %v943_v24 }
 0x402   :  { %v2312_v7 = vpop.eup %2311  ;;  %1117 = vmatprep.mubr.f32.mxu1 %v2480_v0 }
 0x403   :  { %v944_v26 = vmul.f32 %v2312_v7, %v2901_v25 }
 0x405   :  { %1118 = vmatmul.mubr.f32.gmra.mxu1 %v944_v26 }
 0x406   :  { %v2314_v28 = vpop.eup %2313  ;;  %1123 = vmatprep.mubr.f32.mxu1 %v2480_v0 }
 0x407   :  { %v945_v47 = vmul.f32 %v2314_v28, %v2907_v29 }
 0x409   :  { %1124 = vmatmul.mubr.f32.gmra.mxu1 %v945_v47 }
 0x40a   :  { %v2316_v56 = vpop.eup %2315  ;;  %1129 = vmatprep.mubr.f32.mxu1 %v2480_v0 }
 0x40b   :  { %v946_v13 = vmul.f32 %v2316_v56, %v2913_v9 }
 0x40d   :  { %1130 = vmatmul.mubr.f32.gmra.mxu1 %v946_v13 }
 0x40e   :  { %2139 = vmatprep.mubr.msk.f32.mxu1 %vm2481_vm0, %v2480_v0 }
 0x49d   :  { %v1059_v37 = vpop.f32.mrf.mxu1 }
 0x49e   :  { %v1060_v38 = vadd.f32 %v1059_v37, %v2950_v36 }
 0x49f   :  { %v1061_v63 = vpop.f32.mrf.mxu1 }
 0x4a0   :  { %v1062_v39 = vadd.f32 %v1061_v63, %v2954_v49  ;;  %v1136_v42 = vmax.f32 %v1060_v38, 0.0 }
 0x4a1   :  { %v1065_v44 = vpop.f32.mrf.mxu1 }
 0x4a2   :  { %v1137_v32 = vmax.f32 %v1062_v39, 0.0  ;;  %v1066_v45 = vadd.f32 %v1065_v44, %v2950_v36  ;;  %v1162_v52 = vmul.f32 %v1136_v42, %v1136_v42 }
 0x4a3   :  { %v1067_v46 = vpop.f32.mrf.mxu1 }
 0x4a4   :  { %v1163_v48 = vmul.f32 %v1137_v32, %v1137_v32  ;;  %v1068_v5 = vadd.f32 %v1067_v46, %v2954_v49  ;;  %v1138_v53 = vmax.f32 %v1066_v45, 0.0 }
 0x4a5   :  { %v1071_v4 = vpop.f32.mrf.mxu1 }
 0x4a6   :  { %v1139_v8 = vmax.f32 %v1068_v5, 0.0  ;;  %v1072_v54 = vadd.f32 %v1071_v4, %v2950_v36  ;;  %1293 = vmatprep.mubr.f32.mxu0 %v1163_v48  ;;  %v1164_v61 = vmul.f32 %v1138_v53, %v1138_v53 }
 0x4a7   :  { %v1073_v55 = vpop.f32.mrf.mxu1  ;;  %1294 = vmatmul.mubr.f32.vlgmr.msra.gmra.mxu0 %v1162_v52 }
 0x4a8   :  { %v1165_v57 = vmul.f32 %v1139_v8, %v1139_v8  ;;  %v1074_v60 = vadd.f32 %v1073_v55, %v2954_v49  ;;  %v1140_v2 = vmax.f32 %v1072_v54, 0.0 }
 0x4a9   :  { %v1077_v3 = vpop.f32.mrf.mxu1 }
 0x4aa   :  { %v1141_v6 = vmax.f32 %v1074_v60, 0.0  ;;  %v1078_v11 = vadd.f32 %v1077_v3, %v2950_v36  ;;  %1298 = vmatprep.mubr.f32.mxu0 %v1165_v57  ;;  %v1166_v15 = vmul.f32 %v1140_v2, %v1140_v2 }
 0x4ab   :  { %v1079_v14 = vpop.f32.mrf.mxu1  ;;  %1299 = vmatmul.mubr.f32.gmra.mxu0 %v1164_v61 }
 0x4ac   :  { %v1167_v50 = vmul.f32 %v1141_v6, %v1141_v6  ;;  %v1080_v58 = vadd.f32 %v1079_v14, %v2954_v49  ;;  %v1142_v17 = vmax.f32 %v1078_v11, 0.0 }
 0x4ad   :  { %v1083_v18 = vpop.f32.mrf.mxu1 }
 0x4ae   :  { %v1143_v1 = vmax.f32 %v1080_v58, 0.0  ;;  %v1084_v40 = vadd.f32 %v1083_v18, %v2950_v36  ;;  %1303 = vmatprep.mubr.f32.mxu0 %v1167_v50  ;;  %v1168_v7 = vmul.f32 %v1142_v17, %v1142_v17 }
 0x4af   :  { %v1085_v20 = vpop.f32.mrf.mxu1  ;;  %1304 = vmatmul.mubr.f32.gmra.mxu0 %v1166_v15 }
 0x4b0   :  { %v1169_v23 = vmul.f32 %v1143_v1, %v1143_v1  ;;  %v1086_v24 = vadd.f32 %v1085_v20, %v2954_v49  ;;  %v1144_v26 = vmax.f32 %v1084_v40, 0.0 }
 0x4b1   :  { %v1089_v28 = vpop.f32.mrf.mxu1 }
 0x4b2   :  { %v1145_v47 = vmax.f32 %v1086_v24, 0.0  ;;  %v1090_v56 = vadd.f32 %v1089_v28, %v2950_v36  ;;  %1308 = vmatprep.mubr.f32.mxu0 %v1169_v23  ;;  %v1170_v31 = vmul.f32 %v1144_v26, %v1144_v26 }
 0x4b3   :  { %v1091_v13 = vpop.f32.mrf.mxu1  ;;  %1309 = vmatmul.mubr.f32.gmra.mxu0 %v1168_v7 }
 0x4b4   :  { %v1171_v30 = vmul.f32 %v1145_v47, %v1145_v47  ;;  %v1092_v51 = vadd.f32 %v1091_v13, %v2954_v49  ;;  %v1146_v33 = vmax.f32 %v1090_v56, 0.0 }
 0x4b5   :  { %v1095_v35 = vpop.f32.mrf.mxu1 }
 0x4b6   :  { %v1147_v22 = vmax.f32 %v1092_v51, 0.0  ;;  %v1096_v62 = vadd.f32 %v1095_v35, %v2950_v36  ;;  %1313 = vmatprep.mubr.f32.mxu0 %v1171_v30  ;;  %v1172_v39 = vmul.f32 %v1146_v33, %v1146_v33 }
 0x4b7   :  { %v1097_v37 = vpop.f32.mrf.mxu1  ;;  %1314 = vmatmul.mubr.f32.gmra.mxu0 %v1170_v31 }
 0x4b8   :  { %v1173_v38 = vmul.f32 %v1147_v22, %v1147_v22  ;;  %v1098_v63 = vadd.f32 %v1097_v37, %v2954_v49  ;;  %v1148_v42 = vmax.f32 %v1096_v62, 0.0 }
 0x4b9   :  { %v1101_v32 = vpop.f32.mrf.mxu1 }
 0x4ba   :  { %v1149_v44 = vmax.f32 %v1098_v63, 0.0  ;;  %1318 = vmatprep.mubr.f32.mxu0 %v1173_v38  ;;  %v1102_v45 = vadd.f32 %v1101_v32, %v2950_v36  ;;  %v1174_v5 = vmul.f32 %v1148_v42, %v1148_v42 }
 0x4bb   :  { %1319 = vmatmul.mubr.f32.gmra.mxu0 %v1172_v39  ;;  %v1103_v48 = vpop.f32.mrf.mxu1 }
 0x4bc   :  { %v1175_v46 = vmul.f32 %v1149_v44, %v1149_v44  ;;  %v1104_v52 = vadd.f32 %v1103_v48, %v2954_v49  ;;  %v1150_v53 = vmax.f32 %v1102_v45, 0.0  ;;  %v1475_v48 = vld [vmem:[%s3242_s9 + $0x60] sm:$0xff] }
 0x4bd   :  { %v1107_v4 = vpop.f32.mrf.mxu1 }
 0x4be   :  { %1323 = vmatprep.mubr.f32.mxu0 %v1175_v46  ;;  %v1151_v8 = vmax.f32 %v1104_v52, 0.0  ;;  %v1108_v54 = vadd.f32 %v1107_v4, %v2950_v36  ;;  %v1176_v61 = vmul.f32 %v1150_v53, %v1150_v53  ;;  %v1476_v46 = vld [vmem:[%s3242_s9 + $0x68] sm:$0xff]  ;;  %v1473_v52 = vld [vmem:[%s3242_s9 + $0x50] sm:$0xff]  ;;  %v1471_v4 = vld [vmem:[%s3242_s9 + $0x40] sm:$0xff] }
 0x4bf   :  { %1324 = vmatmul.mubr.f32.gmra.mxu0 %v1174_v5  ;;  %v1109_v55 = vpop.f32.mrf.mxu1  ;;  %v1474_v5 = vld [vmem:[%s3242_s9 + $0x58] sm:$0xff]  ;;  %v1472_v53 = vld [vmem:[%s3242_s9 + $0x48] sm:$0xff] }
 0x4c0   :  { %v1177_v57 = vmul.f32 %v1151_v8, %v1151_v8  ;;  %v1110_v60 = vadd.f32 %v1109_v55, %v2954_v49  ;;  %v1152_v2 = vmax.f32 %v1108_v54, 0.0  ;;  %v1470_v8 = vld [vmem:[%s3242_s9 + $0x38] sm:$0xff]  ;;  %v1469_v54 = vld [vmem:[%s3242_s9 + $0x30] sm:$0xff] }
 0x4c1   :  { %v1113_v3 = vpop.f32.mrf.mxu1 }
 0x4c2   :  { %v1153_v6 = vmax.f32 %v1110_v60, 0.0  ;;  %v1114_v11 = vadd.f32 %v1113_v3, %v2950_v36  ;;  %1328 = vmatprep.mubr.f32.mxu0 %v1177_v57  ;;  %v1178_v15 = vmul.f32 %v1152_v2, %v1152_v2  ;;  %v3027_v57 = vld [vmem:[%s3241_s8 + $0x1] ss:$0 sm:$0xff] }
 0x4c3   :  { %v1115_v14 = vpop.f32.mrf.mxu1  ;;  %1329 = vmatmul.mubr.f32.gmra.mxu0 %v1176_v61 }
 0x4c4   :  { %v1179_v50 = vmul.f32 %v1153_v6, %v1153_v6  ;;  %v1116_v58 = vadd.f32 %v1115_v14, %v2954_v49  ;;  %v1154_v17 = vmax.f32 %v1114_v11, 0.0 }
 0x4c5   :  { %v1119_v18 = vpop.f32.mrf.mxu1 }
 0x4c6   :  { %v1155_v1 = vmax.f32 %v1116_v58, 0.0  ;;  %v1120_v40 = vadd.f32 %v1119_v18, %v2950_v36  ;;  %1333 = vmatprep.mubr.f32.mxu0 %v1179_v50  ;;  %v1180_v7 = vmul.f32 %v1154_v17, %v1154_v17 }
 0x4c7   :  { %v1121_v20 = vpop.f32.mrf.mxu1  ;;  %1334 = vmatmul.mubr.f32.gmra.mxu0 %v1178_v15 }
 0x4c8   :  { %v1181_v23 = vmul.f32 %v1155_v1, %v1155_v1  ;;  %v1122_v24 = vadd.f32 %v1121_v20, %v2954_v49  ;;  %v1156_v26 = vmax.f32 %v1120_v40, 0.0 }
 0x4c9   :  { %v1125_v28 = vpop.f32.mrf.mxu1 }
 0x4ca   :  { %v1157_v47 = vmax.f32 %v1122_v24, 0.0  ;;  %v1126_v56 = vadd.f32 %v1125_v28, %v2950_v36  ;;  %1338 = vmatprep.mubr.f32.mxu0 %v1181_v23  ;;  %v1182_v31 = vmul.f32 %v1156_v26, %v1156_v26 }
 0x4cb   :  { %v1127_v13 = vpop.f32.mrf.mxu1  ;;  %1339 = vmatmul.mubr.f32.gmra.mxu0 %v1180_v7 }
 0x4cc   :  { %v1183_v30 = vmul.f32 %v1157_v47, %v1157_v47  ;;  %v1128_v51 = vadd.f32 %v1127_v13, %v2954_v49  ;;  %v1158_v33 = vmax.f32 %v1126_v56, 0.0 }
 0x4cd   :  { %v1131_v35 = vpop.f32.mrf.mxu1 }
 0x4ce   :  { %v1159_v22 = vmax.f32 %v1128_v51, 0.0  ;;  %v1132_v62 = vadd.f32 %v1131_v35, %v2950_v36  ;;  %1343 = vmatprep.mubr.f32.mxu0 %v1183_v30  ;;  %v1184_v39 = vmul.f32 %v1158_v33, %v1158_v33  ;;  %v1478_v36 = vld [vmem:[%s3242_s9 + $0x78] sm:$0xff] }
 0x4cf   :  { %v1133_v37 = vpop.f32.mrf.mxu1  ;;  %1344 = vmatmul.mubr.f32.gmra.mxu0 %v1182_v31  ;;  %2108 = vmatpush3.msra.mxu1 %v1478_v36 }
 0x4d0   :  { %v1185_v38 = vmul.f32 %v1159_v22, %v1159_v22  ;;  %v1134_v63 = vadd.f32 %v1133_v37, %v2954_v49  ;;  %v1160_v42 = vmax.f32 %v1132_v62, 0.0  ;;  %v1477_v49 = vld [vmem:[%s3242_s9 + $0x70] sm:$0xff]  ;;  %2109 = vmatprep.subr.mxu1 %v2480_v0 }
 0x4d1   :  { %2110 = vmatpush3.msra.mxu1 %v1477_v49 }
 0x4d2   :  { %v1161_v44 = vmax.f32 %v1134_v63, 0.0  ;;  %1348 = vmatprep.mubr.f32.mxu0 %v1185_v38  ;;  %v1186_v45 = vmul.f32 %v1160_v42, %v1160_v42  ;;  %2111 = vmatprep.subr.mxu1 %v2480_v0 }
 0x4d3   :  { %1349 = vmatmul.mubr.f32.gmra.mxu0 %v1184_v39  ;;  %2112 = vmatpush3.msra.mxu1 %v1476_v46 }
 0x4d4   :  { %v1187_v32 = vmul.f32 %v1161_v44, %v1161_v44  ;;  %2113 = vmatprep.subr.mxu1 %v2480_v0 }
 0x4d5   :  { %2114 = vmatpush3.msra.mxu1 %v1475_v48 }
 0x4d6   :  { %1353 = vmatprep.mubr.f32.mxu0 %v1187_v32  ;;  %2115 = vmatprep.subr.mxu1 %v2480_v0  ;;  %v1467_v32 = vld [vmem:[%s3242_s9 + $0x20] sm:$0xff] }
 0x4d7   :  { %1354 = vmatmul.mubr.f32.gmra.mxu0 %v1186_v45  ;;  %2116 = vmatpush3.msra.mxu1 %v1474_v5  ;;  %v1466_v45 = vld [vmem:[%s3242_s9 + $0x18] sm:$0xff]  ;;  %v1465_v5 = vld [vmem:[%s3242_s9 + $0x10] sm:$0xff] }
 0x4d8   :  { %2210 = vmatprep.mubr.msk.f32.mxu0 %vm2481_vm0, %v2480_v0  ;;  %2117 = vmatprep.subr.mxu1 %v2480_v0 }
 0x4d9   :  { %2118 = vmatpush3.msra.mxu1 %v1473_v52 }
 0x4da   :  { %2119 = vmatprep.subr.mxu1 %v2480_v0 }
 0x4db   :  { %2120 = vmatpush3.msra.mxu1 %v1472_v53 }
 0x4dc   :  { %2121 = vmatprep.subr.mxu1 %v2480_v0 }
 0x4dd   :  { %2122 = vmatpush3.msra.mxu1 %v1471_v4 }
 0x4de   :  { %2123 = vmatprep.subr.mxu1 %v2480_v0 }
 0x4df   :  { %2124 = vmatpush3.msra.mxu1 %v1470_v8 }
 0x4e0   :  { %2125 = vmatprep.subr.mxu1 %v2480_v0 }
 0x4e1   :  { %2126 = vmatpush3.msra.mxu1 %v1469_v54  ;;  %v1464_v54 = vld [vmem:[%s3242_s9 + $0x8] sm:$0xff] }
 0x4e2   :  { %2127 = vmatprep.subr.mxu1 %v2480_v0 }
 0x567   :  { %v1967_v55 = vpop.f32.mrf.mxu0 }
 0x569   :  { %v1968_v60 = vpop.f32.mrf.mxu0 }
 0x56a   :  { %v1969_v61 = vadd.f32 %v1968_v60, %v1967_v55 }
 0x56b   :  { %v1970_v2 = vpop.f32.mrf.mxu0 }
 0x56c   :  { %v1296_v3 = vadd.f32 %v1969_v61, %v3027_v57 }
 0x56d   :  { %v1971_v6 = vpop.f32.mrf.mxu0 }
 0x56e   :  { %v1972_v11 = vadd.f32 %v1971_v6, %v1970_v2  ;;  %v3031_v14 = vadd.f32 %v1296_v3, %v2840_v59 }
 0x56f   :  { %v1973_v50 = vpop.f32.mrf.mxu0 }
 0x570   :  { %v1301_v58 = vadd.f32 %v1972_v11, %v3027_v57  ;;  %v1372_v15 = vmul.f32 %v3031_v14, %v3031_v14 }
 0x571   :  { %v1974_v17 = vpop.f32.mrf.mxu0 }
 0x572   :  { %v1975_v18 = vadd.f32 %v1974_v17, %v1973_v50  ;;  %1385 = vadd.xlane.f32.xlu0 %v1372_v15  ;;  %v3037_v1 = vadd.f32 %v1301_v58, %v2846_v10 }
 0x573   :  { %v1976_v40 = vpop.f32.mrf.mxu0 }
 0x574   :  { %v1306_v20 = vadd.f32 %v1975_v18, %v3027_v57  ;;  %v1373_v23 = vmul.f32 %v3037_v1, %v3037_v1 }
 0x575   :  { %v1977_v59 = vpop.f32.mrf.mxu0 }
 0x576   :  { %v1978_v24 = vadd.f32 %v1977_v59, %v1976_v40  ;;  %1387 = vadd.xlane.f32.xlu1 %v1373_v23  ;;  %v3043_v7 = vadd.f32 %v1306_v20, %v2852_v16 }
 0x577   :  { %v1979_v26 = vpop.f32.mrf.mxu0 }
 0x578   :  { %v1311_v28 = vadd.f32 %v1978_v24, %v3027_v57  ;;  %v1374_v47 = vmul.f32 %v3043_v7, %v3043_v7 }
 0x579   :  { %v1980_v10 = vpop.f32.mrf.mxu0 }
 0x57a   :  { %v1981_v56 = vadd.f32 %v1980_v10, %v1979_v26  ;;  %1389 = vadd.xlane.f32.xlu0 %v1374_v47  ;;  %v3049_v13 = vadd.f32 %v1311_v28, %v2858_v21  ;;  %v1468_v21 = vld [vmem:[%s3242_s9 + $0x28] sm:$0xff] }
 0x57b   :  { %v1982_v30 = vpop.f32.mrf.mxu0  ;;  %2128 = vmatpush3.msra.mxu1 %v1468_v21  ;;  %v1648_v21 = vld [vmem:[#allocation10 + $0x30] sm:$0xff] }
 0x57c   :  { %v1316_v51 = vadd.f32 %v1981_v56, %v3027_v57  ;;  %v1375_v31 = vmul.f32 %v3049_v13, %v3049_v13  ;;  %2129 = vmatprep.subr.mxu1 %v2480_v0 }
 0x57d   :  { %v1983_v16 = vpop.f32.mrf.mxu0  ;;  %2130 = vmatpush3.msra.mxu1 %v1467_v32 }
 0x57e   :  { %v1984_v33 = vadd.f32 %v1983_v16, %v1982_v30  ;;  %1391 = vadd.xlane.f32.xlu1 %v1375_v31  ;;  %v3055_v35 = vadd.f32 %v1316_v51, %v2864_v27  ;;  %2131 = vmatprep.subr.mxu1 %v2480_v0  ;;  %v1657_v31 = vld [vmem:[#allocation10 + $0x78] sm:$0xff]  ;;  %v1656_v16 = vld [vmem:[#allocation10 + $0x70] sm:$0xff] }
 0x57f   :  { %v1985_v22 = vpop.f32.mrf.mxu0  ;;  %2132 = vmatpush3.msra.mxu1 %v1466_v45  ;;  %2179 = vmatpush3.msra.mxu0 %v1657_v31 }
 0x580   :  { %v1321_v62 = vadd.f32 %v1984_v33, %v3027_v57  ;;  %v1376_v37 = vmul.f32 %v3055_v35, %v3055_v35  ;;  %2133 = vmatprep.subr.mxu1 %v2480_v0  ;;  %2180 = vmatprep.subr.mxu0 %v2480_v0  ;;  %v1653_v33 = vld [vmem:[#allocation10 + $0x58] sm:$0xff] }
 0x581   :  { %v1986_v38 = vpop.f32.mrf.mxu0  ;;  %2134 = vmatpush3.msra.mxu1 %v1465_v5  ;;  %2181 = vmatpush3.msra.mxu0 %v1656_v16 }
 0x582   :  { %v1987_v63 = vadd.f32 %v1986_v38, %v1985_v22  ;;  %1393 = vadd.xlane.f32.xlu0 %v1376_v37  ;;  %v3064_v39 = vadd.f32 %v1321_v62, %v2870_v34  ;;  %2135 = vmatprep.subr.mxu1 %v2480_v0  ;;  %v1651_v22 = vld [vmem:[#allocation10 + $0x48] sm:$0xff]  ;;  %v1650_v62 = vld [vmem:[#allocation10 + $0x40] sm:$0xff]  ;;  %v1649_v37 = vld [vmem:[#allocation10 + $0x38] sm:$0xff] }
 0x583   :  { %v1988_v42 = vpop.f32.mrf.mxu0  ;;  %2136 = vmatpush3.msra.mxu1 %v1464_v54  ;;  %2182 = vmatprep.subr.mxu0 %v2480_v0  ;;  %v1647_v38 = vld [vmem:[#allocation10 + $0x28] sm:$0xff] }
 0x584   :  { %v1326_v27 = vadd.f32 %v1987_v63, %v3027_v57  ;;  %v1377_v44 = vmul.f32 %v3064_v39, %v3064_v39  ;;  %2137 = vmatprep.subr.mxu1 %v2480_v0  ;;  %v1646_v63 = vld [vmem:[#allocation10 + $0x20] sm:$0xff] }
 0x585   :  { %v1989_v36 = vpop.f32.mrf.mxu0 }
 0x586   :  { %1395 = vadd.xlane.f32.xlu1 %v1377_v44  ;;  %v3077_v34 = vadd.f32 %v1326_v27, %v2876_v43  ;;  %v1990_v49 = vadd.f32 %v1989_v36, %v1988_v42  ;;  %v1645_v27 = vld [vmem:[#allocation10 + $0x18] sm:$0xff]  ;;  %v1644_v42 = vld [vmem:[#allocation10 + $0x10] sm:$0xff] }
 0x587   :  { %v1991_v46 = vpop.f32.mrf.mxu0 }
 0x588   :  { %v1378_v48 = vmul.f32 %v3077_v34, %v3077_v34  ;;  %v1331_v52 = vadd.f32 %v1990_v49, %v3027_v57 }
 0x589   :  { %v1992_v53 = vpop.f32.mrf.mxu0 }
 0x58a   :  { %1397 = vadd.xlane.f32.xlu0 %v1378_v48  ;;  %v1993_v43 = vadd.f32 %v1992_v53, %v1991_v46  ;;  %v3089_v4 = vadd.f32 %v1331_v52, %v2882_v41  ;;  %v1463_v41 = vld [vmem:[%s3242_s9] sm:$0xff] }
 0x58b   :  { %v1994_v8 = vpop.f32.mrf.mxu0  ;;  %2138 = vmatpush3.msra.mxu1 %v1463_v41 }
 0x58c   :  { %v1336_v55 = vadd.f32 %v1993_v43, %v3027_v57  ;;  %v1379_v60 = vmul.f32 %v3089_v4, %v3089_v4 }
 0x58d   :  { %v1995_v61 = vpop.f32.mrf.mxu0 }
 0x58e   :  { %v1996_v2 = vadd.f32 %v1995_v61, %v1994_v8  ;;  %1399 = vadd.xlane.f32.xlu1 %v1379_v60  ;;  %v3099_v3 = vadd.f32 %v1336_v55, %v2888_v12 }
 0x58f   :  { %v1997_v6 = vpop.f32.mrf.mxu0 }
 0x590   :  { %v1341_v11 = vadd.f32 %v1996_v2, %v3027_v57  ;;  %v1380_v50 = vmul.f32 %v3099_v3, %v3099_v3 }
 0x591   :  { %v1998_v58 = vpop.f32.mrf.mxu0 }
 0x592   :  { %v1999_v15 = vadd.f32 %v1998_v58, %v1997_v6  ;;  %1401 = vadd.xlane.f32.xlu0 %v1380_v50  ;;  %v3108_v17 = vadd.f32 %v1341_v11, %v2895_v19 }
 0x593   :  { %v2000_v18 = vpop.f32.mrf.mxu0 }
 0x594   :  { %v1346_v12 = vadd.f32 %v1999_v15, %v3027_v57  ;;  %v1381_v40 = vmul.f32 %v3108_v17, %v3108_v17 }
 0x595   :  { %v2001_v20 = vpop.f32.mrf.mxu0 }
 0x596   :  { %v2002_v23 = vadd.f32 %v2001_v20, %v2000_v18  ;;  %1403 = vadd.xlane.f32.xlu1 %v1381_v40  ;;  %v3114_v59 = vadd.f32 %v1346_v12, %v2901_v25 }
 0x597   :  { %v2003_v24 = vpop.f32.mrf.mxu0 }
 0x598   :  { %v1351_v26 = vadd.f32 %v2002_v23, %v3027_v57  ;;  %v1382_v28 = vmul.f32 %v3114_v59, %v3114_v59 }
 0x599   :  { %v2004_v19 = vpop.f32.mrf.mxu0 }
 0x59a   :  { %v2005_v47 = vadd.f32 %v2004_v19, %v2003_v24  ;;  %1405 = vadd.xlane.f32.xlu0 %v1382_v28  ;;  %v3120_v10 = vadd.f32 %v1351_v26, %v2907_v29  ;;  %v1655_v29 = vld [vmem:[#allocation10 + $0x68] sm:$0xff] }
 0x59b   :  { %2183 = vmatpush3.msra.mxu0 %v1655_v29 }
 0x59c   :  { %v1356_v56 = vadd.f32 %v2005_v47, %v3027_v57  ;;  %v1383_v30 = vmul.f32 %v3120_v10, %v3120_v10  ;;  %v1654_v57 = vld [vmem:[#allocation10 + $0x60] sm:$0xff]  ;;  %2184 = vmatprep.subr.mxu0 %v2480_v0 }
 0x59d   :  { %2185 = vmatpush3.msra.mxu0 %v1654_v57 }
 0x59e   :  { %1407 = vadd.xlane.f32.xlu1 %v1383_v30  ;;  %v3126_v25 = vadd.f32 %v1356_v56, %v2913_v9  ;;  %2186 = vmatprep.subr.mxu0 %v2480_v0  ;;  %v1652_v9 = vld [vmem:[#allocation10 + $0x50] sm:$0xff] }
 0x59f   :  { %2187 = vmatpush3.msra.mxu0 %v1653_v33 }
 0x5a0   :  { %v1384_v51 = vmul.f32 %v3126_v25, %v3126_v25  ;;  %2188 = vmatprep.subr.mxu0 %v2480_v0 }
 0x5a1   :  { %2189 = vmatpush3.msra.mxu0 %v1652_v9 }
 0x5a2   :  { %1409 = vadd.xlane.f32.xlu0 %v1384_v51  ;;  %2190 = vmatprep.subr.mxu0 %v2480_v0 }
 0x5a3   :  { %2191 = vmatpush3.msra.mxu0 %v1651_v22 }
 0x5a4   :  { %2192 = vmatprep.subr.mxu0 %v2480_v0 }
 0x5a5   :  { %2193 = vmatpush3.msra.mxu0 %v1650_v62 }
 0x5a6   :  { %2194 = vmatprep.subr.mxu0 %v2480_v0 }
 0x5a7   :  { %2195 = vmatpush3.msra.mxu0 %v1649_v37 }
 0x5a8   :  { %2196 = vmatprep.subr.mxu0 %v2480_v0 }
 0x5a9   :  { %2197 = vmatpush3.msra.mxu0 %v1648_v21 }
 0x5aa   :  { %2198 = vmatprep.subr.mxu0 %v2480_v0 }
 0x5ab   :  { %2199 = vmatpush3.msra.mxu0 %v1647_v38 }
 0x5ac   :  { %2200 = vmatprep.subr.mxu0 %v2480_v0 }
 0x5ad   :  { %2201 = vmatpush3.msra.mxu0 %v1646_v63 }
 0x5ae   :  { %2202 = vmatprep.subr.mxu0 %v2480_v0 }
 0x5af   :  { %2203 = vmatpush3.msra.mxu0 %v1645_v27 }
 0x5b0   :  { %2204 = vmatprep.subr.mxu0 %v2480_v0 }
 0x5b1   :  { %2205 = vmatpush3.msra.mxu0 %v1644_v42 }
 0x5b2   :  { %2206 = vmatprep.subr.mxu0 %v2480_v0 }
 0x5fb   :  { %v1386_v44 = vpop.xlane.xlu0 %1385 }
 0x5fc   :  { %v1411_v32 = vmul.f32 0.0078125, %v1386_v44 }
 0x5fe   :  { %v1424_v45 = vadd.f32 1e-05, %v1411_v32 }
 0x5ff   :  { %v1388_v36 = vpop.xlane.xlu1 %1387 }
 0x600   :  { %2317 = vrsqrt.f32 %v1424_v45  ;;  %v1412_v49 = vmul.f32 0.0078125, %v1388_v36 }
 0x602   :  { %v1425_v46 = vadd.f32 1e-05, %v1412_v49 }
 0x603   :  { %v1390_v48 = vpop.xlane.xlu0 %1389 }
 0x604   :  { %2319 = vrsqrt.f32 %v1425_v46  ;;  %v1413_v5 = vmul.f32 0.0078125, %v1390_v48  ;;  %v1643_v46 = vld [vmem:[#allocation10 + $0x8] sm:$0xff] }
 0x605   :  { %2207 = vmatpush3.msra.mxu0 %v1643_v46  ;;  %v3185_v48 = vld [vmem:[%s3243_s10] ss:$0 sm:$0xff] }
 0x606   :  { %v1426_v52 = vadd.f32 1e-05, %v1413_v5  ;;  %2208 = vmatprep.subr.mxu0 %v2480_v0 }
 0x607   :  { %v1392_v53 = vpop.xlane.xlu1 %1391 }
 0x608   :  { %2321 = vrsqrt.f32 %v1426_v52  ;;  %v1414_v43 = vmul.f32 0.0078125, %v1392_v53 }
 0x60a   :  { %v1427_v8 = vadd.f32 1e-05, %v1414_v43 }
 0x60b   :  { %v1394_v54 = vpop.xlane.xlu0 %1393 }
 0x60c   :  { %2323 = vrsqrt.f32 %v1427_v8  ;;  %v1415_v55 = vmul.f32 0.0078125, %v1394_v54 }
 0x60d   :  { %v2318_v60 = vpop.eup %2317 }
 0x60e   :  { %v1428_v61 = vadd.f32 1e-05, %v1415_v55  ;;  %v1450_v2 = vmul.f32 %v2318_v60, %v3031_v14 }
 0x60f   :  { %v1396_v41 = vpop.xlane.xlu1 %1395 }
 0x610   :  { %2325 = vrsqrt.f32 %v1428_v61  ;;  %v1416_v6 = vmul.f32 0.0078125, %v1396_v41  ;;  %2140 = vmatmul.mubr.f32.vlgmr.msra.gmra.mxu1 %v1450_v2 }
 0x611   :  { %v2320_v11 = vpop.eup %2319  ;;  %2142 = vmatprep.mubr.msk.f32.mxu1 %vm2481_vm0, %v2480_v0 }
 0x612   :  { %v1429_v50 = vadd.f32 1e-05, %v1416_v6  ;;  %v1451_v58 = vmul.f32 %v2320_v11, %v3037_v1 }
 0x613   :  { %v1398_v15 = vpop.xlane.xlu0 %1397 }
 0x614   :  { %2327 = vrsqrt.f32 %v1429_v50  ;;  %v1417_v18 = vmul.f32 0.0078125, %v1398_v15  ;;  %2143 = vmatmul.mubr.f32.gmra.mxu1 %v1451_v58 }
 0x615   :  { %v2322_v12 = vpop.eup %2321  ;;  %2145 = vmatprep.mubr.msk.f32.mxu1 %vm2481_vm0, %v2480_v0 }
 0x616   :  { %v1430_v14 = vadd.f32 1e-05, %v1417_v18  ;;  %v1452_v40 = vmul.f32 %v2322_v12, %v3043_v7 }
 0x617   :  { %v1400_v20 = vpop.xlane.xlu1 %1399 }
 0x618   :  { %2329 = vrsqrt.f32 %v1430_v14  ;;  %2146 = vmatmul.mubr.f32.gmra.mxu1 %v1452_v40  ;;  %v1418_v24 = vmul.f32 0.0078125, %v1400_v20 }
 0x619   :  { %v2324_v23 = vpop.eup %2323  ;;  %2148 = vmatprep.mubr.msk.f32.mxu1 %vm2481_vm0, %v2480_v0 }
 0x61a   :  { %v1453_v1 = vmul.f32 %v2324_v23, %v3049_v13  ;;  %v1431_v26 = vadd.f32 1e-05, %v1418_v24 }
 0x61b   :  { %v1402_v28 = vpop.xlane.xlu0 %1401 }
 0x61c   :  { %2149 = vmatmul.mubr.f32.gmra.mxu1 %v1453_v1  ;;  %2331 = vrsqrt.f32 %v1431_v26  ;;  %v1419_v47 = vmul.f32 0.0078125, %v1402_v28 }
 0x61d   :  { %v2326_v19 = vpop.eup %2325  ;;  %2151 = vmatprep.mubr.msk.f32.mxu1 %vm2481_vm0, %v2480_v0 }
 0x61e   :  { %v1454_v7 = vmul.f32 %v2326_v19, %v3055_v35  ;;  %v1432_v56 = vadd.f32 1e-05, %v1419_v47 }
 0x61f   :  { %v1404_v30 = vpop.xlane.xlu1 %1403 }
 0x620   :  { %2152 = vmatmul.mubr.f32.gmra.mxu1 %v1454_v7  ;;  %2333 = vrsqrt.f32 %v1432_v56  ;;  %v1420_v31 = vmul.f32 0.0078125, %v1404_v30 }
 0x621   :  { %v2328_v51 = vpop.eup %2327  ;;  %2154 = vmatprep.mubr.msk.f32.mxu1 %vm2481_vm0, %v2480_v0 }
 0x622   :  { %v1455_v13 = vmul.f32 %v2328_v51, %v3064_v39  ;;  %v1433_v16 = vadd.f32 1e-05, %v1420_v31 }
 0x623   :  { %v1406_v29 = vpop.xlane.xlu0 %1405 }
 0x624   :  { %2155 = vmatmul.mubr.f32.gmra.mxu1 %v1455_v13  ;;  %2335 = vrsqrt.f32 %v1433_v16  ;;  %v1421_v33 = vmul.f32 0.0078125, %v1406_v29 }
 0x625   :  { %v2330_v57 = vpop.eup %2329  ;;  %2157 = vmatprep.mubr.msk.f32.mxu1 %vm2481_vm0, %v2480_v0 }
 0x626   :  { %v1456_v35 = vmul.f32 %v2330_v57, %v3077_v34  ;;  %v1434_v9 = vadd.f32 1e-05, %v1421_v33 }
 0x627   :  { %v1408_v22 = vpop.xlane.xlu1 %1407 }
 0x628   :  { %2158 = vmatmul.mubr.f32.gmra.mxu1 %v1456_v35  ;;  %2337 = vrsqrt.f32 %v1434_v9  ;;  %v1422_v62 = vmul.f32 0.0078125, %v1408_v22 }
 0x629   :  { %2160 = vmatprep.mubr.msk.f32.mxu1 %vm2481_vm0, %v2480_v0  ;;  %v2332_v39 = vpop.eup %2331 }
 0x62a   :  { %v1435_v37 = vadd.f32 1e-05, %v1422_v62  ;;  %v1457_v21 = vmul.f32 %v2332_v39, %v3089_v4 }
 0x62b   :  { %v1410_v38 = vpop.xlane.xlu0 %1409 }
 0x62c   :  { %2339 = vrsqrt.f32 %v1435_v37  ;;  %v1423_v63 = vmul.f32 0.0078125, %v1410_v38  ;;  %2161 = vmatmul.mubr.f32.gmra.mxu1 %v1457_v21 }
 0x62d   :  { %v2334_v27 = vpop.eup %2333  ;;  %2163 = vmatprep.mubr.msk.f32.mxu1 %vm2481_vm0, %v2480_v0 }
 0x62e   :  { %v1436_v34 = vadd.f32 1e-05, %v1423_v63  ;;  %v1458_v42 = vmul.f32 %v2334_v27, %v3099_v3 }
 0x630   :  { %2341 = vrsqrt.f32 %v1436_v34  ;;  %2164 = vmatmul.mubr.f32.gmra.mxu1 %v1458_v42 }
 0x631   :  { %v2336_v44 = vpop.eup %2335  ;;  %2166 = vmatprep.mubr.msk.f32.mxu1 %vm2481_vm0, %v2480_v0 }
 0x632   :  { %v1459_v32 = vmul.f32 %v2336_v44, %v3108_v17 }
 0x634   :  { %2167 = vmatmul.mubr.f32.gmra.mxu1 %v1459_v32 }
 0x635   :  { %v2338_v4 = vpop.eup %2337  ;;  %2169 = vmatprep.mubr.msk.f32.mxu1 %vm2481_vm0, %v2480_v0 }
 0x636   :  { %v1460_v45 = vmul.f32 %v2338_v4, %v3114_v59  ;;  %v1642_v59 = vld [vmem:[#allocation10] sm:$0xff] }
 0x637   :  { %2209 = vmatpush3.msra.mxu0 %v1642_v59 }
 0x638   :  { %2170 = vmatmul.mubr.f32.gmra.mxu1 %v1460_v45 }
 0x639   :  { %v2340_v36 = vpop.eup %2339  ;;  %2172 = vmatprep.mubr.msk.f32.mxu1 %vm2481_vm0, %v2480_v0 }
 0x63a   :  { %v1461_v3 = vmul.f32 %v2340_v36, %v3120_v10 }
 0x63c   :  { %2173 = vmatmul.mubr.f32.gmra.mxu1 %v1461_v3 }
 0x63d   :  { %v2342_v49 = vpop.eup %2341  ;;  %2175 = vmatprep.mubr.msk.f32.mxu1 %vm2481_vm0, %v2480_v0 }
 0x63e   :  { %v1462_v17 = vmul.f32 %v2342_v49, %v3126_v25 }
 0x640   :  { %2176 = vmatmul.mubr.f32.gmra.mxu1 %v1462_v17 }
 0x6d0   :  { %v1552_v10 = vpop.f32.mrf.mxu1 }
 0x6d1   :  { %v1553_v5 = vadd.f32 %v3185_v48, %v1552_v10 }
 0x6d2   :  { %v2141_v52 = vpop.f32.mrf.mxu1 }
 0x6d3   :  { %v1616_v53 = vmax.f32 %v1553_v5, 0.0 }
 0x6d4   :  { %v1557_v43 = vpop.f32.mrf.mxu1 }
 0x6d5   :  { %v1629_v8 = vmul.f32 %v1616_v53, %v1616_v53  ;;  %v1558_v25 = vadd.f32 %v3185_v48, %v1557_v43  ;;  %v1848_v53 = vld [vmem:[%s3245_s12] ss:$0 sm:$0xff]  ;;  %s2482_s12 = smov [#allocation11]  }
 0x6d6   :  { %v2144_v54 = vpop.f32.mrf.mxu1  ;;  %s1813_s11 = sshll.u32 %s2482_s12, 4  ;;  %s1814_s11 = int_to_ptr.vmem [resolvable:$true] %s1813_s11 }
 0x6d7   :  { %v1617_v55 = vmax.f32 %v1558_v25, 0.0  ;;  %2211 = vmatmul.mubr.f32.vlgmr.msra.gmra.mxu0 %v1629_v8  ;;  %s2443_s18 = scalar_lea.vmem %s1814_s11, 1664  ;;  %p2448_p12 = scmp.lt.s32.totalorder %s1814_s11, %s1814_s11 }
 0x6d8   :  { %v1562_v60 = vpop.f32.mrf.mxu1  ;;  %2213 = vmatprep.mubr.msk.f32.mxu0 %vm2481_vm0, %v2480_v0  ;;  %p2444_p11 = scmp.ne.s32.totalorder %s1814_s11, %s2443_s18  ;;  %p2449_p13 = scmp.lt.s32.totalorder %s2443_s18, %s2443_s18 }
 0x6d9   :  { %v1630_v61 = vmul.f32 %v1617_v55, %v1617_v55  ;;  %v1563_v2 = vadd.f32 %v3185_v48, %v1562_v60 }
 0x6da   :  { %v2147_v41 = vpop.f32.mrf.mxu1  ;;  %p2450_p0 = por %p2449_p13, %p2448_p12 }
 0x6db   :  { %v1618_v6 = vmax.f32 %v1563_v2, 0.0  ;;  %2214 = vmatmul.mubr.f32.gmra.mxu0 %v1630_v61 }
 0x6dc   :  { %v1567_v11 = vpop.f32.mrf.mxu1  ;;  %2216 = vmatprep.mubr.msk.f32.mxu0 %vm2481_vm0, %v2480_v0  ;;  %p2451_p1 = pnand %p2450_p0, %p2444_p11 }
 0x6dd   :  { %v1631_v50 = vmul.f32 %v1618_v6, %v1618_v6  ;;  %v1568_v58 = vadd.f32 %v3185_v48, %v1567_v11 }
 0x6de   :  { %v2150_v15 = vpop.f32.mrf.mxu1 }
 0x6df   :  { %v1619_v18 = vmax.f32 %v1568_v58, 0.0  ;;  %2217 = vmatmul.mubr.f32.gmra.mxu0 %v1631_v50 }
 0x6e0   :  { %v1572_v12 = vpop.f32.mrf.mxu1  ;;  %2219 = vmatprep.mubr.msk.f32.mxu0 %vm2481_vm0, %v2480_v0 }
 0x6e1   :  { %v1632_v14 = vmul.f32 %v1619_v18, %v1619_v18  ;;  %v1573_v40 = vadd.f32 %v3185_v48, %v1572_v12 }
 0x6e2   :  { %v2153_v20 = vpop.f32.mrf.mxu1 }
 0x6e3   :  { %v1620_v23 = vmax.f32 %v1573_v40, 0.0  ;;  %2220 = vmatmul.mubr.f32.gmra.mxu0 %v1632_v14 }
 0x6e4   :  { %v1577_v24 = vpop.f32.mrf.mxu1  ;;  %2222 = vmatprep.mubr.msk.f32.mxu0 %vm2481_vm0, %v2480_v0 }
 0x6e5   :  { %v1633_v1 = vmul.f32 %v1620_v23, %v1620_v23  ;;  %v1578_v26 = vadd.f32 %v3185_v48, %v1577_v24 }
 0x6e6   :  { %v2156_v28 = vpop.f32.mrf.mxu1 }
 0x6e7   :  { %v1621_v19 = vmax.f32 %v1578_v26, 0.0  ;;  %2223 = vmatmul.mubr.f32.gmra.mxu0 %v1633_v1 }
 0x6e8   :  { %v1582_v47 = vpop.f32.mrf.mxu1  ;;  %2225 = vmatprep.mubr.msk.f32.mxu0 %vm2481_vm0, %v2480_v0 }
 0x6e9   :  { %v1634_v7 = vmul.f32 %v1621_v19, %v1621_v19  ;;  %v1583_v56 = vadd.f32 %v3185_v48, %v1582_v47 }
 0x6ea   :  { %v2159_v30 = vpop.f32.mrf.mxu1 }
 0x6eb   :  { %v1622_v51 = vmax.f32 %v1583_v56, 0.0  ;;  %2226 = vmatmul.mubr.f32.gmra.mxu0 %v1634_v7 }
 0x6ec   :  { %2228 = vmatprep.mubr.msk.f32.mxu0 %vm2481_vm0, %v2480_v0  ;;  %v1587_v13 = vpop.f32.mrf.mxu1 }
 0x6ed   :  { %v1635_v31 = vmul.f32 %v1622_v51, %v1622_v51  ;;  %v1588_v16 = vadd.f32 %v3185_v48, %v1587_v13 }
 0x6ee   :  { %v2162_v29 = vpop.f32.mrf.mxu1 }
 0x6ef   :  { %2229 = vmatmul.mubr.f32.gmra.mxu0 %v1635_v31  ;;  %v1623_v57 = vmax.f32 %v1588_v16, 0.0 }
 0x6f0   :  { %2231 = vmatprep.mubr.msk.f32.mxu0 %vm2481_vm0, %v2480_v0  ;;  %v1592_v33 = vpop.f32.mrf.mxu1 }
 0x6f1   :  { %v1636_v35 = vmul.f32 %v1623_v57, %v1623_v57  ;;  %v1593_v9 = vadd.f32 %v3185_v48, %v1592_v33 }
 0x6f2   :  { %v2165_v22 = vpop.f32.mrf.mxu1 }
 0x6f3   :  { %v1624_v62 = vmax.f32 %v1593_v9, 0.0  ;;  %2232 = vmatmul.mubr.f32.gmra.mxu0 %v1636_v35 }
 0x6f4   :  { %v1597_v39 = vpop.f32.mrf.mxu1  ;;  %2234 = vmatprep.mubr.msk.f32.mxu0 %vm2481_vm0, %v2480_v0 }
 0x6f5   :  { %v1637_v37 = vmul.f32 %v1624_v62, %v1624_v62  ;;  %v1598_v21 = vadd.f32 %v3185_v48, %v1597_v39 }
 0x6f6   :  { %v2168_v38 = vpop.f32.mrf.mxu1 }
 0x6f7   :  { %v1625_v63 = vmax.f32 %v1598_v21, 0.0  ;;  %2235 = vmatmul.mubr.f32.gmra.mxu0 %v1637_v37 }
 0x6f8   :  { %v1602_v27 = vpop.f32.mrf.mxu1  ;;  %2237 = vmatprep.mubr.msk.f32.mxu0 %vm2481_vm0, %v2480_v0 }
 0x6f9   :  { %v1638_v34 = vmul.f32 %v1625_v63, %v1625_v63  ;;  %v1603_v42 = vadd.f32 %v3185_v48, %v1602_v27 }
 0x6fa   :  { %v2171_v44 = vpop.f32.mrf.mxu1 }
 0x6fb   :  { %v1626_v32 = vmax.f32 %v1603_v42, 0.0  ;;  %2238 = vmatmul.mubr.f32.gmra.mxu0 %v1638_v34 }
 0x6fc   :  { %v1607_v4 = vpop.f32.mrf.mxu1  ;;  %2240 = vmatprep.mubr.msk.f32.mxu0 %vm2481_vm0, %v2480_v0 }
 0x6fd   :  { %v1639_v45 = vmul.f32 %v1626_v32, %v1626_v32  ;;  %v1608_v36 = vadd.f32 %v3185_v48, %v1607_v4 }
 0x6fe   :  { %v2174_v3 = vpop.f32.mrf.mxu1 }
 0x6ff   :  { %v1627_v49 = vmax.f32 %v1608_v36, 0.0  ;;  %2241 = vmatmul.mubr.f32.gmra.mxu0 %v1639_v45 }
 0x700   :  { %v1612_v17 = vpop.f32.mrf.mxu1  ;;  %2243 = vmatprep.mubr.msk.f32.mxu0 %vm2481_vm0, %v2480_v0 }
 0x701   :  { %v1640_v46 = vmul.f32 %v1627_v49, %v1627_v49  ;;  %v1613_v59 = vadd.f32 %v3185_v48, %v1612_v17 }
 0x702   :  { %v2177_v10 = vpop.f32.mrf.mxu1 }
 0x703   :  { %v1628_v5 = vmax.f32 %v1613_v59, 0.0  ;;  %2244 = vmatmul.mubr.f32.gmra.mxu0 %v1640_v46 }
 0x704   :  { %2246 = vmatprep.mubr.msk.f32.mxu0 %vm2481_vm0, %v2480_v0 }
 0x705   :  { %v1641_v52 = vmul.f32 %v1628_v5, %v1628_v5 }
 0x707   :  { %2247 = vmatmul.mubr.f32.gmra.mxu0 %v1641_v52 }
 0x797   :  { %v1731_v43 = vpop.f32.mrf.mxu0 }
 0x798   :  { %v1732_v8 = vadd.f32 %v1848_v53, %v1731_v43 }
 0x799   :  { %v2212_v25 = vpop.f32.mrf.mxu0 }
 0x79a   :  { %1795 = vst [vmem:[#allocation11] sm:$0xff] %v1732_v8 }
 0x79b   :  { %v1736_v54 = vpop.f32.mrf.mxu0 }
 0x79c   :  { %v1737_v55 = vadd.f32 %v1848_v53, %v1736_v54 }
 0x79d   :  { %v2215_v60 = vpop.f32.mrf.mxu0 }
 0x79e   :  { %1796 = vst [vmem:[#allocation11 + $0x8] sm:$0xff] %v1737_v55 }
 0x79f   :  { %v1741_v48 = vpop.f32.mrf.mxu0 }
 0x7a0   :  { %v1742_v61 = vadd.f32 %v1848_v53, %v1741_v48 }
 0x7a1   :  { %v2218_v2 = vpop.f32.mrf.mxu0 }
 0x7a2   :  { %1797 = vst [vmem:[#allocation11 + $0x10] sm:$0xff] %v1742_v61 }
 0x7a3   :  { %v1746_v41 = vpop.f32.mrf.mxu0 }
 0x7a4   :  { %v1747_v0 = vadd.f32 %v1848_v53, %v1746_v41 }
 0x7a5   :  { %v2221_v6 = vpop.f32.mrf.mxu0 }
 0x7a6   :  { %1798 = vst [vmem:[#allocation11 + $0x18] sm:$0xff] %v1747_v0 }
 0x7a7   :  { %v1751_v11 = vpop.f32.mrf.mxu0 }
 0x7a8   :  { %v1752_v50 = vadd.f32 %v1848_v53, %v1751_v11 }
 0x7a9   :  { %v2224_v58 = vpop.f32.mrf.mxu0 }
 0x7aa   :  { %1799 = vst [vmem:[#allocation11 + $0x20] sm:$0xff] %v1752_v50 }
 0x7ab   :  { %v1756_v15 = vpop.f32.mrf.mxu0 }
 0x7ac   :  { %v1757_v18 = vadd.f32 %v1848_v53, %v1756_v15 }
 0x7ad   :  { %v2227_v12 = vpop.f32.mrf.mxu0 }
 0x7ae   :  { %1800 = vst [vmem:[#allocation11 + $0x28] sm:$0xff] %v1757_v18 }
 0x7af   :  { %v1761_v14 = vpop.f32.mrf.mxu0 }
 0x7b0   :  { %v1762_v40 = vadd.f32 %v1848_v53, %v1761_v14 }
 0x7b1   :  { %v2230_v20 = vpop.f32.mrf.mxu0 }
 0x7b2   :  { %1801 = vst [vmem:[#allocation11 + $0x30] sm:$0xff] %v1762_v40 }
 0x7b3   :  { %v1766_v23 = vpop.f32.mrf.mxu0 }
 0x7b4   :  { %v1767_v24 = vadd.f32 %v1848_v53, %v1766_v23 }
 0x7b5   :  { %v2233_v1 = vpop.f32.mrf.mxu0 }
 0x7b6   :  { %1802 = vst [vmem:[#allocation11 + $0x38] sm:$0xff] %v1767_v24 }
 0x7b7   :  { %v1771_v26 = vpop.f32.mrf.mxu0 }
 0x7b8   :  { %v1772_v28 = vadd.f32 %v1848_v53, %v1771_v26 }
 0x7b9   :  { %v2236_v19 = vpop.f32.mrf.mxu0 }
 0x7ba   :  { %1803 = vst [vmem:[#allocation11 + $0x40] sm:$0xff] %v1772_v28 }
 0x7bb   :  { %v1776_v47 = vpop.f32.mrf.mxu0 }
 0x7bc   :  { %v1777_v7 = vadd.f32 %v1848_v53, %v1776_v47 }
 0x7bd   :  { %v2239_v56 = vpop.f32.mrf.mxu0 }
 0x7be   :  { %1804 = vst [vmem:[#allocation11 + $0x48] sm:$0xff] %v1777_v7 }
 0x7bf   :  { %v1781_v30 = vpop.f32.mrf.mxu0 }
 0x7c0   :  { %v1782_v51 = vadd.f32 %v1848_v53, %v1781_v30 }
 0x7c1   :  { %v2242_v31 = vpop.f32.mrf.mxu0 }
 0x7c2   :  { %1805 = vst [vmem:[#allocation11 + $0x50] sm:$0xff] %v1782_v51 }
 0x7c3   :  { %v1786_v13 = vpop.f32.mrf.mxu0 }
 0x7c4   :  { %v1787_v16 = vadd.f32 %v1848_v53, %v1786_v13 }
 0x7c5   :  { %v2245_v29 = vpop.f32.mrf.mxu0 }
 0x7c6   :  { %1806 = vst [vmem:[#allocation11 + $0x58] sm:$0xff] %v1787_v16 }
 0x7c7   :  { %v1791_v57 = vpop.f32.mrf.mxu0 }
 0x7c8   :  { %v1792_v33 = vadd.f32 %v1848_v53, %v1791_v57 }
 0x7c9   :  { %v2248_v35 = vpop.f32.mrf.mxu0 }
 0x7ca   :  { %1807 = vst [vmem:[#allocation11 + $0x60] sm:$0xff] %v1792_v33 }
 0x7cb   :  { %2454 = shalt.err (!%p2451_p1)
}
 0x7cc   :  { %1819 = dma.vmem_to_hbm [thread:$0]  %s1814_s11, 1664, %s3246_s13, [#allocation4], %s2474_s19, %s2474_s19, %s2475_s20  }
 0x7cd   :  { %2469 = dma.done.wait [#allocation4], 1664  }
 0x7ce   :  { %2470 = vsyncadd [#allocation4], 4294965632 }
 0x7cf   :  { %1823 = vsyncpa [#allocation3], 1 }
 0x7d0   :  { %1824 = vsyncpa [#allocation6], 1 }
 0x7d1   :  { %1825 = vsyncpa [#allocation9], 1 }
 0x7d2   :  { %1826 = vsyncpa [#allocation4], 1 }

</bundles_post_ra>
